<compile_context>
chip_gen: v7x
topology: tpu7x:2x2x1
jax: 0.10.0
libtpu: 0.0.40
codegen_flags: <defaults>
</compile_context>

<pallas_src>
import functools

import jax
import jax.numpy as jnp
from jax import lax
from jax.experimental import pallas as pl
from jax.experimental.pallas import tpu as pltpu


def _round_up(v, m):
    return ((v + m - 1) // m) * m


def _pick_row_tile(rows, row_width, target=1024):
    """Largest divisor of `rows` keeping the matmul M-tile (divisor*row_width) <= target."""
    best = 1
    for d in range(1, rows + 1):
        if rows % d == 0 and d * row_width <= max(target, row_width):
            best = d
    return best


# ----------------------------------------------------------------------------- down path
def _make_down_kernel(c, n2p, toh, wo, mm_dtype):
    """LeakyReLU(0.2) + Conv2d(k=4, s=2, p=1) + ReLU, as a dense 2x2 conv on the
    space-to-depth input.  x_ref holds the whole (padded, s2d) image; patches are
    sliced in VMEM/vregs — no im2col matrix ever touches HBM."""
    k_in = 4 * c

    def kernel(x_ref, w_ref, y_ref):
        t = pl.program_id(1)
        r0 = t * toh
        slab = x_ref[0, pl.ds(r0, toh + 1), :, :]                # (toh+1, wo+1, 4c)
        slab = jnp.where(slab > 0, slab, 0.2 * slab)             # LeakyReLU once / element
        acc = jnp.zeros((toh * wo, n2p), jnp.float32)
        for ah in range(2):
            for aw in range(2):
                tap = slab[ah:ah + toh, aw:aw + wo, :].reshape(toh * wo, k_in)
                acc = acc + jnp.dot(tap.astype(mm_dtype),
                                    w_ref[2 * ah + aw].astype(mm_dtype),
                                    preferred_element_type=jnp.float32)
        # fused ReLU (the module applies ReLU right after the down conv)
        y_ref[...] = jnp.maximum(acc, 0.0).reshape(1, toh, wo, n2p)

    return kernel


# ------------------------------------------------------------------------------- up path
# phase r in {0,1}: tap d=0 -> y offset 0, d=1 -> y offset (-1 if r==0 else +1)
_OFF = ((0, -1), (0, 1))


def _make_up_kernel(n2p, n1p, tq, wo, mm_dtype):
    """Sub-pixel ConvTranspose2d(k=4, s=2, p=1): 4 output phases, each a 2x2 conv on
    (already ReLU'd) y.  Also accumulates per-channel sum / sumsq for BatchNorm into
    revisited (1,1,n1p) output blocks across the row-tile (reduction) axis."""

    def kernel(y_ref, w_ref, z_ref, s_ref, ss_ref):
        t = pl.program_id(1)
        q0 = t * tq
        slab = y_ref[0, pl.ds(q0, tq + 2), :, :]                 # (tq+2, wo+2, n2p)

        @pl.when(t == 0)
        def _init():
            s_ref[...] = jnp.zeros_like(s_ref)
            ss_ref[...] = jnp.zeros_like(ss_ref)

        tot_s = jnp.zeros((1, n1p), jnp.float32)
        tot_ss = jnp.zeros((1, n1p), jnp.float32)
        for ph, (rh, rw) in enumerate(((0, 0), (0, 1), (1, 0), (1, 1))):
            acc = jnp.zeros((tq * wo, n1p), jnp.float32)
            for tap, (dh, dw) in enumerate(((0, 0), (0, 1), (1, 0), (1, 1))):
                h0 = 1 + _OFF[rh][dh]
                w0 = 1 + _OFF[rw][dw]
                win = slab[h0:h0 + tq, w0:w0 + wo, :].reshape(tq * wo, n2p)
                acc = acc + jnp.dot(win.astype(mm_dtype),
                                    w_ref[ph, tap].astype(mm_dtype),
                                    preferred_element_type=jnp.float32)
            # lane-dense, 128-aligned channel-slab store (phase-major layout)
            z_ref[0, :, :, ph * n1p:(ph + 1) * n1p] = acc.reshape(tq, wo, n1p)
            tot_s = tot_s + jnp.sum(acc, axis=0, keepdims=True)
            tot_ss = tot_ss + jnp.sum(acc * acc, axis=0, keepdims=True)
        s_ref[...] = s_ref[...] + tot_s.reshape(1, 1, n1p)
        ss_ref[...] = ss_ref[...] + tot_ss.reshape(1, 1, n1p)

    return kernel


# --------------------------------------------------------------- BatchNorm affine (pass 2)
def _bn_affine_kernel(z_ref, a_ref, b_ref, o_ref):
    o_ref[...] = z_ref[...] * a_ref[0] + b_ref[0]


# -------------------------------------------------------------------------------- wrapper
@functools.partial(jax.jit, static_argnames=("matmul_dtype",))
def unet_unit_inner_forward(x_nchw, wd, wt, gamma, beta, matmul_dtype=jnp.float32):
    """x_nchw: (N, c, H, W); wd: (n2, c, 4, 4); wt: (n2, n1, 4, 4); gamma/beta: (n1,)."""
    n, c, h, w = x_nchw.shape
    n2 = wd.shape[0]
    n1 = wt.shape[1]
    ho, wo = h // 2, w // 2
    n2p = _round_up(n2, 128)                                     # lane-dense channel padding
    n1p = _round_up(n1, 128)

    x = jnp.transpose(x_nchw, (0, 2, 3, 1)).astype(jnp.float32)  # NHWC

    # ---- space-to-depth of the padded input: stride-2 k=4 conv -> dense 2x2 conv ----
    xpad = jnp.pad(x, ((0, 0), (1, 1), (1, 1), (0, 0)))          # (N, H+2, W+2, c)
    x6 = xpad.reshape(n, ho + 1, 2, wo + 1, 2, c)
    x_s2d = jnp.transpose(x6, (0, 1, 3, 2, 4, 5)).reshape(n, ho + 1, wo + 1, 4 * c)

    # down weights: W2[ah*2+aw, (bh*2+bw)*c + ci, co] = wd[co, ci, 2ah+bh, 2aw+bw]
    w2 = jnp.transpose(wd, (2, 3, 1, 0)).reshape(2, 2, 2, 2, c, n2)
    w2 = jnp.transpose(w2, (0, 2, 1, 3, 4, 5)).reshape(4, 4 * c, n2)
    w2 = jnp.pad(w2.astype(jnp.float32), ((0, 0), (0, 0), (0, n2p - n2)))

    toh = _pick_row_tile(ho, wo)
    y = pl.pallas_call(
        _make_down_kernel(c, n2p, toh, wo, matmul_dtype),
        out_shape=jax.ShapeDtypeStruct((n, ho, wo, n2p), jnp.float32),
        grid=(n, ho // toh),
        in_specs=[
            pl.BlockSpec((1, ho + 1, wo + 1, 4 * c), lambda i, t: (i, 0, 0, 0)),
            pl.BlockSpec((4, 4 * c, n2p), lambda i, t: (0, 0, 0)),
        ],
        out_specs=pl.BlockSpec((1, toh, wo, n2p), lambda i, t: (i, t, 0, 0)),
        compiler_params=pltpu.CompilerParams(
            dimension_semantics=("parallel", "parallel")),
    )(x_s2d, w2)

    # up weights: Wup[rh*2+rw, dh*2+dw, ci, co] = wt[ci, co, KH(rh,dh), KW(rw,dw)]
    kk = ((1, 3), (2, 0))
    blocks = []
    for rh in range(2):
        for rw in range(2):
            taps = [wt[:, :, kk[rh][dh], kk[rw][dw]] for dh in range(2) for dw in range(2)]
            blocks.append(jnp.stack(taps, 0))
    wup = jnp.stack(blocks, 0).astype(jnp.float32)               # (4, 4, n2, n1)
    wup = jnp.pad(wup, ((0, 0), (0, 0), (0, n2p - n2), (0, n1p - n1)))

    ypad = jnp.pad(y, ((0, 0), (1, 1), (1, 1), (0, 0)))          # (N, ho+2, wo+2, n2p)

    tq = _pick_row_tile(ho, wo)
    z_ph, bn_sum, bn_ssq = pl.pallas_call(
        _make_up_kernel(n2p, n1p, tq, wo, matmul_dtype),
        out_shape=(
            jax.ShapeDtypeStruct((n, ho, wo, 4 * n1p), jnp.float32),   # phase-major z
            jax.ShapeDtypeStruct((n, 1, n1p), jnp.float32),            # per-channel sum
            jax.ShapeDtypeStruct((n, 1, n1p), jnp.float32),            # per-channel sumsq
        ),
        grid=(n, ho // tq),
        in_specs=[
            pl.BlockSpec((1, ho + 2, wo + 2, n2p), lambda i, t: (i, 0, 0, 0)),
            pl.BlockSpec((4, 4, n2p, n1p), lambda i, t: (0, 0, 0, 0)),
        ],
        out_specs=(
            pl.BlockSpec((1, tq, wo, 4 * n1p), lambda i, t: (i, t, 0, 0)),
            pl.BlockSpec((1, 1, n1p), lambda i, t: (i, 0, 0)),
            pl.BlockSpec((1, 1, n1p), lambda i, t: (i, 0, 0)),
        ),
        compiler_params=pltpu.CompilerParams(
            dimension_semantics=("parallel", "arbitrary")),
    )(ypad, wup)

    # ---- BatchNorm2d (training mode, biased variance) from the accumulated stats ----
    count = jnp.float32(n * h * w)
    ch_sum = jnp.sum(bn_sum[:, 0, :n1], axis=0)
    ch_ssq = jnp.sum(bn_ssq[:, 0, :n1], axis=0)
    mean = ch_sum / count
    var = jnp.maximum(ch_ssq / count - mean * mean, 0.0)
    inv = lax.rsqrt(var + 1e-5)
    scale = gamma.astype(jnp.float32) * inv
    shift = beta.astype(jnp.float32) - mean * scale
    scale_ph = jnp.tile(jnp.pad(scale, (0, n1p - n1)), 4).reshape(1, 4 * n1p)
    shift_ph = jnp.tile(jnp.pad(shift, (0, n1p - n1)), 4).reshape(1, 4 * n1p)

    # second, lightweight normalize pass on the lane-dense phase layout
    ta = _pick_row_tile(ho, wo)
    z_bn = pl.pallas_call(
        _bn_affine_kernel,
        out_shape=jax.ShapeDtypeStruct((n, ho, wo, 4 * n1p), jnp.float32),
        grid=(n, ho // ta),
        in_specs=[
            pl.BlockSpec((1, ta, wo, 4 * n1p), lambda i, t: (i, t, 0, 0)),
            pl.BlockSpec((1, 4 * n1p), lambda i, t: (0, 0)),
            pl.BlockSpec((1, 4 * n1p), lambda i, t: (0, 0)),
        ],
        out_specs=pl.BlockSpec((1, ta, wo, 4 * n1p), lambda i, t: (i, t, 0, 0)),
        compiler_params=pltpu.CompilerParams(
            dimension_semantics=("parallel", "parallel")),
    )(z_ph, scale_ph, shift_ph)

    # TODO(synk): the phase->spatial rearrange, channel concat and NCHW transpose are
    # pure layout glue and are left to XLA (fused under jit) rather than faked in Pallas.
    z6 = z_bn.reshape(n, ho, wo, 2, 2, n1p)[..., :n1]
    z_nhwc = jnp.transpose(z6, (0, 1, 3, 2, 4, 5)).reshape(n, h, w, n1)
    out = jnp.concatenate([x, z_nhwc], axis=-1)                  # cat([x, model(x)], channel)
    return jnp.transpose(out, (0, 3, 1, 2))                      # back to NCHW


if __name__ == "__main__":
    key = jax.random.PRNGKey(0)
    k_x, k_wd, k_wt = jax.random.split(key, 3)

    N, H, W = 2, 16, 16
    n1 = c = 4        # c defaults to n1 in the module
    n2 = 8

    x = jax.random.normal(k_x, (N, c, H, W), jnp.float32)
    wd = 0.1 * jax.random.normal(k_wd, (n2, c, 4, 4), jnp.float32)   # Conv2d weight
    wt = 0.1 * jax.random.normal(k_wt, (n2, n1, 4, 4), jnp.float32)  # ConvTranspose2d weight
    gamma = jnp.ones((n1,), jnp.float32)   # BatchNorm2d default init
    beta = jnp.zeros((n1,), jnp.float32)

    out = unet_unit_inner_forward(x, wd, wt, gamma, beta)
    out = jax.block_until_ready(out)
    assert out.shape == (N, c + n1, H, W), out.shape
    assert bool(jnp.all(jnp.isfinite(out)))
    print("KERNEL_OK")
</pallas_src>

<mosaic_0001>
module attributes {stable_mosaic.version = 11 : i64} {
  func.func @kernel(%arg0: i32, %arg1: i32, %arg2: memref<1x9x9x16xf32, #tpu.memory_space<vmem>>, %arg3: memref<4x16x128xf32, #tpu.memory_space<vmem>>, %arg4: memref<1x8x8x128xf32, #tpu.memory_space<vmem>>) attributes {dimension_semantics = [#tpu.dimension_semantics<parallel>, #tpu.dimension_semantics<parallel>], iteration_bounds = array<i64: 2, 1>, scalar_prefetch = 0 : i64, scratch_operands = 0 : i64, tpu.core_type = #tpu.core_type<tc>, window_params = [{transform_indices = @transform_0, window_bounds = array<i64: 1, 9, 9, 16>}, {pipeline_mode = #tpu.pipeline_mode<synchronous>, transform_indices = @transform_1, window_bounds = array<i64: 4, 16, 128>}, {transform_indices = @transform_2, window_bounds = array<i64: 1, 8, 8, 128>}]} {
    %c8_i32 = arith.constant 8 : i32
    %0 = arith.muli %arg1, %c8_i32 : i32
    %c0 = arith.constant 0 : index
    %1 = arith.index_cast %0 : i32 to index
    %c0_0 = arith.constant 0 : index
    %c0_1 = arith.constant 0 : index
    %2 = vector.load %arg2[%c0, %1, %c0_0, %c0_1] : memref<1x9x9x16xf32, #tpu.memory_space<vmem>>, vector<1x9x9x16xf32>
    %3 = vector.shape_cast %2 : vector<1x9x9x16xf32> to vector<9x9x16xf32>
    %cst = arith.constant 0.000000e+00 : f32
    %4 = vector.broadcast %cst : f32 to vector<9x9x16xf32>
    %5 = arith.cmpf ogt, %3, %4 : vector<9x9x16xf32>
    %cst_2 = arith.constant 2.000000e-01 : f32
    %6 = vector.broadcast %cst_2 : f32 to vector<9x9x16xf32>
    %7 = arith.mulf %6, %3 : vector<9x9x16xf32>
    %8 = arith.select %5, %3, %7 : vector<9x9x16xi1>, vector<9x9x16xf32>
    %cst_3 = arith.constant 0.000000e+00 : f32
    %9 = vector.broadcast %cst_3 : f32 to vector<64x128xf32>
    %10 = vector.extract_strided_slice %8 {offsets = [0, 0, 0], sizes = [8, 8, 16], strides = [1, 1, 1]} : vector<9x9x16xf32> to vector<8x8x16xf32>
    %11 = vector.shape_cast %10 : vector<8x8x16xf32> to vector<64x16xf32>
    %c0_4 = arith.constant 0 : index
    %c0_5 = arith.constant 0 : index
    %c0_6 = arith.constant 0 : index
    %12 = vector.load %arg3[%c0_4, %c0_5, %c0_6] : memref<4x16x128xf32, #tpu.memory_space<vmem>>, vector<1x16x128xf32>
    %13 = vector.shape_cast %12 : vector<1x16x128xf32> to vector<16x128xf32>
    %cst_7 = arith.constant dense<0.000000e+00> : vector<64x128xf32>
    %14 = tpu.matmul %11, %13, %cst_7 {dimension_numbers = #tpu.dot_dimension_numbers<[1], [0], [0], [1], [0, 0, 1, 1], [], []>} : vector<64x16xf32>, vector<16x128xf32>, vector<64x128xf32> -> vector<64x128xf32>
    %15 = arith.addf %9, %14 : vector<64x128xf32>
    %16 = vector.extract_strided_slice %8 {offsets = [0, 1, 0], sizes = [8, 8, 16], strides = [1, 1, 1]} : vector<9x9x16xf32> to vector<8x8x16xf32>
    %17 = vector.shape_cast %16 : vector<8x8x16xf32> to vector<64x16xf32>
    %c1 = arith.constant 1 : index
    %c0_8 = arith.constant 0 : index
    %c0_9 = arith.constant 0 : index
    %18 = vector.load %arg3[%c1, %c0_8, %c0_9] : memref<4x16x128xf32, #tpu.memory_space<vmem>>, vector<1x16x128xf32>
    %19 = vector.shape_cast %18 : vector<1x16x128xf32> to vector<16x128xf32>
    %cst_10 = arith.constant dense<0.000000e+00> : vector<64x128xf32>
    %20 = tpu.matmul %17, %19, %cst_10 {dimension_numbers = #tpu.dot_dimension_numbers<[1], [0], [0], [1], [0, 0, 1, 1], [], []>} : vector<64x16xf32>, vector<16x128xf32>, vector<64x128xf32> -> vector<64x128xf32>
    %21 = arith.addf %15, %20 : vector<64x128xf32>
    %22 = vector.extract_strided_slice %8 {offsets = [1, 0, 0], sizes = [8, 8, 16], strides = [1, 1, 1]} : vector<9x9x16xf32> to vector<8x8x16xf32>
    %23 = vector.shape_cast %22 : vector<8x8x16xf32> to vector<64x16xf32>
    %c2 = arith.constant 2 : index
    %c0_11 = arith.constant 0 : index
    %c0_12 = arith.constant 0 : index
    %24 = vector.load %arg3[%c2, %c0_11, %c0_12] : memref<4x16x128xf32, #tpu.memory_space<vmem>>, vector<1x16x128xf32>
    %25 = vector.shape_cast %24 : vector<1x16x128xf32> to vector<16x128xf32>
    %cst_13 = arith.constant dense<0.000000e+00> : vector<64x128xf32>
    %26 = tpu.matmul %23, %25, %cst_13 {dimension_numbers = #tpu.dot_dimension_numbers<[1], [0], [0], [1], [0, 0, 1, 1], [], []>} : vector<64x16xf32>, vector<16x128xf32>, vector<64x128xf32> -> vector<64x128xf32>
    %27 = arith.addf %21, %26 : vector<64x128xf32>
    %28 = vector.extract_strided_slice %8 {offsets = [1, 1, 0], sizes = [8, 8, 16], strides = [1, 1, 1]} : vector<9x9x16xf32> to vector<8x8x16xf32>
    %29 = vector.shape_cast %28 : vector<8x8x16xf32> to vector<64x16xf32>
    %c3 = arith.constant 3 : index
    %c0_14 = arith.constant 0 : index
    %c0_15 = arith.constant 0 : index
    %30 = vector.load %arg3[%c3, %c0_14, %c0_15] : memref<4x16x128xf32, #tpu.memory_space<vmem>>, vector<1x16x128xf32>
    %31 = vector.shape_cast %30 : vector<1x16x128xf32> to vector<16x128xf32>
    %cst_16 = arith.constant dense<0.000000e+00> : vector<64x128xf32>
    %32 = tpu.matmul %29, %31, %cst_16 {dimension_numbers = #tpu.dot_dimension_numbers<[1], [0], [0], [1], [0, 0, 1, 1], [], []>} : vector<64x16xf32>, vector<16x128xf32>, vector<64x128xf32> -> vector<64x128xf32>
    %33 = arith.addf %27, %32 : vector<64x128xf32>
    %cst_17 = arith.constant 0.000000e+00 : f32
    %34 = vector.broadcast %cst_17 : f32 to vector<64x128xf32>
    %35 = arith.maximumf %33, %34 : vector<64x128xf32>
    %36 = vector.shape_cast %35 : vector<64x128xf32> to vector<1x8x8x128xf32>
    %c0_18 = arith.constant 0 : index
    %c0_19 = arith.constant 0 : index
    %c0_20 = arith.constant 0 : index
    %c0_21 = arith.constant 0 : index
    %37 = vector.load %arg4[%c0_18, %c0_19, %c0_20, %c0_21] : memref<1x8x8x128xf32, #tpu.memory_space<vmem>>, vector<1x8x8x128xf32>
    tpu.vector_store %arg4[%c0_18, %c0_19, %c0_20, %c0_21], %36 {strides = array<i32>} : memref<1x8x8x128xf32, #tpu.memory_space<vmem>>, vector<1x8x8x128xf32>,
    return
  }
  func.func @transform_0(%arg0: i32, %arg1: i32) -> (i32, i32, i32, i32) {
    %c0_i32 = arith.constant 0 : i32
    %c0_i32_0 = arith.constant 0 : i32
    %c0_i32_1 = arith.constant 0 : i32
    %c0_i32_2 = arith.constant 0 : i32
    return %arg0, %c0_i32, %c0_i32_0, %c0_i32_1 : i32, i32, i32, i32
  }
  func.func @transform_1(%arg0: i32, %arg1: i32) -> (i32, i32, i32) {
    %c0_i32 = arith.constant 0 : i32
    %c0_i32_0 = arith.constant 0 : i32
    %c0_i32_1 = arith.constant 0 : i32
    %c0_i32_2 = arith.constant 0 : i32
    return %c0_i32, %c0_i32_0, %c0_i32_1 : i32, i32, i32
  }
  func.func @transform_2(%arg0: i32, %arg1: i32) -> (i32, i32, i32, i32) {
    %c0_i32 = arith.constant 0 : i32
    %c0_i32_0 = arith.constant 0 : i32
    %c0_i32_1 = arith.constant 0 : i32
    return %arg0, %arg1, %c0_i32, %c0_i32_0 : i32, i32, i32, i32
  }
}

module attributes {stable_mosaic.version = 11 : i64} {
  func.func @kernel(%arg0: i32, %arg1: i32, %arg2: memref<1x10x10x128xf32, #tpu.memory_space<vmem>>, %arg3: memref<4x4x128x128xf32, #tpu.memory_space<vmem>>, %arg4: memref<1x8x8x512xf32, #tpu.memory_space<vmem>>, %arg5: memref<1x1x128xf32, #tpu.memory_space<vmem>>, %arg6: memref<1x1x128xf32, #tpu.memory_space<vmem>>) attributes {dimension_semantics = [#tpu.dimension_semantics<parallel>, #tpu.dimension_semantics<arbitrary>], iteration_bounds = array<i64: 2, 1>, scalar_prefetch = 0 : i64, scratch_operands = 0 : i64, tpu.core_type = #tpu.core_type<tc>, window_params = [{transform_indices = @transform_0, window_bounds = array<i64: 1, 10, 10, 128>}, {pipeline_mode = #tpu.pipeline_mode<synchronous>, transform_indices = @transform_1, window_bounds = array<i64: 4, 4, 128, 128>}, {transform_indices = @transform_2, window_bounds = array<i64: 1, 8, 8, 512>}, {transform_indices = @transform_3, window_bounds = array<i64: 1, 1, 128>}, {transform_indices = @transform_4, window_bounds = array<i64: 1, 1, 128>}]} {
    %c8_i32 = arith.constant 8 : i32
    %0 = arith.muli %arg1, %c8_i32 : i32
    %c0 = arith.constant 0 : index
    %1 = arith.index_cast %0 : i32 to index
    %c0_0 = arith.constant 0 : index
    %c0_1 = arith.constant 0 : index
    %2 = vector.load %arg2[%c0, %1, %c0_0, %c0_1] : memref<1x10x10x128xf32, #tpu.memory_space<vmem>>, vector<1x10x10x128xf32>
    %3 = vector.shape_cast %2 : vector<1x10x10x128xf32> to vector<10x10x128xf32>
    %c0_i32 = arith.constant 0 : i32
    %4 = arith.cmpi eq, %arg1, %c0_i32 : i32
    %5 = arith.extui %4 : i1 to i32
    %c0_i32_2 = arith.constant 0 : i32
    %6 = arith.cmpi ne, %5, %c0_i32_2 : i32
    scf.if %6 {
      %cst_118 = arith.constant 0.000000e+00 : f32
      %161 = vector.broadcast %cst_118 : f32 to vector<1x1x128xf32>
      %c0_119 = arith.constant 0 : index
      %c0_120 = arith.constant 0 : index
      %c0_121 = arith.constant 0 : index
      %162 = vector.load %arg5[%c0_119, %c0_120, %c0_121] : memref<1x1x128xf32, #tpu.memory_space<vmem>>, vector<1x1x128xf32>
      tpu.vector_store %arg5[%c0_119, %c0_120, %c0_121], %161 {strides = array<i32>} : memref<1x1x128xf32, #tpu.memory_space<vmem>>, vector<1x1x128xf32>,
      %cst_122 = arith.constant 0.000000e+00 : f32
      %163 = vector.broadcast %cst_122 : f32 to vector<1x1x128xf32>
      %c0_123 = arith.constant 0 : index
      %c0_124 = arith.constant 0 : index
      %c0_125 = arith.constant 0 : index
      %164 = vector.load %arg6[%c0_123, %c0_124, %c0_125] : memref<1x1x128xf32, #tpu.memory_space<vmem>>, vector<1x1x128xf32>
      tpu.vector_store %arg6[%c0_123, %c0_124, %c0_125], %163 {strides = array<i32>} : memref<1x1x128xf32, #tpu.memory_space<vmem>>, vector<1x1x128xf32>,
    } else {
    }
    %cst = arith.constant 0.000000e+00 : f32
    %7 = vector.broadcast %cst : f32 to vector<1x128xf32>
    %cst_3 = arith.constant 0.000000e+00 : f32
    %8 = vector.broadcast %cst_3 : f32 to vector<1x128xf32>
    %cst_4 = arith.constant 0.000000e+00 : f32
    %9 = vector.broadcast %cst_4 : f32 to vector<64x128xf32>
    %10 = vector.extract_strided_slice %3 {offsets = [1, 1, 0], sizes = [8, 8, 128], strides = [1, 1, 1]} : vector<10x10x128xf32> to vector<8x8x128xf32>
    %11 = vector.shape_cast %10 : vector<8x8x128xf32> to vector<64x128xf32>
    %c0_5 = arith.constant 0 : index
    %c0_6 = arith.constant 0 : index
    %c0_7 = arith.constant 0 : index
    %c0_8 = arith.constant 0 : index
    %12 = vector.load %arg3[%c0_5, %c0_6, %c0_7, %c0_8] : memref<4x4x128x128xf32, #tpu.memory_space<vmem>>, vector<1x1x128x128xf32>
    %13 = vector.shape_cast %12 : vector<1x1x128x128xf32> to vector<128x128xf32>
    %cst_9 = arith.constant dense<0.000000e+00> : vector<64x128xf32>
    %14 = tpu.matmul %11, %13, %cst_9 {dimension_numbers = #tpu.dot_dimension_numbers<[1], [0], [0], [1], [0, 0, 1, 1], [], []>} : vector<64x128xf32>, vector<128x128xf32>, vector<64x128xf32> -> vector<64x128xf32>
    %15 = arith.addf %9, %14 : vector<64x128xf32>
    %16 = vector.extract_strided_slice %3 {offsets = [1, 0, 0], sizes = [8, 8, 128], strides = [1, 1, 1]} : vector<10x10x128xf32> to vector<8x8x128xf32>
    %17 = vector.shape_cast %16 : vector<8x8x128xf32> to vector<64x128xf32>
    %c0_10 = arith.constant 0 : index
    %c1 = arith.constant 1 : index
    %c0_11 = arith.constant 0 : index
    %c0_12 = arith.constant 0 : index
    %18 = vector.load %arg3[%c0_10, %c1, %c0_11, %c0_12] : memref<4x4x128x128xf32, #tpu.memory_space<vmem>>, vector<1x1x128x128xf32>
    %19 = vector.shape_cast %18 : vector<1x1x128x128xf32> to vector<128x128xf32>
    %cst_13 = arith.constant dense<0.000000e+00> : vector<64x128xf32>
    %20 = tpu.matmul %17, %19, %cst_13 {dimension_numbers = #tpu.dot_dimension_numbers<[1], [0], [0], [1], [0, 0, 1, 1], [], []>} : vector<64x128xf32>, vector<128x128xf32>, vector<64x128xf32> -> vector<64x128xf32>
    %21 = arith.addf %15, %20 : vector<64x128xf32>
    %22 = vector.extract_strided_slice %3 {offsets = [0, 1, 0], sizes = [8, 8, 128], strides = [1, 1, 1]} : vector<10x10x128xf32> to vector<8x8x128xf32>
    %23 = vector.shape_cast %22 : vector<8x8x128xf32> to vector<64x128xf32>
    %c0_14 = arith.constant 0 : index
    %c2 = arith.constant 2 : index
    %c0_15 = arith.constant 0 : index
    %c0_16 = arith.constant 0 : index
    %24 = vector.load %arg3[%c0_14, %c2, %c0_15, %c0_16] : memref<4x4x128x128xf32, #tpu.memory_space<vmem>>, vector<1x1x128x128xf32>
    %25 = vector.shape_cast %24 : vector<1x1x128x128xf32> to vector<128x128xf32>
    %cst_17 = arith.constant dense<0.000000e+00> : vector<64x128xf32>
    %26 = tpu.matmul %23, %25, %cst_17 {dimension_numbers = #tpu.dot_dimension_numbers<[1], [0], [0], [1], [0, 0, 1, 1], [], []>} : vector<64x128xf32>, vector<128x128xf32>, vector<64x128xf32> -> vector<64x128xf32>
    %27 = arith.addf %21, %26 : vector<64x128xf32>
    %28 = vector.extract_strided_slice %3 {offsets = [0, 0, 0], sizes = [8, 8, 128], strides = [1, 1, 1]} : vector<10x10x128xf32> to vector<8x8x128xf32>
    %29 = vector.shape_cast %28 : vector<8x8x128xf32> to vector<64x128xf32>
    %c0_18 = arith.constant 0 : index
    %c3 = arith.constant 3 : index
    %c0_19 = arith.constant 0 : index
    %c0_20 = arith.constant 0 : index
    %30 = vector.load %arg3[%c0_18, %c3, %c0_19, %c0_20] : memref<4x4x128x128xf32, #tpu.memory_space<vmem>>, vector<1x1x128x128xf32>
    %31 = vector.shape_cast %30 : vector<1x1x128x128xf32> to vector<128x128xf32>
    %cst_21 = arith.constant dense<0.000000e+00> : vector<64x128xf32>
    %32 = tpu.matmul %29, %31, %cst_21 {dimension_numbers = #tpu.dot_dimension_numbers<[1], [0], [0], [1], [0, 0, 1, 1], [], []>} : vector<64x128xf32>, vector<128x128xf32>, vector<64x128xf32> -> vector<64x128xf32>
    %33 = arith.addf %27, %32 : vector<64x128xf32>
    %34 = vector.shape_cast %33 : vector<64x128xf32> to vector<8x8x128xf32>
    %c0_22 = arith.constant 0 : index
    %c0_23 = arith.constant 0 : index
    %c0_24 = arith.constant 0 : index
    %c0_25 = arith.constant 0 : index
    %35 = vector.load %arg4[%c0_22, %c0_23, %c0_24, %c0_25] : memref<1x8x8x512xf32, #tpu.memory_space<vmem>>, vector<1x8x8x128xf32>
    %36 = vector.shape_cast %35 : vector<1x8x8x128xf32> to vector<8x8x128xf32>
    %37 = vector.shape_cast %34 : vector<8x8x128xf32> to vector<1x8x8x128xf32>
    tpu.vector_store %arg4[%c0_22, %c0_23, %c0_24, %c0_25], %37 {strides = array<i32>} : memref<1x8x8x512xf32, #tpu.memory_space<vmem>>, vector<1x8x8x128xf32>,
    %cst_26 = arith.constant dense<0.000000e+00> : vector<128xf32>
    %38 = vector.multi_reduction <add>, %33, %cst_26 [0] : vector<64x128xf32> to vector<128xf32>
    %39 = vector.shape_cast %38 : vector<128xf32> to vector<1x128xf32>
    %40 = arith.addf %7, %39 : vector<1x128xf32>
    %41 = arith.mulf %33, %33 : vector<64x128xf32>
    %cst_27 = arith.constant dense<0.000000e+00> : vector<128xf32>
    %42 = vector.multi_reduction <add>, %41, %cst_27 [0] : vector<64x128xf32> to vector<128xf32>
    %43 = vector.shape_cast %42 : vector<128xf32> to vector<1x128xf32>
    %44 = arith.addf %8, %43 : vector<1x128xf32>
    %cst_28 = arith.constant 0.000000e+00 : f32
    %45 = vector.broadcast %cst_28 : f32 to vector<64x128xf32>
    %46 = vector.extract_strided_slice %3 {offsets = [1, 1, 0], sizes = [8, 8, 128], strides = [1, 1, 1]} : vector<10x10x128xf32> to vector<8x8x128xf32>
    %47 = vector.shape_cast %46 : vector<8x8x128xf32> to vector<64x128xf32>
    %c1_29 = arith.constant 1 : index
    %c0_30 = arith.constant 0 : index
    %c0_31 = arith.constant 0 : index
    %c0_32 = arith.constant 0 : index
    %48 = vector.load %arg3[%c1_29, %c0_30, %c0_31, %c0_32] : memref<4x4x128x128xf32, #tpu.memory_space<vmem>>, vector<1x1x128x128xf32>
    %49 = vector.shape_cast %48 : vector<1x1x128x128xf32> to vector<128x128xf32>
    %cst_33 = arith.constant dense<0.000000e+00> : vector<64x128xf32>
    %50 = tpu.matmul %47, %49, %cst_33 {dimension_numbers = #tpu.dot_dimension_numbers<[1], [0], [0], [1], [0, 0, 1, 1], [], []>} : vector<64x128xf32>, vector<128x128xf32>, vector<64x128xf32> -> vector<64x128xf32>
    %51 = arith.addf %45, %50 : vector<64x128xf32>
    %52 = vector.extract_strided_slice %3 {offsets = [1, 2, 0], sizes = [8, 8, 128], strides = [1, 1, 1]} : vector<10x10x128xf32> to vector<8x8x128xf32>
    %53 = vector.shape_cast %52 : vector<8x8x128xf32> to vector<64x128xf32>
    %c1_34 = arith.constant 1 : index
    %c1_35 = arith.constant 1 : index
    %c0_36 = arith.constant 0 : index
    %c0_37 = arith.constant 0 : index
    %54 = vector.load %arg3[%c1_34, %c1_35, %c0_36, %c0_37] : memref<4x4x128x128xf32, #tpu.memory_space<vmem>>, vector<1x1x128x128xf32>
    %55 = vector.shape_cast %54 : vector<1x1x128x128xf32> to vector<128x128xf32>
    %cst_38 = arith.constant dense<0.000000e+00> : vector<64x128xf32>
    %56 = tpu.matmul %53, %55, %cst_38 {dimension_numbers = #tpu.dot_dimension_numbers<[1], [0], [0], [1], [0, 0, 1, 1], [], []>} : vector<64x128xf32>, vector<128x128xf32>, vector<64x128xf32> -> vector<64x128xf32>
    %57 = arith.addf %51, %56 : vector<64x128xf32>
    %58 = vector.extract_strided_slice %3 {offsets = [0, 1, 0], sizes = [8, 8, 128], strides = [1, 1, 1]} : vector<10x10x128xf32> to vector<8x8x128xf32>
    %59 = vector.shape_cast %58 : vector<8x8x128xf32> to vector<64x128xf32>
    %c1_39 = arith.constant 1 : index
    %c2_40 = arith.constant 2 : index
    %c0_41 = arith.constant 0 : index
    %c0_42 = arith.constant 0 : index
    %60 = vector.load %arg3[%c1_39, %c2_40, %c0_41, %c0_42] : memref<4x4x128x128xf32, #tpu.memory_space<vmem>>, vector<1x1x128x128xf32>
    %61 = vector.shape_cast %60 : vector<1x1x128x128xf32> to vector<128x128xf32>
    %cst_43 = arith.constant dense<0.000000e+00> : vector<64x128xf32>
    %62 = tpu.matmul %59, %61, %cst_43 {dimension_numbers = #tpu.dot_dimension_numbers<[1], [0], [0], [1], [0, 0, 1, 1], [], []>} : vector<64x128xf32>, vector<128x128xf32>, vector<64x128xf32> -> vector<64x128xf32>
    %63 = arith.addf %57, %62 : vector<64x128xf32>
    %64 = vector.extract_strided_slice %3 {offsets = [0, 2, 0], sizes = [8, 8, 128], strides = [1, 1, 1]} : vector<10x10x128xf32> to vector<8x8x128xf32>
    %65 = vector.shape_cast %64 : vector<8x8x128xf32> to vector<64x128xf32>
    %c1_44 = arith.constant 1 : index
    %c3_45 = arith.constant 3 : index
    %c0_46 = arith.constant 0 : index
    %c0_47 = arith.constant 0 : index
    %66 = vector.load %arg3[%c1_44, %c3_45, %c0_46, %c0_47] : memref<4x4x128x128xf32, #tpu.memory_space<vmem>>, vector<1x1x128x128xf32>
    %67 = vector.shape_cast %66 : vector<1x1x128x128xf32> to vector<128x128xf32>
    %cst_48 = arith.constant dense<0.000000e+00> : vector<64x128xf32>
    %68 = tpu.matmul %65, %67, %cst_48 {dimension_numbers = #tpu.dot_dimension_numbers<[1], [0], [0], [1], [0, 0, 1, 1], [], []>} : vector<64x128xf32>, vector<128x128xf32>, vector<64x128xf32> -> vector<64x128xf32>
    %69 = arith.addf %63, %68 : vector<64x128xf32>
    %70 = vector.shape_cast %69 : vector<64x128xf32> to vector<8x8x128xf32>
    %c0_49 = arith.constant 0 : index
    %c0_50 = arith.constant 0 : index
    %c0_51 = arith.constant 0 : index
    %c128 = arith.constant 128 : index
    %71 = vector.load %arg4[%c0_49, %c0_50, %c0_51, %c128] : memref<1x8x8x512xf32, #tpu.memory_space<vmem>>, vector<1x8x8x128xf32>
    %72 = vector.shape_cast %71 : vector<1x8x8x128xf32> to vector<8x8x128xf32>
    %73 = vector.shape_cast %70 : vector<8x8x128xf32> to vector<1x8x8x128xf32>
    tpu.vector_store %arg4[%c0_49, %c0_50, %c0_51, %c128], %73 {strides = array<i32>} : memref<1x8x8x512xf32, #tpu.memory_space<vmem>>, vector<1x8x8x128xf32>,
    %cst_52 = arith.constant dense<0.000000e+00> : vector<128xf32>
    %74 = vector.multi_reduction <add>, %69, %cst_52 [0] : vector<64x128xf32> to vector<128xf32>
    %75 = vector.shape_cast %74 : vector<128xf32> to vector<1x128xf32>
    %76 = arith.addf %40, %75 : vector<1x128xf32>
    %77 = arith.mulf %69, %69 : vector<64x128xf32>
    %cst_53 = arith.constant dense<0.000000e+00> : vector<128xf32>
    %78 = vector.multi_reduction <add>, %77, %cst_53 [0] : vector<64x128xf32> to vector<128xf32>
    %79 = vector.shape_cast %78 : vector<128xf32> to vector<1x128xf32>
    %80 = arith.addf %44, %79 : vector<1x128xf32>
    %cst_54 = arith.constant 0.000000e+00 : f32
    %81 = vector.broadcast %cst_54 : f32 to vector<64x128xf32>
    %82 = vector.extract_strided_slice %3 {offsets = [1, 1, 0], sizes = [8, 8, 128], strides = [1, 1, 1]} : vector<10x10x128xf32> to vector<8x8x128xf32>
    %83 = vector.shape_cast %82 : vector<8x8x128xf32> to vector<64x128xf32>
    %c2_55 = arith.constant 2 : index
    %c0_56 = arith.constant 0 : index
    %c0_57 = arith.constant 0 : index
    %c0_58 = arith.constant 0 : index
    %84 = vector.load %arg3[%c2_55, %c0_56, %c0_57, %c0_58] : memref<4x4x128x128xf32, #tpu.memory_space<vmem>>, vector<1x1x128x128xf32>
    %85 = vector.shape_cast %84 : vector<1x1x128x128xf32> to vector<128x128xf32>
    %cst_59 = arith.constant dense<0.000000e+00> : vector<64x128xf32>
    %86 = tpu.matmul %83, %85, %cst_59 {dimension_numbers = #tpu.dot_dimension_numbers<[1], [0], [0], [1], [0, 0, 1, 1], [], []>} : vector<64x128xf32>, vector<128x128xf32>, vector<64x128xf32> -> vector<64x128xf32>
    %87 = arith.addf %81, %86 : vector<64x128xf32>
    %88 = vector.extract_strided_slice %3 {offsets = [1, 0, 0], sizes = [8, 8, 128], strides = [1, 1, 1]} : vector<10x10x128xf32> to vector<8x8x128xf32>
    %89 = vector.shape_cast %88 : vector<8x8x128xf32> to vector<64x128xf32>
    %c2_60 = arith.constant 2 : index
    %c1_61 = arith.constant 1 : index
    %c0_62 = arith.constant 0 : index
    %c0_63 = arith.constant 0 : index
    %90 = vector.load %arg3[%c2_60, %c1_61, %c0_62, %c0_63] : memref<4x4x128x128xf32, #tpu.memory_space<vmem>>, vector<1x1x128x128xf32>
    %91 = vector.shape_cast %90 : vector<1x1x128x128xf32> to vector<128x128xf32>
    %cst_64 = arith.constant dense<0.000000e+00> : vector<64x128xf32>
    %92 = tpu.matmul %89, %91, %cst_64 {dimension_numbers = #tpu.dot_dimension_numbers<[1], [0], [0], [1], [0, 0, 1, 1], [], []>} : vector<64x128xf32>, vector<128x128xf32>, vector<64x128xf32> -> vector<64x128xf32>
    %93 = arith.addf %87, %92 : vector<64x128xf32>
    %94 = vector.extract_strided_slice %3 {offsets = [2, 1, 0], sizes = [8, 8, 128], strides = [1, 1, 1]} : vector<10x10x128xf32> to vector<8x8x128xf32>
    %95 = vector.shape_cast %94 : vector<8x8x128xf32> to vector<64x128xf32>
    %c2_65 = arith.constant 2 : index
    %c2_66 = arith.constant 2 : index
    %c0_67 = arith.constant 0 : index
    %c0_68 = arith.constant 0 : index
    %96 = vector.load %arg3[%c2_65, %c2_66, %c0_67, %c0_68] : memref<4x4x128x128xf32, #tpu.memory_space<vmem>>, vector<1x1x128x128xf32>
    %97 = vector.shape_cast %96 : vector<1x1x128x128xf32> to vector<128x128xf32>
    %cst_69 = arith.constant dense<0.000000e+00> : vector<64x128xf32>
    %98 = tpu.matmul %95, %97, %cst_69 {dimension_numbers = #tpu.dot_dimension_numbers<[1], [0], [0], [1], [0, 0, 1, 1], [], []>} : vector<64x128xf32>, vector<128x128xf32>, vector<64x128xf32> -> vector<64x128xf32>
    %99 = arith.addf %93, %98 : vector<64x128xf32>
    %100 = vector.extract_strided_slice %3 {offsets = [2, 0, 0], sizes = [8, 8, 128], strides = [1, 1, 1]} : vector<10x10x128xf32> to vector<8x8x128xf32>
    %101 = vector.shape_cast %100 : vector<8x8x128xf32> to vector<64x128xf32>
    %c2_70 = arith.constant 2 : index
    %c3_71 = arith.constant 3 : index
    %c0_72 = arith.constant 0 : index
    %c0_73 = arith.constant 0 : index
    %102 = vector.load %arg3[%c2_70, %c3_71, %c0_72, %c0_73] : memref<4x4x128x128xf32, #tpu.memory_space<vmem>>, vector<1x1x128x128xf32>
    %103 = vector.shape_cast %102 : vector<1x1x128x128xf32> to vector<128x128xf32>
    %cst_74 = arith.constant dense<0.000000e+00> : vector<64x128xf32>
    %104 = tpu.matmul %101, %103, %cst_74 {dimension_numbers = #tpu.dot_dimension_numbers<[1], [0], [0], [1], [0, 0, 1, 1], [], []>} : vector<64x128xf32>, vector<128x128xf32>, vector<64x128xf32> -> vector<64x128xf32>
    %105 = arith.addf %99, %104 : vector<64x128xf32>
    %106 = vector.shape_cast %105 : vector<64x128xf32> to vector<8x8x128xf32>
    %c0_75 = arith.constant 0 : index
    %c0_76 = arith.constant 0 : index
    %c0_77 = arith.constant 0 : index
    %c256 = arith.constant 256 : index
    %107 = vector.load %arg4[%c0_75, %c0_76, %c0_77, %c256] : memref<1x8x8x512xf32, #tpu.memory_space<vmem>>, vector<1x8x8x128xf32>
    %108 = vector.shape_cast %107 : vector<1x8x8x128xf32> to vector<8x8x128xf32>
    %109 = vector.shape_cast %106 : vector<8x8x128xf32> to vector<1x8x8x128xf32>
    tpu.vector_store %arg4[%c0_75, %c0_76, %c0_77, %c256], %109 {strides = array<i32>} : memref<1x8x8x512xf32, #tpu.memory_space<vmem>>, vector<1x8x8x128xf32>,
    %cst_78 = arith.constant dense<0.000000e+00> : vector<128xf32>
    %110 = vector.multi_reduction <add>, %105, %cst_78 [0] : vector<64x128xf32> to vector<128xf32>
    %111 = vector.shape_cast %110 : vector<128xf32> to vector<1x128xf32>
    %112 = arith.addf %76, %111 : vector<1x128xf32>
    %113 = arith.mulf %105, %105 : vector<64x128xf32>
    %cst_79 = arith.constant dense<0.000000e+00> : vector<128xf32>
    %114 = vector.multi_reduction <add>, %113, %cst_79 [0] : vector<64x128xf32> to vector<128xf32>
    %115 = vector.shape_cast %114 : vector<128xf32> to vector<1x128xf32>
    %116 = arith.addf %80, %115 : vector<1x128xf32>
    %cst_80 = arith.constant 0.000000e+00 : f32
    %117 = vector.broadcast %cst_80 : f32 to vector<64x128xf32>
    %118 = vector.extract_strided_slice %3 {offsets = [1, 1, 0], sizes = [8, 8, 128], strides = [1, 1, 1]} : vector<10x10x128xf32> to vector<8x8x128xf32>
    %119 = vector.shape_cast %118 : vector<8x8x128xf32> to vector<64x128xf32>
    %c3_81 = arith.constant 3 : index
    %c0_82 = arith.constant 0 : index
    %c0_83 = arith.constant 0 : index
    %c0_84 = arith.constant 0 : index
    %120 = vector.load %arg3[%c3_81, %c0_82, %c0_83, %c0_84] : memref<4x4x128x128xf32, #tpu.memory_space<vmem>>, vector<1x1x128x128xf32>
    %121 = vector.shape_cast %120 : vector<1x1x128x128xf32> to vector<128x128xf32>
    %cst_85 = arith.constant dense<0.000000e+00> : vector<64x128xf32>
    %122 = tpu.matmul %119, %121, %cst_85 {dimension_numbers = #tpu.dot_dimension_numbers<[1], [0], [0], [1], [0, 0, 1, 1], [], []>} : vector<64x128xf32>, vector<128x128xf32>, vector<64x128xf32> -> vector<64x128xf32>
    %123 = arith.addf %117, %122 : vector<64x128xf32>
    %124 = vector.extract_strided_slice %3 {offsets = [1, 2, 0], sizes = [8, 8, 128], strides = [1, 1, 1]} : vector<10x10x128xf32> to vector<8x8x128xf32>
    %125 = vector.shape_cast %124 : vector<8x8x128xf32> to vector<64x128xf32>
    %c3_86 = arith.constant 3 : index
    %c1_87 = arith.constant 1 : index
    %c0_88 = arith.constant 0 : index
    %c0_89 = arith.constant 0 : index
    %126 = vector.load %arg3[%c3_86, %c1_87, %c0_88, %c0_89] : memref<4x4x128x128xf32, #tpu.memory_space<vmem>>, vector<1x1x128x128xf32>
    %127 = vector.shape_cast %126 : vector<1x1x128x128xf32> to vector<128x128xf32>
    %cst_90 = arith.constant dense<0.000000e+00> : vector<64x128xf32>
    %128 = tpu.matmul %125, %127, %cst_90 {dimension_numbers = #tpu.dot_dimension_numbers<[1], [0], [0], [1], [0, 0, 1, 1], [], []>} : vector<64x128xf32>, vector<128x128xf32>, vector<64x128xf32> -> vector<64x128xf32>
    %129 = arith.addf %123, %128 : vector<64x128xf32>
    %130 = vector.extract_strided_slice %3 {offsets = [2, 1, 0], sizes = [8, 8, 128], strides = [1, 1, 1]} : vector<10x10x128xf32> to vector<8x8x128xf32>
    %131 = vector.shape_cast %130 : vector<8x8x128xf32> to vector<64x128xf32>
    %c3_91 = arith.constant 3 : index
    %c2_92 = arith.constant 2 : index
    %c0_93 = arith.constant 0 : index
    %c0_94 = arith.constant 0 : index
    %132 = vector.load %arg3[%c3_91, %c2_92, %c0_93, %c0_94] : memref<4x4x128x128xf32, #tpu.memory_space<vmem>>, vector<1x1x128x128xf32>
    %133 = vector.shape_cast %132 : vector<1x1x128x128xf32> to vector<128x128xf32>
    %cst_95 = arith.constant dense<0.000000e+00> : vector<64x128xf32>
    %134 = tpu.matmul %131, %133, %cst_95 {dimension_numbers = #tpu.dot_dimension_numbers<[1], [0], [0], [1], [0, 0, 1, 1], [], []>} : vector<64x128xf32>, vector<128x128xf32>, vector<64x128xf32> -> vector<64x128xf32>
    %135 = arith.addf %129, %134 : vector<64x128xf32>
    %136 = vector.extract_strided_slice %3 {offsets = [2, 2, 0], sizes = [8, 8, 128], strides = [1, 1, 1]} : vector<10x10x128xf32> to vector<8x8x128xf32>
    %137 = vector.shape_cast %136 : vector<8x8x128xf32> to vector<64x128xf32>
    %c3_96 = arith.constant 3 : index
    %c3_97 = arith.constant 3 : index
    %c0_98 = arith.constant 0 : index
    %c0_99 = arith.constant 0 : index
    %138 = vector.load %arg3[%c3_96, %c3_97, %c0_98, %c0_99] : memref<4x4x128x128xf32, #tpu.memory_space<vmem>>, vector<1x1x128x128xf32>
    %139 = vector.shape_cast %138 : vector<1x1x128x128xf32> to vector<128x128xf32>
    %cst_100 = arith.constant dense<0.000000e+00> : vector<64x128xf32>
    %140 = tpu.matmul %137, %139, %cst_100 {dimension_numbers = #tpu.dot_dimension_numbers<[1], [0], [0], [1], [0, 0, 1, 1], [], []>} : vector<64x128xf32>, vector<128x128xf32>, vector<64x128xf32> -> vector<64x128xf32>
    %141 = arith.addf %135, %140 : vector<64x128xf32>
    %142 = vector.shape_cast %141 : vector<64x128xf32> to vector<8x8x128xf32>
    %c0_101 = arith.constant 0 : index
    %c0_102 = arith.constant 0 : index
    %c0_103 = arith.constant 0 : index
    %c384 = arith.constant 384 : index
    %143 = vector.load %arg4[%c0_101, %c0_102, %c0_103, %c384] : memref<1x8x8x512xf32, #tpu.memory_space<vmem>>, vector<1x8x8x128xf32>
    %144 = vector.shape_cast %143 : vector<1x8x8x128xf32> to vector<8x8x128xf32>
    %145 = vector.shape_cast %142 : vector<8x8x128xf32> to vector<1x8x8x128xf32>
    tpu.vector_store %arg4[%c0_101, %c0_102, %c0_103, %c384], %145 {strides = array<i32>} : memref<1x8x8x512xf32, #tpu.memory_space<vmem>>, vector<1x8x8x128xf32>,
    %cst_104 = arith.constant dense<0.000000e+00> : vector<128xf32>
    %146 = vector.multi_reduction <add>, %141, %cst_104 [0] : vector<64x128xf32> to vector<128xf32>
    %147 = vector.shape_cast %146 : vector<128xf32> to vector<1x128xf32>
    %148 = arith.addf %112, %147 : vector<1x128xf32>
    %149 = arith.mulf %141, %141 : vector<64x128xf32>
    %cst_105 = arith.constant dense<0.000000e+00> : vector<128xf32>
    %150 = vector.multi_reduction <add>, %149, %cst_105 [0] : vector<64x128xf32> to vector<128xf32>
    %151 = vector.shape_cast %150 : vector<128xf32> to vector<1x128xf32>
    %152 = arith.addf %116, %151 : vector<1x128xf32>
    %c0_106 = arith.constant 0 : index
    %c0_107 = arith.constant 0 : index
    %c0_108 = arith.constant 0 : index
    %153 = vector.load %arg5[%c0_106, %c0_107, %c0_108] : memref<1x1x128xf32, #tpu.memory_space<vmem>>, vector<1x1x128xf32>
    %154 = vector.shape_cast %148 : vector<1x128xf32> to vector<1x1x128xf32>
    %155 = arith.addf %153, %154 : vector<1x1x128xf32>
    %c0_109 = arith.constant 0 : index
    %c0_110 = arith.constant 0 : index
    %c0_111 = arith.constant 0 : index
    %156 = vector.load %arg5[%c0_109, %c0_110, %c0_111] : memref<1x1x128xf32, #tpu.memory_space<vmem>>, vector<1x1x128xf32>
    tpu.vector_store %arg5[%c0_109, %c0_110, %c0_111], %155 {strides = array<i32>} : memref<1x1x128xf32, #tpu.memory_space<vmem>>, vector<1x1x128xf32>,
    %c0_112 = arith.constant 0 : index
    %c0_113 = arith.constant 0 : index
    %c0_114 = arith.constant 0 : index
    %157 = vector.load %arg6[%c0_112, %c0_113, %c0_114] : memref<1x1x128xf32, #tpu.memory_space<vmem>>, vector<1x1x128xf32>
    %158 = vector.shape_cast %152 : vector<1x128xf32> to vector<1x1x128xf32>
    %159 = arith.addf %157, %158 : vector<1x1x128xf32>
    %c0_115 = arith.constant 0 : index
    %c0_116 = arith.constant 0 : index
    %c0_117 = arith.constant 0 : index
    %160 = vector.load %arg6[%c0_115, %c0_116, %c0_117] : memref<1x1x128xf32, #tpu.memory_space<vmem>>, vector<1x1x128xf32>
    tpu.vector_store %arg6[%c0_115, %c0_116, %c0_117], %159 {strides = array<i32>} : memref<1x1x128xf32, #tpu.memory_space<vmem>>, vector<1x1x128xf32>,
    return
  }
  func.func @transform_0(%arg0: i32, %arg1: i32) -> (i32, i32, i32, i32) {
    %c0_i32 = arith.constant 0 : i32
    %c0_i32_0 = arith.constant 0 : i32
    %c0_i32_1 = arith.constant 0 : i32
    %c0_i32_2 = arith.constant 0 : i32
    return %arg0, %c0_i32, %c0_i32_0, %c0_i32_1 : i32, i32, i32, i32
  }
  func.func @transform_1(%arg0: i32, %arg1: i32) -> (i32, i32, i32, i32) {
    %c0_i32 = arith.constant 0 : i32
    %c0_i32_0 = arith.constant 0 : i32
    %c0_i32_1 = arith.constant 0 : i32
    %c0_i32_2 = arith.constant 0 : i32
    %c0_i32_3 = arith.constant 0 : i32
    return %c0_i32, %c0_i32_0, %c0_i32_1, %c0_i32_2 : i32, i32, i32, i32
  }
  func.func @transform_2(%arg0: i32, %arg1: i32) -> (i32, i32, i32, i32) {
    %c0_i32 = arith.constant 0 : i32
    %c0_i32_0 = arith.constant 0 : i32
    %c0_i32_1 = arith.constant 0 : i32
    return %arg0, %arg1, %c0_i32, %c0_i32_0 : i32, i32, i32, i32
  }
  func.func @transform_3(%arg0: i32, %arg1: i32) -> (i32, i32, i32) {
    %c0_i32 = arith.constant 0 : i32
    %c0_i32_0 = arith.constant 0 : i32
    %c0_i32_1 = arith.constant 0 : i32
    return %arg0, %c0_i32, %c0_i32_0 : i32, i32, i32
  }
  func.func @transform_4(%arg0: i32, %arg1: i32) -> (i32, i32, i32) {
    %c0_i32 = arith.constant 0 : i32
    %c0_i32_0 = arith.constant 0 : i32
    %c0_i32_1 = arith.constant 0 : i32
    return %arg0, %c0_i32, %c0_i32_0 : i32, i32, i32
  }
}

module attributes {stable_mosaic.version = 11 : i64} {
  func.func @_bn_affine_kernel(%arg0: i32, %arg1: i32, %arg2: memref<1x8x8x512xf32, #tpu.memory_space<vmem>>, %arg3: memref<1x512xf32, #tpu.memory_space<vmem>>, %arg4: memref<1x512xf32, #tpu.memory_space<vmem>>, %arg5: memref<1x8x8x512xf32, #tpu.memory_space<vmem>>) attributes {dimension_semantics = [#tpu.dimension_semantics<parallel>, #tpu.dimension_semantics<parallel>], iteration_bounds = array<i64: 2, 1>, scalar_prefetch = 0 : i64, scratch_operands = 0 : i64, tpu.core_type = #tpu.core_type<tc>, window_params = [{transform_indices = @transform_0, window_bounds = array<i64: 1, 8, 8, 512>}, {pipeline_mode = #tpu.pipeline_mode<synchronous>, transform_indices = @transform_1, window_bounds = array<i64: 1, 512>}, {pipeline_mode = #tpu.pipeline_mode<synchronous>, transform_indices = @transform_2, window_bounds = array<i64: 1, 512>}, {transform_indices = @transform_3, window_bounds = array<i64: 1, 8, 8, 512>}]} {
    %c0 = arith.constant 0 : index
    %c0_0 = arith.constant 0 : index
    %c0_1 = arith.constant 0 : index
    %c0_2 = arith.constant 0 : index
    %0 = vector.load %arg2[%c0, %c0_0, %c0_1, %c0_2] : memref<1x8x8x512xf32, #tpu.memory_space<vmem>>, vector<1x8x8x512xf32>
    %c0_3 = arith.constant 0 : index
    %c0_4 = arith.constant 0 : index
    %1 = vector.load %arg3[%c0_3, %c0_4] : memref<1x512xf32, #tpu.memory_space<vmem>>, vector<1x512xf32>
    %2 = vector.shape_cast %1 : vector<1x512xf32> to vector<512xf32>
    %3 = vector.shape_cast %2 : vector<512xf32> to vector<1x1x1x512xf32>
    %4 = vector.broadcast %3 : vector<1x1x1x512xf32> to vector<1x8x8x512xf32>
    %5 = arith.mulf %0, %4 : vector<1x8x8x512xf32>
    %c0_5 = arith.constant 0 : index
    %c0_6 = arith.constant 0 : index
    %6 = vector.load %arg4[%c0_5, %c0_6] : memref<1x512xf32, #tpu.memory_space<vmem>>, vector<1x512xf32>
    %7 = vector.shape_cast %6 : vector<1x512xf32> to vector<512xf32>
    %8 = vector.shape_cast %7 : vector<512xf32> to vector<1x1x1x512xf32>
    %9 = vector.broadcast %8 : vector<1x1x1x512xf32> to vector<1x8x8x512xf32>
    %10 = arith.addf %5, %9 : vector<1x8x8x512xf32>
    %c0_7 = arith.constant 0 : index
    %c0_8 = arith.constant 0 : index
    %c0_9 = arith.constant 0 : index
    %c0_10 = arith.constant 0 : index
    %11 = vector.load %arg5[%c0_7, %c0_8, %c0_9, %c0_10] : memref<1x8x8x512xf32, #tpu.memory_space<vmem>>, vector<1x8x8x512xf32>
    tpu.vector_store %arg5[%c0_7, %c0_8, %c0_9, %c0_10], %10 {strides = array<i32>} : memref<1x8x8x512xf32, #tpu.memory_space<vmem>>, vector<1x8x8x512xf32>,
    return
  }
  func.func @transform_0(%arg0: i32, %arg1: i32) -> (i32, i32, i32, i32) {
    %c0_i32 = arith.constant 0 : i32
    %c0_i32_0 = arith.constant 0 : i32
    %c0_i32_1 = arith.constant 0 : i32
    return %arg0, %arg1, %c0_i32, %c0_i32_0 : i32, i32, i32, i32
  }
  func.func @transform_1(%arg0: i32, %arg1: i32) -> (i32, i32) {
    %c0_i32 = arith.constant 0 : i32
    %c0_i32_0 = arith.constant 0 : i32
    %c0_i32_1 = arith.constant 0 : i32
    return %c0_i32, %c0_i32_0 : i32, i32
  }
  func.func @transform_2(%arg0: i32, %arg1: i32) -> (i32, i32) {
    %c0_i32 = arith.constant 0 : i32
    %c0_i32_0 = arith.constant 0 : i32
    %c0_i32_1 = arith.constant 0 : i32
    return %c0_i32, %c0_i32_0 : i32, i32
  }
  func.func @transform_3(%arg0: i32, %arg1: i32) -> (i32, i32, i32, i32) {
    %c0_i32 = arith.constant 0 : i32
    %c0_i32_0 = arith.constant 0 : i32
    %c0_i32_1 = arith.constant 0 : i32
    return %arg0, %arg1, %c0_i32, %c0_i32_0 : i32, i32, i32, i32
  }
}

</mosaic_0001>

<bundles_post_ra>
// kernel: tile.13
= control target key start
LH: loop header
LB: loop body
LE: loop exit
PB: predicated region body
PF: predicated region fallthrough
CT: control target
= control target key end

     0   :  { %s22_s0 = inlined_call_operand.vmem [shape: f32[128], index: 0, kind: input, shape index: {}]   ;;  %s23_s1 = inlined_call_operand.vmem [shape: f32[4,128], index: 1, kind: output, shape index: {}]  }
   0x1   :  { %v4_v0 = vld [vmem:[%s22_s0] ss:$0 sm:$0xff] }
   0x2   :  { %5 = vst [vmem:[%s23_s1] sm:$0xf] %v4_v0 }

// kernel: unet_unit_inner_forward.3
= control target key start
LH: loop header
LB: loop body
LE: loop exit
PB: predicated region body
PF: predicated region fallthrough
CT: control target
= control target key end

     0   :  { %s1128_s9 = smov 0   ;;  %s1130_s10 = smov 0   ;;  %s1295_s0 = inlined_call_operand.vmem [shape: f32[2,9,9,16], index: 0, kind: input, shape index: {}]   ;;  %s1296_s1 = inlined_call_operand.vmem [shape: f32[4,16,128], index: 1, kind: input, shape index: {}]   ;;  %s1297_s2 = inlined_call_operand.vmem [shape: f32[2,8,8,128], index: 2, kind: output, shape index: {}]  }
   0x1   :  { %s1132_s11 = smov 0  }
   0x2 LB: > { %s24_s12 = sadd.s32 1, %s1107_s10  ;;  %p875_p0 = scmp.ge.s32.totalorder %s1111_s11, 1  ;;  %s1111_s11 = sphi %s1132_s11, %s12_s11   ;;  %s1107_s10 = sphi %s1130_s10, %s1299_s10   ;;  %s1103_s9 = sphi %s1128_s9, %s1298_s9  }
   0x3   : > { %p26_p1 = scmp.ge.s32.totalorder %s24_s12, 2  ;;  %p126_p2 = scmp.lt.s32.totalorder %s1111_s11, 3 }
   0x5   : > { %s1301_s12 = smov (%p26_p1, %s24_s12), 0  ;;  %p127_p3 = pnand %p875_p0, %p126_p2 }
   0x6   : > { %v897_v0 = vld [vmem:[%s1296_s1 + $0x20] sm:$0xff] (!%p127_p3)  ;;  %v898_v1 = vld [vmem:[%s1296_s1 + $0x28] sm:$0xff] (!%p127_p3)  ;;  %v879_v2 = vld [vmem:[%s1296_s1 + $0x10] sm:$0xff] (!%p127_p3)  ;;  %p152_p4 = scmp.lt.s32.totalorder (!%p127_p3), %s1103_s9, 1  ;;  %vm288_vm0 = vcmask (!%p127_p3), 130048   ;;  %vm260_vm1 = vcmask (!%p127_p3), 1046528  }
   0x7   : > { %130 = sbr.rel (%p127_p3) target bundleno = 275 (0x113), region = 28  ;;  %v1032_v3 = vpack.c.bf16 (!%p127_p3), %v898_v1, %v897_v0  ;;  %v880_v4 = vld [vmem:[%s1296_s1 + $0x18] sm:$0xff] (!%p127_p3)  ;;  %v242_v5 = vld [vmem:[%s1296_s1] sm:$0xff] (!%p127_p3)  ;;  %v243_v6 = vld [vmem:[%s1296_s1 + $0x8] sm:$0xff] (!%p127_p3) }
   0x8   : > { %v1024_v7 = vpack.c.bf16 (!%p127_p3), %v880_v4, %v879_v2  ;;  %v1166_v8 = vpack.c.bf16 (!%p127_p3), %v243_v6, %v242_v5  ;;  %v907_v9 = vld [vmem:[%s1296_s1 + $0x30] sm:$0xff] (!%p127_p3)  ;;  %v908_v10 = vld [vmem:[%s1296_s1 + $0x38] sm:$0xff] (!%p127_p3) }
   0x9   : > { %1033 = vmatprep.subr.bf16.mxu0 (!%p127_p3), %v1032_v3  ;;  %v1036_v11 = vpack.c.bf16 (!%p127_p3), %v908_v10, %v907_v9 }
   0xa   : > { %1035 = vmatpush3.bf16.msra.mxu0 (!%p127_p3), %v1032_v3  ;;  %1025 = vmatprep.subr.bf16.mxu1 (!%p127_p3), %v1024_v7 }
   0xb   : > { %1027 = vmatpush3.bf16.msra.mxu1 (!%p127_p3), %v1024_v7  ;;  %1037 = vmatprep.subr.bf16.mxu0 (!%p127_p3), %v1036_v11 }
   0xc   : > { %1029 = vmatprep.subr.bf16.mxu1 (!%p127_p3), %v1166_v8 }
   0xe   : > { %s1303_s9 = smov (!%p152_p4, %s1103_s9), 1 }
   0xf   : > { %s1064_s29 = smul.u32 144, %s1303_s9  ;;  %s919_s5 = sshll.u32 %s1303_s9, 6 }
  0x10   : > { %s1276_s8 = scalar_lea.vmem %s1297_s2, %s919_s5 }
  0x11   : > { %s1178_s4 = scalar_lea.vmem %s1295_s0, %s1064_s29 }
  0x12   : > { %v172_v12 = vld [vmem:[%s1178_s4 + $0x10] sm:$0xff]  ;;  %v174_v13 = vld [vmem:[%s1178_s4 + $0x20] sm:$0xff]  ;;  %v171_v17 = vld [vmem:[%s1178_s4 + $0x8] sm:$0x1] }
  0x13   : > { %v170_v14 = vld [vmem:[%s1178_s4] sm:$0xff]  ;;  %vm190_vm2 = vcmp.gt.f32.partialorder %v172_v12, 0.0  ;;  %v208_v15 = vmul.f32 0.2, %v172_v12  ;;  %vm192_vm3 = vcmp.gt.f32.partialorder %v174_v13, 0.0  ;;  %v176_v19 = vld [vmem:[%s1178_s4 + $0x30] sm:$0xff] }
  0x14   : > { %v210_v16 = vmul.f32 0.2, %v174_v13  ;;  %vm188_vm4 = vcmp.gt.f32.partialorder %v170_v14, 0.0  ;;  %v206_v18 = vmul.f32 0.2, %v170_v14  ;;  %vm189_vm5 = vcmp.gt.f32.partialorder %v171_v17, 0.0 }
  0x15   : > { %v1186_v20 = vsel %vm190_vm2, %v172_v12, %v208_v15  ;;  %v207_v22 = vmul.f32 0.2, %v171_v17  ;;  %v173_v23 = vld [vmem:[%s1178_s4 + $0x18] sm:$0x1]  ;;  %v178_v24 = vld [vmem:[%s1178_s4 + $0x40] sm:$0xff]  ;;  %vm194_vm7 = vcmp.gt.f32.partialorder %v176_v19, 0.0 }
  0x16   : > { %v1188_v21 = vsel %vm192_vm3, %v174_v13, %v210_v16  ;;  %v264_v25 = vrot.slane %v1186_v20, 1  ;;  %996 = vmatprep.mubr.msk.f32.mxu0 %vm288_vm0, %v1186_v20  ;;  %v1196_v27 = vsel %vm188_vm4, %v170_v14, %v206_v18  ;;  %vm191_vm6 = vcmp.gt.f32.partialorder %v173_v23, 0.0  ;;  %v175_v28 = vld [vmem:[%s1178_s4 + $0x28] sm:$0x1]  ;;  %v177_v32 = vld [vmem:[%s1178_s4 + $0x38] sm:$0x1] }
  0x17   : > { %v267_v26 = vrot.slane %v1188_v21, 1  ;;  %997 = vmatmul.mubr.msk.f32.vlgmr.msra.gmra.mrb[0].mxu0 %vm288_vm0, %v1188_v21  ;;  %v225_v29 = vsel %vm189_vm5, %v171_v17, %v207_v22  ;;  %v261_v30 = vrot.slane %v1196_v27, 1  ;;  %v209_v31 = vmul.f32 0.2, %v173_v23  ;;  %v180_v38 = vld [vmem:[%s1178_s4 + $0x50] sm:$0xff]  ;;  %v182_v43 = vld [vmem:[%s1178_s4 + $0x60] sm:$0xff] }
  0x18   : > { %v262_v33 = vrot.slane %v225_v29, 1  ;;  %v212_v34 = vmul.f32 0.2, %v176_v19  ;;  %1039 = vmatpush3.bf16.msra.mxu0 %v1036_v11  ;;  %vm196_vm8 = vcmp.gt.f32.partialorder %v178_v24, 0.0  ;;  %v214_v35 = vmul.f32 0.2, %v178_v24 }
  0x19   : > { %v227_v36 = vsel %vm191_vm6, %v173_v23, %v209_v31  ;;  %vm193_vm9 = vcmp.gt.f32.partialorder %v175_v28, 0.0  ;;  %v211_v37 = vmul.f32 0.2, %v175_v28  ;;  %vm195_vm10 = vcmp.gt.f32.partialorder %v177_v32, 0.0  ;;  %v179_v44 = vld [vmem:[%s1178_s4 + $0x48] sm:$0x1] }
  0x1a   : > { %v263_v39 = vsel %vm260_vm1, %v261_v30, %v262_v33  ;;  %v265_v40 = vrot.slane %v227_v36, 1  ;;  %v1205_v41 = vsel %vm194_vm7, %v176_v19, %v212_v34  ;;  %v1207_v42 = vsel %vm196_vm8, %v178_v24, %v214_v35  ;;  %v181_v52 = vld [vmem:[%s1178_s4 + $0x58] sm:$0x1]  ;;  %v184_v55 = vld [vmem:[%s1178_s4 + $0x70] sm:$0xff]  ;;  %v186_v60 = vld [vmem:[%s1178_s4 + $0x80] sm:$0xff] }
  0x1b   : > { %964 = vmatprep.mubr.msk.f32.mxu1 %vm288_vm0, %v263_v39  ;;  %v270_v45 = vrot.slane %v1205_v41, 1  ;;  %999 = vmatprep.mubr.msk.f32.mxu0 %vm288_vm0, %v1205_v41  ;;  %v273_v46 = vrot.slane %v1207_v42, 1  ;;  %v229_v47 = vsel %vm193_vm9, %v175_v28, %v211_v37  ;;  %v213_v48 = vmul.f32 0.2, %v177_v32  ;;  %v183_v0 = vld [vmem:[%s1178_s4 + $0x68] sm:$0x1] }
  0x1c   : > { %v266_v49 = vsel %vm260_vm1, %v264_v25, %v265_v40  ;;  %1000 = vmatmul.mubr.msk.f32.gmra.mrb[2].mxu0 %vm288_vm0, %v1207_v42  ;;  %v268_v50 = vrot.slane %v229_v47, 1  ;;  %vm198_vm11 = vcmp.gt.f32.partialorder %v180_v38, 0.0  ;;  %v216_v51 = vmul.f32 0.2, %v180_v38  ;;  %v185_v4 = vld [vmem:[%s1178_s4 + $0x78] sm:$0x1] }
  0x1d   : > { %965 = vmatmul.mubr.msk.f32.vlgmr.msra.gmra.mrb[0].mxu1 %vm288_vm0, %v266_v49  ;;  %v231_v53 = vsel %vm195_vm10, %v177_v32, %v213_v48  ;;  %vm200_vm12 = vcmp.gt.f32.partialorder %v182_v43, 0.0  ;;  %v218_v54 = vmul.f32 0.2, %v182_v43  ;;  %vm197_vm13 = vcmp.gt.f32.partialorder %v179_v44, 0.0  ;;  %v187_v18 = vld [vmem:[%s1178_s4 + $0x88] sm:$0x1] }
  0x1e   : > { %1031 = vmatpush3.bf16.msra.mxu1 %v1166_v8  ;;  %v269_v56 = vsel %vm260_vm1, %v267_v26, %v268_v50  ;;  %v271_v57 = vrot.slane %v231_v53, 1  ;;  %v1225_v58 = vsel %vm198_vm11, %v180_v38, %v216_v51  ;;  %v215_v59 = vmul.f32 0.2, %v179_v44 }
  0x1f   : > { %967 = vmatprep.mubr.msk.f32.mxu1 %vm288_vm0, %v269_v56  ;;  %v276_v61 = vrot.slane %v1225_v58, 1  ;;  %1002 = vmatprep.mubr.msk.f32.mxu0 %vm288_vm0, %v1225_v58  ;;  %v236_v62 = vsel %vm200_vm12, %v182_v43, %v218_v54  ;;  %vm199_vm14 = vcmp.gt.f32.partialorder %v181_v52, 0.0  ;;  %v217_v63 = vmul.f32 0.2, %v181_v52 }
  0x20   : > { %v272_v1 = vsel %vm260_vm1, %v270_v45, %v271_v57  ;;  %v279_v2 = vrot.slane %v236_v62, 1  ;;  %1003 = vmatmul.mubr.msk.f32.gmra.mrb[4].mxu0 %vm288_vm0, %v236_v62  ;;  %v233_v3 = vsel %vm197_vm13, %v179_v44, %v215_v59  ;;  %vm202_vm15 = vcmp.gt.f32.partialorder %v184_v55, 0.0 }
  0x21   : > { %968 = vmatmul.mubr.msk.f32.gmra.mrb[2].mxu1 %vm288_vm0, %v272_v1  ;;  %v274_v5 = vrot.slane %v233_v3, 1  ;;  %v235_v6 = vsel %vm199_vm14, %v181_v52, %v217_v63  ;;  %v220_v7 = vmul.f32 0.2, %v184_v55  ;;  %vm204_vm2 = vcmp.gt.f32.partialorder %v186_v60, 0.0 }
  0x22   : > { %v277_v8 = vrot.slane %v235_v6, 1  ;;  %v222_v9 = vmul.f32 0.2, %v186_v60  ;;  %vm201_vm3 = vcmp.gt.f32.partialorder %v183_v0, 0.0  ;;  %v219_v10 = vmul.f32 0.2, %v183_v0 }
  0x23   : > { %v275_v11 = vsel %vm260_vm1, %v273_v46, %v274_v5  ;;  %v238_v12 = vsel %vm202_vm15, %v184_v55, %v220_v7  ;;  %vm203_vm4 = vcmp.gt.f32.partialorder %v185_v4, 0.0  ;;  %v221_v13 = vmul.f32 0.2, %v185_v4 }
  0x24   : > { %970 = vmatprep.mubr.msk.f32.mxu1 %vm288_vm0, %v275_v11  ;;  %v278_v14 = vsel %vm260_vm1, %v276_v61, %v277_v8  ;;  %v282_v15 = vrot.slane %v238_v12, 1  ;;  %1005 = vmatprep.mubr.msk.f32.mxu0 %vm288_vm0, %v238_v12  ;;  %v240_v16 = vsel %vm204_vm2, %v186_v60, %v222_v9  ;;  %v237_v17 = vsel %vm201_vm3, %v183_v0, %v219_v10 }
  0x25   : > { %971 = vmatmul.mubr.msk.f32.gmra.mrb[4].mxu1 %vm288_vm0, %v278_v14  ;;  %1006 = vmatmul.mubr.msk.f32.gmra.mrb[6].mxu0 %vm288_vm0, %v240_v16  ;;  %v280_v19 = vrot.slane %v237_v17, 1  ;;  %v239_v22 = vsel %vm203_vm4, %v185_v4, %v221_v13  ;;  %v223_v25 = vmul.f32 0.2, %v187_v18  ;;  %vm205_vm5 = vcmp.gt.f32.partialorder %v187_v18, 0.0 }
  0x26   : > { %v283_v23 = vrot.slane %v239_v22, 1  ;;  %1012 = vmatprep.mubr.msk.f32.mxu0 %vm288_vm0, %v266_v49  ;;  %v651_v29 = vrot.slane %v240_v16, 1 }
  0x27   : > { %v281_v24 = vsel %vm260_vm1, %v279_v2, %v280_v19  ;;  %v241_v28 = vsel %vm205_vm5, %v187_v18, %v223_v25 }
  0x28   : > { %973 = vmatprep.mubr.msk.f32.mxu1 %vm288_vm0, %v281_v24  ;;  %v284_v26 = vsel %vm260_vm1, %v282_v15, %v283_v23  ;;  %v652_v30 = vrot.slane %v241_v28, 1 }
  0x29   : > { %974 = vmatmul.mubr.msk.f32.gmra.mrb[6].mxu1 %vm288_vm0, %v284_v26  ;;  %1013 = vmatmul.mubr.msk.f32.vlgmr.msra.gmra.mrb[0].mxu0 %vm288_vm0, %v269_v56 }
  0x2a   : > { %980 = vmatprep.mubr.msk.f32.mxu1 %vm288_vm0, %v1196_v27  ;;  %1015 = vmatprep.mubr.msk.f32.mxu0 %vm288_vm0, %v272_v1 }
  0x2d   : > { %981 = vmatmul.mubr.msk.f32.vlgmr.msra.gmra.mrb[0].mxu1 %vm288_vm0, %v1186_v20  ;;  %1016 = vmatmul.mubr.msk.f32.gmra.mrb[2].mxu0 %vm288_vm0, %v275_v11  ;;  %v653_v20 = vsel %vm260_vm1, %v651_v29, %v652_v30 }
  0x2e   : > { %983 = vmatprep.mubr.msk.f32.mxu1 %vm288_vm0, %v1188_v21  ;;  %1018 = vmatprep.mubr.msk.f32.mxu0 %vm288_vm0, %v278_v14 }
  0x31   : > { %984 = vmatmul.mubr.msk.f32.gmra.mrb[2].mxu1 %vm288_vm0, %v1205_v41  ;;  %1019 = vmatmul.mubr.msk.f32.gmra.mrb[4].mxu0 %vm288_vm0, %v281_v24 }
  0x32   : > { %986 = vmatprep.mubr.msk.f32.mxu1 %vm288_vm0, %v1207_v42  ;;  %1021 = vmatprep.mubr.msk.f32.mxu0 %vm288_vm0, %v284_v26 }
  0x35   : > { %987 = vmatmul.mubr.msk.f32.gmra.mrb[4].mxu1 %vm288_vm0, %v1225_v58  ;;  %1022 = vmatmul.mubr.msk.f32.gmra.mrb[6].mxu0 %vm288_vm0, %v653_v20 }
  0x36   : > { %989 = vmatprep.mubr.msk.f32.mxu1 %vm288_vm0, %v236_v62 }
  0x39   : > { %990 = vmatmul.mubr.msk.f32.gmra.mrb[6].mxu1 %vm288_vm0, %v238_v12 }
  0xfc   : > { %v1014_v21 = vpop.f32.mrb[0].mxu0 }
  0xfd   : > { %v725_v27 = vpop.f32.mrb[1].mxu0 }
 0x100   : > { %v982_v31 = vpop.f32.mrb[0].mxu1  ;;  %v1017_v32 = vpop.f32.mrb[2].mxu0 }
 0x101   : > { %v1040_v33 = vadd.f32 %v1014_v21, %v982_v31  ;;  %v492_v34 = vpop.f32.mrb[1].mxu1  ;;  %v735_v35 = vpop.f32.mrb[3].mxu0 }
 0x102   : > { %v1041_v36 = vadd.f32 %v725_v27, %v492_v34 }
 0x103   : > { %v773_v37 = vmax.f32 %v1040_v33, 0.0 }
 0x104   : > { %v772_v38 = vmax.f32 %v1041_v36, 0.0  ;;  %v985_v39 = vpop.f32.mrb[2].mxu1  ;;  %v1020_v40 = vpop.f32.mrb[4].mxu0 }
 0x105   : > { %781 = vst [vmem:[%s1276_s8 + $0x8] sm:$0xff] %v773_v37  ;;  %v1042_v41 = vadd.f32 %v1017_v32, %v985_v39  ;;  %v502_v42 = vpop.f32.mrb[3].mxu1  ;;  %v745_v43 = vpop.f32.mrb[5].mxu0 }
 0x106   : > { %780 = vst [vmem:[%s1276_s8] sm:$0xff] %v772_v38  ;;  %v1043_v44 = vadd.f32 %v735_v35, %v502_v42 }
 0x107   : > { %v775_v45 = vmax.f32 %v1042_v41, 0.0 }
 0x108   : > { %v774_v46 = vmax.f32 %v1043_v44, 0.0  ;;  %v988_v47 = vpop.f32.mrb[4].mxu1  ;;  %v1023_v48 = vpop.f32.mrb[6].mxu0 }
 0x109   : > { %783 = vst [vmem:[%s1276_s8 + $0x18] sm:$0xff] %v775_v45  ;;  %v1044_v49 = vadd.f32 %v1020_v40, %v988_v47  ;;  %v512_v50 = vpop.f32.mrb[5].mxu1  ;;  %v755_v51 = vpop.f32.mrb[7].mxu0 }
 0x10a   : > { %782 = vst [vmem:[%s1276_s8 + $0x10] sm:$0xff] %v774_v46  ;;  %v1045_v52 = vadd.f32 %v745_v43, %v512_v50 }
 0x10b   : > { %v777_v53 = vmax.f32 %v1044_v49, 0.0 }
 0x10c   : > { %v776_v54 = vmax.f32 %v1045_v52, 0.0  ;;  %v991_v55 = vpop.f32.mrb[6].mxu1 }
 0x10d   : > { %785 = vst [vmem:[%s1276_s8 + $0x28] sm:$0xff] %v777_v53  ;;  %v1046_v56 = vadd.f32 %v1023_v48, %v991_v55  ;;  %v522_v57 = vpop.f32.mrb[7].mxu1 }
 0x10e   : > { %784 = vst [vmem:[%s1276_s8 + $0x20] sm:$0xff] %v776_v54  ;;  %v1047_v58 = vadd.f32 %v755_v51, %v522_v57 }
 0x10f   : > { %v779_v59 = vmax.f32 %v1046_v56, 0.0 }
 0x110   : > { %v778_v60 = vmax.f32 %v1047_v58, 0.0 }
 0x111   : > { %787 = vst [vmem:[%s1276_s8 + $0x38] sm:$0xff] %v779_v59 }
 0x112   : > { %786 = vst [vmem:[%s1276_s8 + $0x30] sm:$0xff] %v778_v60 }
 0x113 PF: > { %s12_s11 = sadd.s32 1, %s1111_s11   ;;  %s1298_s9 = smov %s1107_s10 }
 0x114   : > { %p9_p5 = scmp.ge.s32.totalorder %s12_s11, 4   ;;  %s1299_s10 = smov %s1301_s12 }
 0x116   :  { %11 = sbr.rel (!%p9_p5) target bundleno = 2 (0x2), region = 62 }

// kernel: unet_unit_inner_forward.5
= control target key start
LH: loop header
LB: loop body
LE: loop exit
PB: predicated region body
PF: predicated region fallthrough
CT: control target
= control target key end

     0   :  { %s564_s12 = smov 0   ;;  %s566_s13 = smov 0   ;;  %s754_s0 = inlined_call_operand.vmem [shape: f32[2,8,8,512], index: 0, kind: input, shape index: {}]   ;;  %s755_s1 = inlined_call_operand.vmem [shape: f32[1,512], index: 1, kind: input, shape index: {}]   ;;  %s756_s2 = inlined_call_operand.vmem [shape: f32[1,512], index: 2, kind: input, shape index: {}]   ;;  %s757_s3 = inlined_call_operand.vmem [shape: f32[2,8,8,512], index: 3, kind: output, shape index: {}]  }
   0x1   :  { %s568_s14 = smov 0  }
   0x2 LB: > { %s25_s15 = sadd.s32 1, %s538_s13  ;;  %p487_p0 = scmp.ge.s32.totalorder %s542_s14, 1  ;;  %s542_s14 = sphi %s568_s14, %s13_s14   ;;  %s538_s13 = sphi %s566_s13, %s759_s13   ;;  %s534_s12 = sphi %s564_s12, %s758_s12  }
   0x3   : > { %p27_p1 = scmp.ge.s32.totalorder %s25_s15, 2  ;;  %p159_p2 = scmp.lt.s32.totalorder %s542_s14, 3 }
   0x5   : > { %s761_s15 = smov (%p27_p1, %s25_s15), 0  ;;  %p160_p3 = pnand %p487_p0, %p159_p2 }
   0x6   : > { %p194_p4 = scmp.lt.s32.totalorder (!%p160_p3), %s534_s12, 1  ;;  %v249_v0 = vlaneseq (!%p160_p3)  ;;  %v247_v2 = vld [vmem:[%s755_s1] sm:$0xf] (!%p160_p3) }
   0x7   : > { %163 = sbr.rel (%p160_p3) target bundleno = 41 (0x29), region = 32  ;;  %v301_v3 = vld [vmem:[%s756_s2] sm:$0xf] (!%p160_p3) }
   0x8   : > { %v250_v1 = vshrl.u32 (!%p160_p3), %v249_v0, 7 }
   0xa   : > { %v251_v4 = vsub.s32 (!%p160_p3), 0, %v250_v1  ;;  %v255_v5 = vsub.s32 (!%p160_p3), 1, %v250_v1  ;;  %v259_v6 = vsub.s32 (!%p160_p3), 2, %v250_v1  ;;  %v263_v7 = vsub.s32 (!%p160_p3), 3, %v250_v1 }
   0xc   : > { %v597_v9 = vrot.slane (!%p160_p3), %v247_v2, %v251_v4  ;;  %v599_v10 = vrot.slane (!%p160_p3), %v301_v3, %v251_v4  ;;  %v602_v12 = vrot.slane (!%p160_p3), %v247_v2, %v255_v5  ;;  %v604_v13 = vrot.slane (!%p160_p3), %v301_v3, %v255_v5 }
   0xd   : > { %v607_v15 = vrot.slane (!%p160_p3), %v247_v2, %v259_v6  ;;  %v609_v16 = vrot.slane (!%p160_p3), %v301_v3, %v259_v6  ;;  %v612_v18 = vrot.slane (!%p160_p3), %v247_v2, %v263_v7  ;;  %v614_v19 = vrot.slane (!%p160_p3), %v301_v3, %v263_v7 }
   0xe   : > { %s763_s12 = smov (!%p194_p4, %s534_s12), 1 }
   0xf   : > { %s494_s20 = sshll.u32 %s763_s12, 8 }
  0x10   : > { %s594_s23 = scalar_lea.vmem %s754_s0, %s494_s20  ;;  %s628_s26 = scalar_lea.vmem %s757_s3, %s494_s20 }
  0x11   : > { %v215_v8 = vld [vmem:[%s594_s23] sm:$0xff]  ;;  %v216_v11 = vld [vmem:[%s594_s23 + $0x8] sm:$0xff]  ;;  %v217_v14 = vld [vmem:[%s594_s23 + $0x10] sm:$0xff] }
  0x12   : > { %v218_v17 = vld [vmem:[%s594_s23 + $0x18] sm:$0xff]  ;;  %v219_v20 = vld [vmem:[%s594_s23 + $0x20] sm:$0xff]  ;;  %v220_v21 = vld [vmem:[%s594_s23 + $0x28] sm:$0xff]  ;;  %v269_v22 = vmul.f32 %v597_v9, %v215_v8  ;;  %v270_v23 = vmul.f32 %v602_v12, %v216_v11  ;;  %v271_v29 = vmul.f32 %v607_v15, %v217_v14 }
  0x13   : > { %v273_v24 = vmul.f32 %v597_v9, %v219_v20  ;;  %v274_v25 = vmul.f32 %v602_v12, %v220_v21  ;;  %v221_v26 = vld [vmem:[%s594_s23 + $0x30] sm:$0xff]  ;;  %v222_v27 = vld [vmem:[%s594_s23 + $0x38] sm:$0xff]  ;;  %v223_v28 = vld [vmem:[%s594_s23 + $0x40] sm:$0xff]  ;;  %v272_v30 = vmul.f32 %v612_v18, %v218_v17 }
  0x14   : > { %v275_v31 = vmul.f32 %v607_v15, %v221_v26  ;;  %v276_v32 = vmul.f32 %v612_v18, %v222_v27  ;;  %v224_v33 = vld [vmem:[%s594_s23 + $0x48] sm:$0xff]  ;;  %v225_v34 = vld [vmem:[%s594_s23 + $0x50] sm:$0xff]  ;;  %v226_v35 = vld [vmem:[%s594_s23 + $0x58] sm:$0xff]  ;;  %v323_v36 = vadd.f32 %v599_v10, %v269_v22  ;;  %v324_v37 = vadd.f32 %v604_v13, %v270_v23 }
  0x15   : > { %v327_v38 = vadd.f32 %v599_v10, %v273_v24  ;;  %v328_v39 = vadd.f32 %v604_v13, %v274_v25  ;;  %v227_v40 = vld [vmem:[%s594_s23 + $0x60] sm:$0xff]  ;;  %v228_v41 = vld [vmem:[%s594_s23 + $0x68] sm:$0xff]  ;;  %v229_v42 = vld [vmem:[%s594_s23 + $0x70] sm:$0xff]  ;;  %v325_v43 = vadd.f32 %v609_v16, %v271_v29  ;;  %v326_v44 = vadd.f32 %v614_v19, %v272_v30 }
  0x16   : > { %v329_v45 = vadd.f32 %v609_v16, %v275_v31  ;;  %v330_v46 = vadd.f32 %v614_v19, %v276_v32  ;;  %v230_v47 = vld [vmem:[%s594_s23 + $0x78] sm:$0xff]  ;;  %355 = vst [vmem:[%s628_s26] sm:$0xff] %v323_v36  ;;  %356 = vst [vmem:[%s628_s26 + $0x8] sm:$0xff] %v324_v37  ;;  %v277_v48 = vmul.f32 %v597_v9, %v223_v28  ;;  %v231_v52 = vld [vmem:[%s594_s23 + $0x80] sm:$0xff] }
  0x17   : > { %359 = vst [vmem:[%s628_s26 + $0x20] sm:$0xff] %v327_v38  ;;  %360 = vst [vmem:[%s628_s26 + $0x28] sm:$0xff] %v328_v39  ;;  %v278_v49 = vmul.f32 %v602_v12, %v224_v33  ;;  %v279_v50 = vmul.f32 %v607_v15, %v225_v34  ;;  %v280_v51 = vmul.f32 %v612_v18, %v226_v35  ;;  %v232_v53 = vld [vmem:[%s594_s23 + $0x88] sm:$0xff]  ;;  %v233_v58 = vld [vmem:[%s594_s23 + $0x90] sm:$0xff] }
  0x18   : > { %357 = vst [vmem:[%s628_s26 + $0x10] sm:$0xff] %v325_v43  ;;  %358 = vst [vmem:[%s628_s26 + $0x18] sm:$0xff] %v326_v44  ;;  %v281_v54 = vmul.f32 %v597_v9, %v227_v40  ;;  %v282_v55 = vmul.f32 %v602_v12, %v228_v41  ;;  %v283_v56 = vmul.f32 %v607_v15, %v229_v42  ;;  %v234_v59 = vld [vmem:[%s594_s23 + $0x98] sm:$0xff]  ;;  %v235_v60 = vld [vmem:[%s594_s23 + $0xa0] sm:$0xff] }
  0x19   : > { %361 = vst [vmem:[%s628_s26 + $0x30] sm:$0xff] %v329_v45  ;;  %362 = vst [vmem:[%s628_s26 + $0x38] sm:$0xff] %v330_v46  ;;  %v284_v57 = vmul.f32 %v612_v18, %v230_v47  ;;  %v331_v61 = vadd.f32 %v599_v10, %v277_v48  ;;  %v332_v62 = vadd.f32 %v604_v13, %v278_v49  ;;  %v236_v1 = vld [vmem:[%s594_s23 + $0xa8] sm:$0xff]  ;;  %v237_v2 = vld [vmem:[%s594_s23 + $0xb0] sm:$0xff] }
  0x1a   : > { %v333_v63 = vadd.f32 %v609_v16, %v279_v50  ;;  %v334_v0 = vadd.f32 %v614_v19, %v280_v51  ;;  %v238_v3 = vld [vmem:[%s594_s23 + $0xb8] sm:$0xff]  ;;  %v335_v4 = vadd.f32 %v599_v10, %v281_v54  ;;  %v336_v5 = vadd.f32 %v604_v13, %v282_v55  ;;  %v239_v20 = vld [vmem:[%s594_s23 + $0xc0] sm:$0xff]  ;;  %v240_v21 = vld [vmem:[%s594_s23 + $0xc8] sm:$0xff] }
  0x1b   : > { %v337_v6 = vadd.f32 %v609_v16, %v283_v56  ;;  %v338_v7 = vadd.f32 %v614_v19, %v284_v57  ;;  %363 = vst [vmem:[%s628_s26 + $0x40] sm:$0xff] %v331_v61  ;;  %364 = vst [vmem:[%s628_s26 + $0x48] sm:$0xff] %v332_v62  ;;  %v285_v8 = vmul.f32 %v597_v9, %v231_v52  ;;  %v241_v26 = vld [vmem:[%s594_s23 + $0xd0] sm:$0xff]  ;;  %v242_v27 = vld [vmem:[%s594_s23 + $0xd8] sm:$0xff] }
  0x1c   : > { %365 = vst [vmem:[%s628_s26 + $0x50] sm:$0xff] %v333_v63  ;;  %366 = vst [vmem:[%s628_s26 + $0x58] sm:$0xff] %v334_v0  ;;  %v286_v11 = vmul.f32 %v602_v12, %v232_v53  ;;  %v287_v14 = vmul.f32 %v607_v15, %v233_v58  ;;  %v288_v17 = vmul.f32 %v612_v18, %v234_v59  ;;  %v243_v28 = vld [vmem:[%s594_s23 + $0xe0] sm:$0xff]  ;;  %v244_v33 = vld [vmem:[%s594_s23 + $0xe8] sm:$0xff] }
  0x1d   : > { %367 = vst [vmem:[%s628_s26 + $0x60] sm:$0xff] %v335_v4  ;;  %368 = vst [vmem:[%s628_s26 + $0x68] sm:$0xff] %v336_v5  ;;  %v289_v22 = vmul.f32 %v597_v9, %v235_v60  ;;  %v290_v23 = vmul.f32 %v602_v12, %v236_v1  ;;  %v291_v24 = vmul.f32 %v607_v15, %v237_v2  ;;  %v245_v34 = vld [vmem:[%s594_s23 + $0xf0] sm:$0xff]  ;;  %v246_v35 = vld [vmem:[%s594_s23 + $0xf8] sm:$0xff] }
  0x1e   : > { %369 = vst [vmem:[%s628_s26 + $0x70] sm:$0xff] %v337_v6  ;;  %370 = vst [vmem:[%s628_s26 + $0x78] sm:$0xff] %v338_v7  ;;  %v292_v25 = vmul.f32 %v612_v18, %v238_v3  ;;  %v339_v29 = vadd.f32 %v599_v10, %v285_v8  ;;  %v340_v30 = vadd.f32 %v604_v13, %v286_v11 }
  0x1f   : > { %v341_v31 = vadd.f32 %v609_v16, %v287_v14  ;;  %v342_v32 = vadd.f32 %v614_v19, %v288_v17  ;;  %v343_v36 = vadd.f32 %v599_v10, %v289_v22  ;;  %v344_v37 = vadd.f32 %v604_v13, %v290_v23 }
  0x20   : > { %v345_v38 = vadd.f32 %v609_v16, %v291_v24  ;;  %v346_v39 = vadd.f32 %v614_v19, %v292_v25  ;;  %371 = vst [vmem:[%s628_s26 + $0x80] sm:$0xff] %v339_v29  ;;  %372 = vst [vmem:[%s628_s26 + $0x88] sm:$0xff] %v340_v30  ;;  %v293_v40 = vmul.f32 %v597_v9, %v239_v20 }
  0x21   : > { %373 = vst [vmem:[%s628_s26 + $0x90] sm:$0xff] %v341_v31  ;;  %374 = vst [vmem:[%s628_s26 + $0x98] sm:$0xff] %v342_v32  ;;  %v294_v41 = vmul.f32 %v602_v12, %v240_v21  ;;  %v295_v42 = vmul.f32 %v607_v15, %v241_v26  ;;  %v296_v43 = vmul.f32 %v612_v18, %v242_v27 }
  0x22   : > { %375 = vst [vmem:[%s628_s26 + $0xa0] sm:$0xff] %v343_v36  ;;  %376 = vst [vmem:[%s628_s26 + $0xa8] sm:$0xff] %v344_v37  ;;  %v297_v44 = vmul.f32 %v597_v9, %v243_v28  ;;  %v298_v45 = vmul.f32 %v602_v12, %v244_v33  ;;  %v299_v46 = vmul.f32 %v607_v15, %v245_v34 }
  0x23   : > { %377 = vst [vmem:[%s628_s26 + $0xb0] sm:$0xff] %v345_v38  ;;  %378 = vst [vmem:[%s628_s26 + $0xb8] sm:$0xff] %v346_v39  ;;  %v300_v47 = vmul.f32 %v612_v18, %v246_v35  ;;  %v347_v48 = vadd.f32 %v599_v10, %v293_v40  ;;  %v348_v49 = vadd.f32 %v604_v13, %v294_v41 }
  0x24   : > { %v349_v50 = vadd.f32 %v609_v16, %v295_v42  ;;  %v350_v51 = vadd.f32 %v614_v19, %v296_v43  ;;  %v351_v9 = vadd.f32 %v599_v10, %v297_v44  ;;  %v352_v52 = vadd.f32 %v604_v13, %v298_v45 }
  0x25   : > { %v353_v12 = vadd.f32 %v609_v16, %v299_v46  ;;  %v354_v15 = vadd.f32 %v614_v19, %v300_v47  ;;  %379 = vst [vmem:[%s628_s26 + $0xc0] sm:$0xff] %v347_v48  ;;  %380 = vst [vmem:[%s628_s26 + $0xc8] sm:$0xff] %v348_v49 }
  0x26   : > { %381 = vst [vmem:[%s628_s26 + $0xd0] sm:$0xff] %v349_v50  ;;  %382 = vst [vmem:[%s628_s26 + $0xd8] sm:$0xff] %v350_v51 }
  0x27   : > { %383 = vst [vmem:[%s628_s26 + $0xe0] sm:$0xff] %v351_v9  ;;  %384 = vst [vmem:[%s628_s26 + $0xe8] sm:$0xff] %v352_v52 }
  0x28   : > { %385 = vst [vmem:[%s628_s26 + $0xf0] sm:$0xff] %v353_v12  ;;  %386 = vst [vmem:[%s628_s26 + $0xf8] sm:$0xff] %v354_v15 }
  0x29 PF: > { %s13_s14 = sadd.s32 1, %s542_s14   ;;  %s758_s12 = smov %s538_s13 }
  0x2a   : > { %p10_p5 = scmp.ge.s32.totalorder %s13_s14, 4   ;;  %s759_s13 = smov %s761_s15 }
  0x2c   :  { %12 = sbr.rel (!%p10_p5) target bundleno = 2 (0x2), region = 62 }

// kernel: unet_unit_inner_forward.4
= control target key start
LH: loop header
LB: loop body
LE: loop exit
PB: predicated region body
PF: predicated region fallthrough
CT: control target
= control target key end

     0   :  { %s4737_s15 = smov 0   ;;  %s4739_s16 = smov 0   ;;  %s5876_s0 = inlined_call_operand.vmem [shape: f32[2,10,10,128], index: 0, kind: input, shape index: {}]   ;;  %s5877_s1 = inlined_call_operand.vmem [shape: f32[4,4,128,128], index: 1, kind: input, shape index: {}]   ;;  %s5878_s2 = inlined_call_operand.vmem [shape: f32[2,8,8,512], index: 2, kind: output, shape index: {0}]   ;;  %s5879_s3 = inlined_call_operand.vmem [shape: f32[2,1,128], index: 3, kind: output, shape index: {1}]   ;;  %s5880_s4 = inlined_call_operand.vmem [shape: f32[2,1,128], index: 4, kind: output, shape index: {2}]  }
   0x1   :  { %s4741_s17 = smov 0  }
   0x2 LB: > { %s27_s18 = sadd.s32 1, %s4705_s16  ;;  %p2711_p0 = scmp.ge.s32.totalorder %s4709_s17, 1  ;;  %s4709_s17 = sphi %s4741_s17, %s15_s17   ;;  %s4705_s16 = sphi %s4739_s16, %s5882_s16   ;;  %s4701_s15 = sphi %s4737_s15, %s5881_s15  }
   0x3   : > { %p29_p1 = scmp.ge.s32.totalorder %s27_s18, 2  ;;  %p181_p2 = scmp.lt.s32.totalorder %s4709_s17, 3 }
   0x5   : > { %s5884_s18 = smov (%p29_p1, %s27_s18), 0  ;;  %p182_p3 = pnand %p2711_p0, %p181_p2 }
   0x6   : > { %v2715_v0 = vld [vmem:[%s5877_s1 + $0x80] sm:$0xff] (!%p182_p3)  ;;  %v2716_v1 = vld [vmem:[%s5877_s1 + $0x88] sm:$0xff] (!%p182_p3)  ;;  %p218_p4 = scmp.lt.s32.totalorder (!%p182_p3), %s4701_s15, 1  ;;  %v2717_v5 = vld [vmem:[%s5877_s1 + $0x90] sm:$0xff] (!%p182_p3)  ;;  %vm888_vm0 = vcmask (!%p182_p3), 1045504   ;;  %vm285_vm1 = vcmask (!%p182_p3), 1046528  }
   0x7   : > { %185 = sbr.rel (%p182_p3) target bundleno = 515 (0x203), region = 28  ;;  %v2779_v2 = vld [vmem:[%s5877_s1 + $0x280] sm:$0xff] (!%p182_p3)  ;;  %v4046_v3 = vpack.c.bf16 (!%p182_p3), %v2716_v1, %v2715_v0  ;;  %v2780_v4 = vld [vmem:[%s5877_s1 + $0x288] sm:$0xff] (!%p182_p3)  ;;  %v2718_v6 = vld [vmem:[%s5877_s1 + $0x98] sm:$0xff] (!%p182_p3) }
   0x8   : > { %v4174_v7 = vpack.c.bf16 (!%p182_p3), %v2780_v4, %v2779_v2  ;;  %v4050_v8 = vpack.c.bf16 (!%p182_p3), %v2718_v6, %v2717_v5  ;;  %v2781_v9 = vld [vmem:[%s5877_s1 + $0x290] sm:$0xff] (!%p182_p3)  ;;  %v2782_v10 = vld [vmem:[%s5877_s1 + $0x298] sm:$0xff] (!%p182_p3)  ;;  %v2719_v11 = vld [vmem:[%s5877_s1 + $0xa0] sm:$0xff] (!%p182_p3) }
   0x9   : > { %4047 = vmatprep.subr.bf16.mxu0 (!%p182_p3), %v4046_v3  ;;  %v4178_v12 = vpack.c.bf16 (!%p182_p3), %v2782_v10, %v2781_v9  ;;  %v2720_v13 = vld [vmem:[%s5877_s1 + $0xa8] sm:$0xff] (!%p182_p3)  ;;  %v2783_v14 = vld [vmem:[%s5877_s1 + $0x2a0] sm:$0xff] (!%p182_p3)  ;;  %v2721_v18 = vld [vmem:[%s5877_s1 + $0xb0] sm:$0xff] (!%p182_p3) }
   0xa   : > { %v2784_v15 = vld [vmem:[%s5877_s1 + $0x2a8] sm:$0xff] (!%p182_p3)  ;;  %4175 = vmatprep.subr.bf16.mxu1 (!%p182_p3), %v4174_v7  ;;  %4049 = vmatpush3.bf16.msra.mxu0 (!%p182_p3), %v4046_v3  ;;  %v4054_v16 = vpack.c.bf16 (!%p182_p3), %v2720_v13, %v2719_v11  ;;  %v2722_v19 = vld [vmem:[%s5877_s1 + $0xb8] sm:$0xff] (!%p182_p3)  ;;  %v2785_v20 = vld [vmem:[%s5877_s1 + $0x2b0] sm:$0xff] (!%p182_p3) }
   0xb   : > { %4177 = vmatpush3.bf16.msra.mxu1 (!%p182_p3), %v4174_v7  ;;  %4051 = vmatprep.subr.bf16.mxu0 (!%p182_p3), %v4050_v8  ;;  %v4182_v17 = vpack.c.bf16 (!%p182_p3), %v2784_v15, %v2783_v14  ;;  %v2786_v21 = vld [vmem:[%s5877_s1 + $0x2b8] sm:$0xff] (!%p182_p3)  ;;  %v4058_v22 = vpack.c.bf16 (!%p182_p3), %v2722_v19, %v2721_v18  ;;  %v2723_v24 = vld [vmem:[%s5877_s1 + $0xc0] sm:$0xff] (!%p182_p3)  ;;  %v2724_v25 = vld [vmem:[%s5877_s1 + $0xc8] sm:$0xff] (!%p182_p3) }
   0xc   : > { %4179 = vmatprep.subr.bf16.mxu1 (!%p182_p3), %v4178_v12  ;;  %v4186_v23 = vpack.c.bf16 (!%p182_p3), %v2786_v21, %v2785_v20  ;;  %v2787_v27 = vld [vmem:[%s5877_s1 + $0x2c0] sm:$0xff] (!%p182_p3)  ;;  %v2788_v28 = vld [vmem:[%s5877_s1 + $0x2c8] sm:$0xff] (!%p182_p3)  ;;  %v4062_v32 = vpack.c.bf16 (!%p182_p3), %v2724_v25, %v2723_v24  ;;  %v2725_v34 = vld [vmem:[%s5877_s1 + $0xd0] sm:$0xff] (!%p182_p3) }
   0xd   : > { %v4190_v33 = vpack.c.bf16 (!%p182_p3), %v2788_v28, %v2787_v27  ;;  %v2726_v35 = vld [vmem:[%s5877_s1 + $0xd8] sm:$0xff] (!%p182_p3)  ;;  %v2789_v37 = vld [vmem:[%s5877_s1 + $0x2d0] sm:$0xff] (!%p182_p3)  ;;  %v2727_v41 = vld [vmem:[%s5877_s1 + $0xe0] sm:$0xff] (!%p182_p3) }
   0xe   : > { %s5886_s15 = smov (!%p218_p4, %s4701_s15), 1  ;;  %4053 = vmatpush3.bf16.msra.mxu0 %v4050_v8  ;;  %v2790_v38 = vld [vmem:[%s5877_s1 + $0x2d8] sm:$0xff]  ;;  %v4066_v39 = vpack.c.bf16 %v2726_v35, %v2725_v34  ;;  %v2728_v42 = vld [vmem:[%s5877_s1 + $0xe8] sm:$0xff]  ;;  %v2791_v43 = vld [vmem:[%s5877_s1 + $0x2e0] sm:$0xff] }
   0xf   : > { %s4654_s21 = smul.u32 160, %s5886_s15  ;;  %4181 = vmatpush3.bf16.msra.mxu1 %v4178_v12  ;;  %4055 = vmatprep.subr.bf16.mxu0 %v4054_v16  ;;  %v4194_v40 = vpack.c.bf16 %v2790_v38, %v2789_v37  ;;  %v2792_v44 = vld [vmem:[%s5877_s1 + $0x2e8] sm:$0xff]  ;;  %v4070_v45 = vpack.c.bf16 %v2728_v42, %v2727_v41  ;;  %v2729_v47 = vld [vmem:[%s5877_s1 + $0xf0] sm:$0xff]  ;;  %v2730_v48 = vld [vmem:[%s5877_s1 + $0xf8] sm:$0xff]  ;;  %s2957_s29 = sshll.u32 %s5886_s15, 8 }
  0x10   : > { %4183 = vmatprep.subr.bf16.mxu1 %v4182_v17  ;;  %v4198_v46 = vpack.c.bf16 %v2792_v44, %v2791_v43  ;;  %v2793_v49 = vld [vmem:[%s5877_s1 + $0x2f0] sm:$0xff]  ;;  %v2794_v50 = vld [vmem:[%s5877_s1 + $0x2f8] sm:$0xff]  ;;  %v4074_v51 = vpack.c.bf16 %v2730_v48, %v2729_v47  ;;  %v318_v52 = vld [vmem:[%s5877_s1] sm:$0xff]  ;;  %s5809_s7 = scalar_lea.vmem %s5878_s2, %s2957_s29  ;;  %s5831_s9 = scalar_lea.vmem %s5879_s3, %s5886_s15 }
  0x11   : > { %s4809_s6 = scalar_lea.vmem %s5876_s0, %s4654_s21  ;;  %v4202_v53 = vpack.c.bf16 %v2794_v50, %v2793_v49  ;;  %v319_v54 = vld [vmem:[%s5877_s1 + $0x8] sm:$0xff]  ;;  %v2763_v57 = vld [vmem:[%s5877_s1 + $0x200] sm:$0xff]  ;;  %v320_v62 = vld [vmem:[%s5877_s1 + $0x10] sm:$0xff]  ;;  %s5838_s12 = scalar_lea.vmem %s5880_s4, %s5886_s15 }
  0x12   : > { %v4818_v26 = vld [vmem:[%s4809_s6 + $0x10] sm:$0xff]  ;;  %v4828_v29 = vld [vmem:[%s4809_s6 + $0x18] sm:$0x3]  ;;  %4057 = vmatpush3.bf16.msra.mxu0 %v4054_v16  ;;  %v4879_v55 = vld [vmem:[%s4809_s6 + $0x20] sm:$0xff]  ;;  %v4078_v59 = vpack.c.bf16 %v319_v54, %v318_v52 }
  0x13   : > { %3374 = vmatprep.mubr.f32.mxu0 %v4818_v26  ;;  %v889_v30 = vrot.slane %v4818_v26, 2  ;;  %v890_v31 = vrot.slane %v4828_v29, 2  ;;  %4185 = vmatpush3.bf16.msra.mxu1 %v4182_v17  ;;  %v4882_v56 = vld [vmem:[%s4809_s6 + $0x28] sm:$0x3]  ;;  %v892_v60 = vrot.slane %v4879_v55, 2  ;;  %v4896_v63 = vld [vmem:[%s4809_s6 + $0x30] sm:$0xff] }
  0x14   : > { %4059 = vmatprep.subr.bf16.mxu0 %v4058_v22  ;;  %4187 = vmatprep.subr.bf16.mxu1 %v4186_v23  ;;  %v2764_v58 = vld [vmem:[%s5877_s1 + $0x208] sm:$0xff]  ;;  %v893_v61 = vrot.slane %v4882_v56, 2  ;;  %v4899_v0 = vld [vmem:[%s4809_s6 + $0x38] sm:$0x3]  ;;  %v4905_v3 = vld [vmem:[%s4809_s6 + $0x40] sm:$0xff]  ;;  %v895_v7 = vrot.slane %v4896_v63, 2 }
  0x15   : > { %v4839_v36 = vsel %vm888_vm0, %v889_v30, %v890_v31  ;;  %v4206_v1 = vpack.c.bf16 %v2764_v58, %v2763_v57  ;;  %v321_v2 = vld [vmem:[%s5877_s1 + $0x18] sm:$0xff]  ;;  %v4908_v4 = vld [vmem:[%s4809_s6 + $0x48] sm:$0x3]  ;;  %v2765_v5 = vld [vmem:[%s5877_s1 + $0x210] sm:$0xff]  ;;  %v896_v8 = vrot.slane %v4899_v0, 2  ;;  %v898_v12 = vrot.slane %v4905_v3, 2 }
  0x16   : > { %3550 = vmatprep.mubr.f32.mxu1 %v4839_v36  ;;  %4061 = vmatpush3.bf16.msra.mxu0 %v4058_v22  ;;  %v2766_v6 = vld [vmem:[%s5877_s1 + $0x218] sm:$0xff]  ;;  %v4919_v9 = vsel %vm888_vm0, %v892_v60, %v893_v61  ;;  %v4082_v10 = vpack.c.bf16 %v321_v2, %v320_v62  ;;  %v322_v11 = vld [vmem:[%s5877_s1 + $0x20] sm:$0xff]  ;;  %v899_v13 = vrot.slane %v4908_v4, 2  ;;  %v4927_v14 = vld [vmem:[%s4809_s6 + $0x50] sm:$0xff]  ;;  %v287_v52 = vrot.slane %v4828_v29, 1 }
  0x17   : > { %4189 = vmatpush3.bf16.msra.mxu1 %v4186_v23  ;;  %4063 = vmatprep.subr.bf16.mxu0 %v4062_v32  ;;  %v4930_v15 = vld [vmem:[%s4809_s6 + $0x58] sm:$0x3]  ;;  %v4210_v16 = vpack.c.bf16 %v2766_v6, %v2765_v5  ;;  %v323_v17 = vld [vmem:[%s5877_s1 + $0x28] sm:$0xff]  ;;  %v4936_v18 = vld [vmem:[%s4809_s6 + $0x60] sm:$0xff]  ;;  %v4950_v22 = vsel %vm888_vm0, %v895_v7, %v896_v8  ;;  %v901_v23 = vrot.slane %v4927_v14, 2 }
  0x18   : > { %4191 = vmatprep.subr.bf16.mxu1 %v4190_v33  ;;  %v4939_v19 = vld [vmem:[%s4809_s6 + $0x68] sm:$0x3]  ;;  %v2767_v20 = vld [vmem:[%s5877_s1 + $0x220] sm:$0xff]  ;;  %v902_v24 = vrot.slane %v4930_v15, 2  ;;  %v4086_v25 = vpack.c.bf16 %v323_v17, %v322_v11  ;;  %v324_v27 = vld [vmem:[%s5877_s1 + $0x30] sm:$0xff]  ;;  %v4958_v28 = vsel %vm888_vm0, %v898_v12, %v899_v13  ;;  %v904_v30 = vrot.slane %v4936_v18, 2 }
  0x19   : > { %v2768_v21 = vld [vmem:[%s5877_s1 + $0x228] sm:$0xff]  ;;  %v905_v31 = vrot.slane %v4939_v19, 2  ;;  %v325_v35 = vld [vmem:[%s5877_s1 + $0x38] sm:$0xff]  ;;  %v4973_v37 = vld [vmem:[%s4809_s6 + $0x80] sm:$0xff] }
  0x1a   : > { %4065 = vmatpush3.bf16.msra.mxu0 %v4062_v32  ;;  %v4963_v32 = vld [vmem:[%s4809_s6 + $0x70] sm:$0xff]  ;;  %v4214_v34 = vpack.c.bf16 %v2768_v21, %v2767_v20  ;;  %v4976_v38 = vld [vmem:[%s4809_s6 + $0x88] sm:$0x3]  ;;  %v4988_v41 = vsel %vm888_vm0, %v901_v23, %v902_v24  ;;  %v4090_v44 = vpack.c.bf16 %v325_v35, %v324_v27  ;;  %v326_v49 = vld [vmem:[%s5877_s1 + $0x40] sm:$0xff]  ;;  %v290_v35 = vrot.slane %v4882_v56, 1 }
  0x1b   : > { %4193 = vmatpush3.bf16.msra.mxu1 %v4190_v33  ;;  %4067 = vmatprep.subr.bf16.mxu0 %v4066_v39  ;;  %v4966_v33 = vld [vmem:[%s4809_s6 + $0x78] sm:$0x3]  ;;  %v907_v42 = vrot.slane %v4963_v32, 2  ;;  %v911_v47 = vrot.slane %v4976_v38, 2  ;;  %v327_v50 = vld [vmem:[%s5877_s1 + $0x48] sm:$0xff]  ;;  %v328_v60 = vld [vmem:[%s5877_s1 + $0x50] sm:$0xff] }
  0x1c   : > { %4195 = vmatprep.subr.bf16.mxu1 %v4194_v40  ;;  %v908_v43 = vrot.slane %v4966_v33, 2  ;;  %v2772_v54 = vld [vmem:[%s5877_s1 + $0x248] sm:$0xff]  ;;  %v4094_v29 = vpack.c.bf16 %v327_v50, %v326_v49  ;;  %v329_v61 = vld [vmem:[%s5877_s1 + $0x58] sm:$0xff]  ;;  %v2773_v62 = vld [vmem:[%s5877_s1 + $0x250] sm:$0xff]  ;;  %v295_v49 = vrot.slane %v4905_v3, 1  ;;  %v296_v50 = vrot.slane %v4908_v4, 1 }
  0x1d   : > { %v4098_v5 = vpack.c.bf16 %v329_v61, %v328_v60  ;;  %v330_v7 = vld [vmem:[%s5877_s1 + $0x60] sm:$0xff]  ;;  %v331_v8 = vld [vmem:[%s5877_s1 + $0x68] sm:$0xff]  ;;  %v333_v17 = vld [vmem:[%s5877_s1 + $0x78] sm:$0xff]  ;;  %v299_v4 = vrot.slane %v4930_v15, 1 }
  0x1e   : > { %4069 = vmatpush3.bf16.msra.mxu0 %v4066_v39  ;;  %v2769_v39 = vld [vmem:[%s5877_s1 + $0x230] sm:$0xff]  ;;  %v5016_v57 = vsel %vm888_vm0, %v907_v42, %v908_v43  ;;  %v2776_v11 = vld [vmem:[%s5877_s1 + $0x268] sm:$0xff]  ;;  %v4102_v12 = vpack.c.bf16 %v331_v8, %v330_v7  ;;  %v2778_v21 = vld [vmem:[%s5877_s1 + $0x278] sm:$0xff]  ;;  %v5118_v61 = vsel %vm285_vm1, %v295_v49, %v296_v50  ;;  %v304_v8 = vrot.slane %v4963_v32, 1 }
  0x1f   : > { %4197 = vmatpush3.bf16.msra.mxu1 %v4194_v40  ;;  %4071 = vmatprep.subr.bf16.mxu0 %v4070_v45  ;;  %v2770_v40 = vld [vmem:[%s5877_s1 + $0x238] sm:$0xff]  ;;  %v2777_v20 = vld [vmem:[%s5877_s1 + $0x270] sm:$0xff]  ;;  %v2732_v27 = vld [vmem:[%s5877_s1 + $0x108] sm:$0xff] }
  0x20   : > { %4199 = vmatprep.subr.bf16.mxu1 %v4198_v46  ;;  %v4218_v48 = vpack.c.bf16 %v2770_v40, %v2769_v39  ;;  %v4234_v24 = vpack.c.bf16 %v2778_v21, %v2777_v20  ;;  %v2733_v42 = vld [vmem:[%s5877_s1 + $0x110] sm:$0xff]  ;;  %v2734_v43 = vld [vmem:[%s5877_s1 + $0x118] sm:$0xff]  ;;  %v2800_v60 = vld [vmem:[%s5877_s1 + $0x328] sm:$0xff] }
  0x21   : > { %v2797_v56 = vld [vmem:[%s5877_s1 + $0x310] sm:$0xff]  ;;  %v2738_v7 = vld [vmem:[%s5877_s1 + $0x138] sm:$0xff]  ;;  %v5153_v20 = vld [vmem:[%s4809_s6 + $0x8] sm:$0x3] }
  0x22   : > { %4073 = vmatpush3.bf16.msra.mxu0 %v4070_v45  ;;  %v4993_v45 = vsel %vm888_vm0, %v904_v30, %v905_v31  ;;  %v2795_v30 = vld [vmem:[%s5877_s1 + $0x300] sm:$0xff]  ;;  %v2796_v31 = vld [vmem:[%s5877_s1 + $0x308] sm:$0xff] }
  0x23   : > { %4201 = vmatpush3.bf16.msra.mxu1 %v4198_v46  ;;  %4075 = vmatprep.subr.bf16.mxu0 %v4074_v51  ;;  %v910_v46 = vrot.slane %v4973_v37, 2  ;;  %v4238_v40 = vpack.c.bf16 %v2796_v31, %v2795_v30  ;;  %v2804_v30 = vld [vmem:[%s5877_s1 + $0x348] sm:$0xff]  ;;  %v2743_v50 = vld [vmem:[%s5877_s1 + $0x160] sm:$0xff] }
  0x24   : > { %4203 = vmatprep.subr.bf16.mxu1 %v4202_v53 }
  0x25   : > { %v5019_v58 = vsel %vm888_vm0, %v910_v46, %v911_v47  ;;  %v293_v46 = vrot.slane %v4899_v0, 1  ;;  %v2798_v47 = vld [vmem:[%s5877_s1 + $0x318] sm:$0xff] }
  0x26   : > { %4077 = vmatpush3.bf16.msra.mxu0 %v4074_v51  ;;  %v286_v51 = vrot.slane %v4818_v26, 1  ;;  %v4242_v0 = vpack.c.bf16 %v2798_v47, %v2797_v56 }
  0x27   : > { %4205 = vmatpush3.bf16.msra.mxu1 %v4202_v53  ;;  %4079 = vmatprep.subr.bf16.mxu0 %v4078_v59  ;;  %v2771_v53 = vld [vmem:[%s5877_s1 + $0x240] sm:$0xff] }
  0x28   : > { %4207 = vmatprep.subr.bf16.mxu1 %v4206_v1  ;;  %v5037_v2 = vsel %vm285_vm1, %v286_v51, %v287_v52  ;;  %v4114_v51 = vpack.c.bf16 %v2734_v43, %v2733_v42  ;;  %v2735_v52 = vld [vmem:[%s5877_s1 + $0x120] sm:$0xff]  ;;  %v2741_v42 = vld [vmem:[%s5877_s1 + $0x150] sm:$0xff]  ;;  %v2742_v43 = vld [vmem:[%s5877_s1 + $0x158] sm:$0xff] }
  0x29   : > { %3375 = vmatmul.mubr.f32.vlgmr.msra.gmra.mrb[0].mxu0 %v4879_v55  ;;  %v4130_v47 = vpack.c.bf16 %v2742_v43, %v2741_v42  ;;  %v2754_v42 = vld [vmem:[%s5877_s1 + $0x1b8] sm:$0xff]  ;;  %v2817_v43 = vld [vmem:[%s5877_s1 + $0x3b0] sm:$0xff] }
  0x2a   : > { %4081 = vmatpush3.bf16.msra.mxu0 %v4078_v59  ;;  %3551 = vmatmul.mubr.f32.vlgmr.msra.gmra.mrb[0].mxu1 %v4919_v9  ;;  %v4222_v59 = vpack.c.bf16 %v2772_v54, %v2771_v53  ;;  %v2736_v53 = vld [vmem:[%s5877_s1 + $0x128] sm:$0xff] }
  0x2b   : > { %4209 = vmatpush3.bf16.msra.mxu1 %v4206_v1  ;;  %4083 = vmatprep.subr.bf16.mxu0 %v4082_v10  ;;  %v2774_v1 = vld [vmem:[%s5877_s1 + $0x258] sm:$0xff]  ;;  %v4118_v15 = vpack.c.bf16 %v2736_v53, %v2735_v52  ;;  %v2808_v52 = vld [vmem:[%s5877_s1 + $0x368] sm:$0xff] }
  0x2c   : > { %4211 = vmatprep.subr.bf16.mxu1 %v4210_v16  ;;  %3377 = vmatprep.mubr.f32.mxu0 %v4896_v63  ;;  %v4226_v6 = vpack.c.bf16 %v2774_v1, %v2773_v62  ;;  %v301_v62 = vrot.slane %v4936_v18, 1  ;;  %v302_v1 = vrot.slane %v4939_v19, 1 }
  0x2d   : > { %3553 = vmatprep.mubr.f32.mxu1 %v4950_v22  ;;  %3378 = vmatmul.mubr.f32.gmra.mrb[2].mxu0 %v4905_v3 }
  0x2e   : > { %4085 = vmatpush3.bf16.msra.mxu0 %v4082_v10  ;;  %3554 = vmatmul.mubr.f32.gmra.mrb[2].mxu1 %v4958_v28  ;;  %v2775_v10 = vld [vmem:[%s5877_s1 + $0x260] sm:$0xff] }
  0x2f   : > { %4213 = vmatpush3.bf16.msra.mxu1 %v4210_v16  ;;  %4087 = vmatprep.subr.bf16.mxu0 %v4086_v25  ;;  %v4230_v13 = vpack.c.bf16 %v2776_v11, %v2775_v10  ;;  %v332_v16 = vld [vmem:[%s5877_s1 + $0x70] sm:$0xff]  ;;  %v305_v10 = vrot.slane %v4966_v33, 1  ;;  %v5150_v33 = vld [vmem:[%s4809_s6] sm:$0xff] }
  0x30   : > { %4215 = vmatprep.subr.bf16.mxu1 %v4214_v34  ;;  %3380 = vmatprep.mubr.f32.mxu0 %v4927_v14  ;;  %v4106_v23 = vpack.c.bf16 %v333_v17, %v332_v16  ;;  %v2801_v11 = vld [vmem:[%s5877_s1 + $0x330] sm:$0xff]  ;;  %v307_v16 = vrot.slane %v4973_v37, 1  ;;  %v308_v17 = vrot.slane %v4976_v38, 1  ;;  %v2740_v38 = vld [vmem:[%s5877_s1 + $0x148] sm:$0xff]  ;;  %v563_v31 = vrot.slane %v5150_v33, 1 }
  0x31   : > { %3556 = vmatprep.mubr.f32.mxu1 %v4988_v41  ;;  %3381 = vmatmul.mubr.f32.gmra.mrb[4].mxu0 %v4936_v18 }
  0x32   : > { %4089 = vmatpush3.bf16.msra.mxu0 %v4086_v25  ;;  %3557 = vmatmul.mubr.f32.gmra.mrb[4].mxu1 %v4993_v45  ;;  %v2731_v25 = vld [vmem:[%s5877_s1 + $0x100] sm:$0xff] }
  0x33   : > { %4217 = vmatpush3.bf16.msra.mxu1 %v4214_v34  ;;  %4091 = vmatprep.subr.bf16.mxu0 %v4090_v44  ;;  %v289_v34 = vrot.slane %v4879_v55, 1  ;;  %v4110_v39 = vpack.c.bf16 %v2732_v27, %v2731_v25  ;;  %v5163_v25 = vsel %vm285_vm1, %v304_v8, %v305_v10  ;;  %v2803_v27 = vld [vmem:[%s5877_s1 + $0x340] sm:$0xff]  ;;  %v2812_v8 = vld [vmem:[%s5877_s1 + $0x388] sm:$0xff] }
  0x34   : > { %4219 = vmatprep.subr.bf16.mxu1 %v4218_v48  ;;  %3383 = vmatprep.mubr.f32.mxu0 %v4963_v32 }
  0x35   : > { %3559 = vmatprep.mubr.f32.mxu1 %v5016_v57  ;;  %3384 = vmatmul.mubr.f32.gmra.mrb[6].mxu0 %v4973_v37 }
  0x36   : > { %4093 = vmatpush3.bf16.msra.mxu0 %v4090_v44  ;;  %3560 = vmatmul.mubr.f32.gmra.mrb[6].mxu1 %v5019_v58  ;;  %v292_v44 = vrot.slane %v4896_v63, 1 }
  0x37   : > { %4221 = vmatpush3.bf16.msra.mxu1 %v4218_v48  ;;  %4095 = vmatprep.subr.bf16.mxu0 %v4094_v29  ;;  %v5095_v48 = vsel %vm285_vm1, %v289_v34, %v290_v35  ;;  %v564_v34 = vrot.slane %v5153_v20, 1  ;;  %v5177_v35 = vsel %vm285_vm1, %v307_v16, %v308_v17  ;;  %v2750_v16 = vld [vmem:[%s5877_s1 + $0x198] sm:$0xff]  ;;  %v2813_v17 = vld [vmem:[%s5877_s1 + $0x390] sm:$0xff] }
  0x38   : > { %4223 = vmatprep.subr.bf16.mxu1 %v4222_v59  ;;  %3418 = vmatprep.mubr.f32.mxu0 %v5037_v2  ;;  %v5106_v54 = vsel %vm285_vm1, %v292_v44, %v293_v46  ;;  %v2805_v44 = vld [vmem:[%s5877_s1 + $0x350] sm:$0xff]  ;;  %v2806_v46 = vld [vmem:[%s5877_s1 + $0x358] sm:$0xff] }
  0x39   : > { %3594 = vmatprep.mubr.f32.mxu1 %v5037_v2  ;;  %v565_v56 = vsel %vm285_vm1, %v563_v31, %v564_v34  ;;  %v4258_v49 = vpack.c.bf16 %v2806_v46, %v2805_v44  ;;  %v2816_v31 = vld [vmem:[%s5877_s1 + $0x3a8] sm:$0xff]  ;;  %v2818_v44 = vld [vmem:[%s5877_s1 + $0x3b8] sm:$0xff] }
  0x3a   : > { %4097 = vmatpush3.bf16.msra.mxu0 %v4094_v29  ;;  %v298_v29 = vrot.slane %v4927_v14, 1 }
  0x3b   : > { %4225 = vmatpush3.bf16.msra.mxu1 %v4222_v59  ;;  %4099 = vmatprep.subr.bf16.mxu0 %v4098_v5  ;;  %v2799_v59 = vld [vmem:[%s5877_s1 + $0x320] sm:$0xff] }
  0x3c   : > { %4227 = vmatprep.subr.bf16.mxu1 %v4226_v6  ;;  %v5131_v19 = vsel %vm285_vm1, %v298_v29, %v299_v4  ;;  %v2745_v4 = vld [vmem:[%s5877_s1 + $0x170] sm:$0xff] }
  0x3e   : > { %4101 = vmatpush3.bf16.msra.mxu0 %v4098_v5  ;;  %v4246_v5 = vpack.c.bf16 %v2800_v60, %v2799_v59  ;;  %v2746_v59 = vld [vmem:[%s5877_s1 + $0x178] sm:$0xff]  ;;  %v2809_v60 = vld [vmem:[%s5877_s1 + $0x370] sm:$0xff] }
  0x3f   : > { %4229 = vmatpush3.bf16.msra.mxu1 %v4226_v6  ;;  %4103 = vmatprep.subr.bf16.mxu0 %v4102_v12  ;;  %v2737_v6 = vld [vmem:[%s5877_s1 + $0x130] sm:$0xff] }
  0x40   : > { %4231 = vmatprep.subr.bf16.mxu1 %v4230_v13  ;;  %v4122_v21 = vpack.c.bf16 %v2738_v7, %v2737_v6  ;;  %v2748_v6 = vld [vmem:[%s5877_s1 + $0x188] sm:$0xff]  ;;  %v2811_v7 = vld [vmem:[%s5877_s1 + $0x380] sm:$0xff] }
  0x42   : > { %4105 = vmatpush3.bf16.msra.mxu0 %v4102_v12  ;;  %v2802_v12 = vld [vmem:[%s5877_s1 + $0x338] sm:$0xff] }
  0x43   : > { %4233 = vmatpush3.bf16.msra.mxu1 %v4230_v13  ;;  %4107 = vmatprep.subr.bf16.mxu0 %v4106_v23  ;;  %v5144_v13 = vsel %vm285_vm1, %v301_v62, %v302_v1  ;;  %v2810_v62 = vld [vmem:[%s5877_s1 + $0x378] sm:$0xff]  ;;  %v4138_v1 = vpack.c.bf16 %v2746_v59, %v2745_v4  ;;  %v2757_v4 = vld [vmem:[%s5877_s1 + $0x1d0] sm:$0xff] }
  0x44   : > { %4235 = vmatprep.subr.bf16.mxu1 %v4234_v24  ;;  %v2758_v59 = vld [vmem:[%s5877_s1 + $0x1d8] sm:$0xff] }
  0x46   : > { %4109 = vmatpush3.bf16.msra.mxu0 %v4106_v23  ;;  %v4250_v23 = vpack.c.bf16 %v2802_v12, %v2801_v11  ;;  %v4270_v11 = vpack.c.bf16 %v2812_v8, %v2811_v7  ;;  %v2749_v12 = vld [vmem:[%s5877_s1 + $0x190] sm:$0xff]  ;;  %v2823_v7 = vld [vmem:[%s5877_s1 + $0x3e0] sm:$0xff]  ;;  %v2824_v8 = vld [vmem:[%s5877_s1 + $0x3e8] sm:$0xff] }
  0x47   : > { %4237 = vmatpush3.bf16.msra.mxu1 %v4234_v24  ;;  %4111 = vmatprep.subr.bf16.mxu0 %v4110_v39  ;;  %v2739_v24 = vld [vmem:[%s5877_s1 + $0x140] sm:$0xff] }
  0x48   : > { %4239 = vmatprep.subr.bf16.mxu1 %v4238_v40 }
  0x49   : > { %3419 = vmatmul.mubr.f32.vlgmr.msra.gmra.mrb[0].mxu0 %v5095_v48 }
  0x4a   : > { %4113 = vmatpush3.bf16.msra.mxu0 %v4110_v39  ;;  %3595 = vmatmul.mubr.f32.vlgmr.msra.gmra.mrb[0].mxu1 %v5095_v48  ;;  %v4126_v39 = vpack.c.bf16 %v2740_v38, %v2739_v24  ;;  %v2751_v38 = vld [vmem:[%s5877_s1 + $0x1a0] sm:$0xff] }
  0x4b   : > { %4241 = vmatpush3.bf16.msra.mxu1 %v4238_v40  ;;  %4115 = vmatprep.subr.bf16.mxu0 %v4114_v51  ;;  %v4254_v40 = vpack.c.bf16 %v2804_v30, %v2803_v27  ;;  %v2752_v27 = vld [vmem:[%s5877_s1 + $0x1a8] sm:$0xff]  ;;  %v2815_v30 = vld [vmem:[%s5877_s1 + $0x3a0] sm:$0xff] }
  0x4c   : > { %4243 = vmatprep.subr.bf16.mxu1 %v4242_v0  ;;  %3421 = vmatprep.mubr.f32.mxu0 %v5106_v54  ;;  %v4150_v34 = vpack.c.bf16 %v2752_v27, %v2751_v38  ;;  %v2844_v38 = vld [vmem:[%s5877_s1 + $0x488] sm:$0xff]  ;;  %v2907_v27 = vld [vmem:[%s5877_s1 + $0x680] sm:$0xff] }
  0x4d   : > { %3597 = vmatprep.mubr.f32.mxu1 %v5106_v54  ;;  %3422 = vmatmul.mubr.f32.gmra.mrb[2].mxu0 %v5118_v61 }
  0x4e   : > { %4117 = vmatpush3.bf16.msra.mxu0 %v4114_v51  ;;  %3598 = vmatmul.mubr.f32.gmra.mrb[2].mxu1 %v5118_v61  ;;  %v2744_v51 = vld [vmem:[%s5877_s1 + $0x168] sm:$0xff] }
  0x4f   : > { %4245 = vmatpush3.bf16.msra.mxu1 %v4242_v0  ;;  %4119 = vmatprep.subr.bf16.mxu0 %v4118_v15  ;;  %v2807_v0 = vld [vmem:[%s5877_s1 + $0x360] sm:$0xff]  ;;  %v4134_v53 = vpack.c.bf16 %v2744_v51, %v2743_v50  ;;  %v2820_v51 = vld [vmem:[%s5877_s1 + $0x3c8] sm:$0xff] }
  0x50   : > { %4247 = vmatprep.subr.bf16.mxu1 %v4246_v5  ;;  %3424 = vmatprep.mubr.f32.mxu0 %v5131_v19  ;;  %v4262_v29 = vpack.c.bf16 %v2808_v52, %v2807_v0  ;;  %v2819_v50 = vld [vmem:[%s5877_s1 + $0x3c0] sm:$0xff]  ;;  %v1278_v0 = vrot.slane %v5150_v33, 2  ;;  %v1279_v52 = vrot.slane %v5153_v20, 2  ;;  %v2822_v20 = vld [vmem:[%s5877_s1 + $0x3d8] sm:$0xff] }
  0x51   : > { %3600 = vmatprep.mubr.f32.mxu1 %v5131_v19  ;;  %3425 = vmatmul.mubr.f32.gmra.mrb[4].mxu0 %v5144_v13 }
  0x52   : > { %4121 = vmatpush3.bf16.msra.mxu0 %v4118_v15  ;;  %3601 = vmatmul.mubr.f32.gmra.mrb[4].mxu1 %v5144_v13  ;;  %v4266_v15 = vpack.c.bf16 %v2810_v62, %v2809_v60  ;;  %v2821_v60 = vld [vmem:[%s5877_s1 + $0x3d0] sm:$0xff]  ;;  %v1280_v62 = vsel %vm888_vm0, %v1278_v0, %v1279_v52 }
  0x53   : > { %4249 = vmatpush3.bf16.msra.mxu1 %v4246_v5  ;;  %4123 = vmatprep.subr.bf16.mxu0 %v4122_v21  ;;  %v2747_v5 = vld [vmem:[%s5877_s1 + $0x180] sm:$0xff]  ;;  %v2849_v52 = vld [vmem:[%s5877_s1 + $0x4b0] sm:$0xff] }
  0x54   : > { %4251 = vmatprep.subr.bf16.mxu1 %v4250_v23  ;;  %3427 = vmatprep.mubr.f32.mxu0 %v5163_v25  ;;  %v4142_v10 = vpack.c.bf16 %v2748_v6, %v2747_v5  ;;  %v2759_v5 = vld [vmem:[%s5877_s1 + $0x1e0] sm:$0xff]  ;;  %v2760_v6 = vld [vmem:[%s5877_s1 + $0x1e8] sm:$0xff] }
  0x55   : > { %3603 = vmatprep.mubr.f32.mxu1 %v5163_v25  ;;  %3428 = vmatmul.mubr.f32.gmra.mrb[6].mxu0 %v5177_v35 }
  0x56   : > { %4125 = vmatpush3.bf16.msra.mxu0 %v4122_v21  ;;  %3604 = vmatmul.mubr.f32.gmra.mrb[6].mxu1 %v5177_v35  ;;  %v2814_v21 = vld [vmem:[%s5877_s1 + $0x398] sm:$0xff] }
  0x57   : > { %4253 = vmatpush3.bf16.msra.mxu1 %v4250_v23  ;;  %4127 = vmatprep.subr.bf16.mxu0 %v4126_v39  ;;  %v4146_v23 = vpack.c.bf16 %v2750_v16, %v2749_v12  ;;  %v4274_v24 = vpack.c.bf16 %v2814_v21, %v2813_v17  ;;  %v2761_v12 = vld [vmem:[%s5877_s1 + $0x1f0] sm:$0xff]  ;;  %v2826_v17 = vld [vmem:[%s5877_s1 + $0x3f8] sm:$0xff] }
  0x58   : > { %4255 = vmatprep.subr.bf16.mxu1 %v4254_v40  ;;  %3462 = vmatprep.mubr.f32.mxu0 %v565_v56  ;;  %v2825_v16 = vld [vmem:[%s5877_s1 + $0x3f0] sm:$0xff] }
  0x59   : > { %3638 = vmatprep.mubr.f32.mxu1 %v565_v56  ;;  %v4282_v56 = vpack.c.bf16 %v2818_v44, %v2817_v43  ;;  %v2910_v43 = vld [vmem:[%s5877_s1 + $0x698] sm:$0xff] }
  0x5a   : > { %4129 = vmatpush3.bf16.msra.mxu0 %v4126_v39  ;;  %v4278_v39 = vpack.c.bf16 %v2816_v31, %v2815_v30  ;;  %v2908_v30 = vld [vmem:[%s5877_s1 + $0x688] sm:$0xff] }
  0x5b   : > { %4257 = vmatpush3.bf16.msra.mxu1 %v4254_v40  ;;  %4131 = vmatprep.subr.bf16.mxu0 %v4130_v47  ;;  %v2753_v40 = vld [vmem:[%s5877_s1 + $0x1b0] sm:$0xff] }
  0x5c   : > { %4259 = vmatprep.subr.bf16.mxu1 %v4258_v49  ;;  %v4154_v46 = vpack.c.bf16 %v2754_v42, %v2753_v40  ;;  %v2846_v40 = vld [vmem:[%s5877_s1 + $0x498] sm:$0xff]  ;;  %v2909_v42 = vld [vmem:[%s5877_s1 + $0x690] sm:$0xff] }
  0x5e   : > { %4133 = vmatpush3.bf16.msra.mxu0 %v4130_v47  ;;  %v2755_v47 = vld [vmem:[%s5877_s1 + $0x1c0] sm:$0xff] }
  0x5f   : > { %4261 = vmatpush3.bf16.msra.mxu1 %v4258_v49  ;;  %4135 = vmatprep.subr.bf16.mxu0 %v4134_v53  ;;  %v2756_v49 = vld [vmem:[%s5877_s1 + $0x1c8] sm:$0xff] }
  0x60   : > { %4263 = vmatprep.subr.bf16.mxu1 %v4262_v29 }
  0x62   : > { %4137 = vmatpush3.bf16.msra.mxu0 %v4134_v53  ;;  %v4158_v53 = vpack.c.bf16 %v2756_v49, %v2755_v47  ;;  %v2848_v47 = vld [vmem:[%s5877_s1 + $0x4a8] sm:$0xff]  ;;  %v2911_v49 = vld [vmem:[%s5877_s1 + $0x6a0] sm:$0xff] }
  0x63   : > { %4265 = vmatpush3.bf16.msra.mxu1 %v4262_v29  ;;  %4139 = vmatprep.subr.bf16.mxu0 %v4138_v1  ;;  %v4286_v29 = vpack.c.bf16 %v2820_v51, %v2819_v50  ;;  %v2912_v50 = vld [vmem:[%s5877_s1 + $0x6a8] sm:$0xff] }
  0x64   : > { %4267 = vmatprep.subr.bf16.mxu1 %v4266_v15  ;;  %v4438_v0 = vpack.c.bf16 %v2912_v50, %v2911_v49  ;;  %v2893_v49 = vld [vmem:[%s5877_s1 + $0x610] sm:$0xff]  ;;  %v2894_v50 = vld [vmem:[%s5877_s1 + $0x618] sm:$0xff] }
  0x66   : > { %4141 = vmatpush3.bf16.msra.mxu0 %v4138_v1  ;;  %v4162_v1 = vpack.c.bf16 %v2758_v59, %v2757_v4  ;;  %v2914_v4 = vld [vmem:[%s5877_s1 + $0x6b8] sm:$0xff] }
  0x67   : > { %4269 = vmatpush3.bf16.msra.mxu1 %v4266_v15  ;;  %4143 = vmatprep.subr.bf16.mxu0 %v4142_v10  ;;  %v4290_v15 = vpack.c.bf16 %v2822_v20, %v2821_v60  ;;  %v2851_v60 = vld [vmem:[%s5877_s1 + $0x4c0] sm:$0xff]  ;;  %v2852_v20 = vld [vmem:[%s5877_s1 + $0x4c8] sm:$0xff] }
  0x68   : > { %4271 = vmatprep.subr.bf16.mxu1 %v4270_v11 }
  0x69   : > { %3463 = vmatmul.mubr.f32.vlgmr.msra.gmra.mrb[0].mxu0 %v5037_v2 }
  0x6a   : > { %4145 = vmatpush3.bf16.msra.mxu0 %v4142_v10  ;;  %3639 = vmatmul.mubr.f32.vlgmr.msra.gmra.mrb[0].mxu1 %v5037_v2  ;;  %v4166_v10 = vpack.c.bf16 %v2760_v6, %v2759_v5  ;;  %v4318_v5 = vpack.c.bf16 %v2852_v20, %v2851_v60  ;;  %v2834_v20 = vld [vmem:[%s5877_s1 + $0x438] sm:$0xff] }
  0x6b   : > { %4273 = vmatpush3.bf16.msra.mxu1 %v4270_v11  ;;  %4147 = vmatprep.subr.bf16.mxu0 %v4146_v23  ;;  %v4294_v11 = vpack.c.bf16 %v2824_v8, %v2823_v7  ;;  %v2853_v7 = vld [vmem:[%s5877_s1 + $0x4d0] sm:$0xff]  ;;  %v2854_v8 = vld [vmem:[%s5877_s1 + $0x4d8] sm:$0xff] }
  0x6c   : > { %4275 = vmatprep.subr.bf16.mxu1 %v4274_v24  ;;  %3465 = vmatprep.mubr.f32.mxu0 %v5095_v48 }
  0x6d   : > { %3641 = vmatprep.mubr.f32.mxu1 %v5095_v48  ;;  %3466 = vmatmul.mubr.f32.gmra.mrb[2].mxu0 %v5106_v54 }
  0x6e   : > { %4149 = vmatpush3.bf16.msra.mxu0 %v4146_v23  ;;  %3642 = vmatmul.mubr.f32.gmra.mrb[2].mxu1 %v5106_v54  ;;  %v4298_v23 = vpack.c.bf16 %v2826_v17, %v2825_v16  ;;  %v2855_v16 = vld [vmem:[%s5877_s1 + $0x4e0] sm:$0xff]  ;;  %v2856_v17 = vld [vmem:[%s5877_s1 + $0x4e8] sm:$0xff] }
  0x6f   : > { %4277 = vmatpush3.bf16.msra.mxu1 %v4274_v24  ;;  %4151 = vmatprep.subr.bf16.mxu0 %v4150_v34  ;;  %v2843_v24 = vld [vmem:[%s5877_s1 + $0x480] sm:$0xff] }
  0x70   : > { %4279 = vmatprep.subr.bf16.mxu1 %v4278_v39  ;;  %3468 = vmatprep.mubr.f32.mxu0 %v5118_v61  ;;  %v4302_v31 = vpack.c.bf16 %v2844_v38, %v2843_v24  ;;  %v4326_v24 = vpack.c.bf16 %v2856_v17, %v2855_v16  ;;  %v2839_v16 = vld [vmem:[%s5877_s1 + $0x460] sm:$0xff]  ;;  %v2840_v17 = vld [vmem:[%s5877_s1 + $0x468] sm:$0xff] }
  0x71   : > { %3644 = vmatprep.mubr.f32.mxu1 %v5118_v61  ;;  %3469 = vmatmul.mubr.f32.gmra.mrb[4].mxu0 %v5131_v19 }
  0x72   : > { %4153 = vmatpush3.bf16.msra.mxu0 %v4150_v34  ;;  %3645 = vmatmul.mubr.f32.gmra.mrb[4].mxu1 %v5131_v19  ;;  %v4430_v34 = vpack.c.bf16 %v2908_v30, %v2907_v27  ;;  %v2858_v27 = vld [vmem:[%s5877_s1 + $0x4f8] sm:$0xff]  ;;  %v2921_v30 = vld [vmem:[%s5877_s1 + $0x6f0] sm:$0xff] }
  0x73   : > { %4281 = vmatpush3.bf16.msra.mxu1 %v4278_v39  ;;  %4155 = vmatprep.subr.bf16.mxu0 %v4154_v46  ;;  %v2845_v39 = vld [vmem:[%s5877_s1 + $0x490] sm:$0xff] }
  0x74   : > { %4283 = vmatprep.subr.bf16.mxu1 %v4282_v56  ;;  %3471 = vmatprep.mubr.f32.mxu0 %v5144_v13  ;;  %v4306_v44 = vpack.c.bf16 %v2846_v40, %v2845_v39  ;;  %v2827_v39 = vld [vmem:[%s5877_s1 + $0x400] sm:$0xff]  ;;  %v2828_v40 = vld [vmem:[%s5877_s1 + $0x408] sm:$0xff] }
  0x75   : > { %3647 = vmatprep.mubr.f32.mxu1 %v5144_v13  ;;  %3472 = vmatmul.mubr.f32.gmra.mrb[6].mxu0 %v5163_v25 }
  0x76   : > { %4157 = vmatpush3.bf16.msra.mxu0 %v4154_v46  ;;  %3648 = vmatmul.mubr.f32.gmra.mrb[6].mxu1 %v5163_v25  ;;  %v4434_v46 = vpack.c.bf16 %v2910_v43, %v2909_v42  ;;  %v2891_v42 = vld [vmem:[%s5877_s1 + $0x600] sm:$0xff]  ;;  %v2892_v43 = vld [vmem:[%s5877_s1 + $0x608] sm:$0xff] }
  0x77   : > { %4285 = vmatpush3.bf16.msra.mxu1 %v4282_v56  ;;  %4159 = vmatprep.subr.bf16.mxu0 %v4158_v53  ;;  %v2847_v56 = vld [vmem:[%s5877_s1 + $0x4a0] sm:$0xff] }
  0x78   : > { %4287 = vmatprep.subr.bf16.mxu1 %v4286_v29  ;;  %3506 = vmatprep.mubr.f32.mxu0 %v5150_v33  ;;  %v2762_v33 = vld [vmem:[%s5877_s1 + $0x1f8] sm:$0xff]  ;;  %v4310_v51 = vpack.c.bf16 %v2848_v47, %v2847_v56  ;;  %v2829_v56 = vld [vmem:[%s5877_s1 + $0x410] sm:$0xff] }
  0x79   : > { %3682 = vmatprep.mubr.f32.mxu1 %v1280_v62  ;;  %v4170_v21 = vpack.c.bf16 %v2762_v33, %v2761_v12  ;;  %v4322_v12 = vpack.c.bf16 %v2854_v8, %v2853_v7  ;;  %v2830_v47 = vld [vmem:[%s5877_s1 + $0x418] sm:$0xff]  ;;  %v2900_v7 = vld [vmem:[%s5877_s1 + $0x648] sm:$0xff] }
  0x7a   : > { %4161 = vmatpush3.bf16.msra.mxu0 %v4158_v53  ;;  %v2850_v53 = vld [vmem:[%s5877_s1 + $0x4b8] sm:$0xff] }
  0x7b   : > { %4289 = vmatpush3.bf16.msra.mxu1 %v4286_v29  ;;  %4163 = vmatprep.subr.bf16.mxu0 %v4162_v1  ;;  %v2913_v29 = vld [vmem:[%s5877_s1 + $0x6b0] sm:$0xff]  ;;  %v4314_v59 = vpack.c.bf16 %v2850_v53, %v2849_v52  ;;  %v2831_v52 = vld [vmem:[%s5877_s1 + $0x420] sm:$0xff]  ;;  %v2832_v53 = vld [vmem:[%s5877_s1 + $0x428] sm:$0xff] }
  0x7c   : > { %4291 = vmatprep.subr.bf16.mxu1 %v4290_v15  ;;  %v4442_v62 = vpack.c.bf16 %v2914_v4, %v2913_v29  ;;  %v2895_v29 = vld [vmem:[%s5877_s1 + $0x620] sm:$0xff]  ;;  %v2896_v4 = vld [vmem:[%s5877_s1 + $0x628] sm:$0xff] }
  0x7d   : > { %v4470_v60 = vpack.c.bf16 %v2896_v4, %v2895_v29 }
  0x7e   : > { %4165 = vmatpush3.bf16.msra.mxu0 %v4162_v1  ;;  %v2915_v1 = vld [vmem:[%s5877_s1 + $0x6c0] sm:$0xff] }
  0x7f   : > { %4293 = vmatpush3.bf16.msra.mxu1 %v4290_v15  ;;  %4167 = vmatprep.subr.bf16.mxu0 %v4166_v10  ;;  %v2916_v15 = vld [vmem:[%s5877_s1 + $0x6c8] sm:$0xff] }
  0x80   : > { %4295 = vmatprep.subr.bf16.mxu1 %v4294_v11  ;;  %v4446_v6 = vpack.c.bf16 %v2916_v15, %v2915_v1  ;;  %v2898_v1 = vld [vmem:[%s5877_s1 + $0x638] sm:$0xff] }
  0x82   : > { %4169 = vmatpush3.bf16.msra.mxu0 %v4166_v10  ;;  %v2917_v10 = vld [vmem:[%s5877_s1 + $0x6d0] sm:$0xff] }
  0x83   : > { %4297 = vmatpush3.bf16.msra.mxu1 %v4294_v11  ;;  %4171 = vmatprep.subr.bf16.mxu0 %v4170_v21  ;;  %v2918_v11 = vld [vmem:[%s5877_s1 + $0x6d8] sm:$0xff] }
  0x84   : > { %4299 = vmatprep.subr.bf16.mxu1 %v4298_v23  ;;  %v4450_v33 = vpack.c.bf16 %v2918_v11, %v2917_v10  ;;  %v2837_v10 = vld [vmem:[%s5877_s1 + $0x450] sm:$0xff]  ;;  %v2838_v11 = vld [vmem:[%s5877_s1 + $0x458] sm:$0xff] }
  0x86   : > { %4173 = vmatpush3.bf16.msra.mxu0 %v4170_v21  ;;  %v2919_v21 = vld [vmem:[%s5877_s1 + $0x6e0] sm:$0xff] }
  0x87   : > { %4301 = vmatpush3.bf16.msra.mxu1 %v4298_v23  ;;  %4303 = vmatprep.subr.bf16.mxu0 %v4302_v31  ;;  %v2920_v23 = vld [vmem:[%s5877_s1 + $0x6e8] sm:$0xff] }
  0x88   : > { %4431 = vmatprep.subr.bf16.mxu1 %v4430_v34  ;;  %v4454_v38 = vpack.c.bf16 %v2920_v23, %v2919_v21  ;;  %v2904_v21 = vld [vmem:[%s5877_s1 + $0x668] sm:$0xff]  ;;  %v4358_v23 = vpack.c.bf16 %v2840_v17, %v2839_v16  ;;  %v2935_v16 = vld [vmem:[%s5877_s1 + $0x760] sm:$0xff] }
  0x89   : > { %3507 = vmatmul.mubr.f32.vlgmr.msra.gmra.mrb[0].mxu0 %v4818_v26  ;;  %v2936_v17 = vld [vmem:[%s5877_s1 + $0x768] sm:$0xff] }
  0x8a   : > { %3683 = vmatmul.mubr.f32.vlgmr.msra.gmra.mrb[0].mxu1 %v4839_v36  ;;  %4305 = vmatpush3.bf16.msra.mxu0 %v4302_v31 }
  0x8b   : > { %4433 = vmatpush3.bf16.msra.mxu1 %v4430_v34  ;;  %3509 = vmatprep.mubr.f32.mxu0 %v4879_v55 }
  0x8c   : > { %3685 = vmatprep.mubr.f32.mxu1 %v4919_v9  ;;  %4307 = vmatprep.subr.bf16.mxu0 %v4306_v44 }
  0x8d   : > { %3510 = vmatmul.mubr.f32.gmra.mrb[2].mxu0 %v4896_v63  ;;  %4435 = vmatprep.subr.bf16.mxu1 %v4434_v46 }
  0x8e   : > { %3686 = vmatmul.mubr.f32.gmra.mrb[2].mxu1 %v4950_v22  ;;  %4309 = vmatpush3.bf16.msra.mxu0 %v4306_v44  ;;  %v4334_v44 = vpack.c.bf16 %v2828_v40, %v2827_v39  ;;  %v2923_v39 = vld [vmem:[%s5877_s1 + $0x700] sm:$0xff]  ;;  %v2924_v40 = vld [vmem:[%s5877_s1 + $0x708] sm:$0xff] }
  0x8f   : > { %4437 = vmatpush3.bf16.msra.mxu1 %v4434_v46  ;;  %3512 = vmatprep.mubr.f32.mxu0 %v4905_v3  ;;  %v4462_v46 = vpack.c.bf16 %v2892_v43, %v2891_v42  ;;  %v4494_v43 = vpack.c.bf16 %v2924_v40, %v2923_v39  ;;  %v2877_v40 = vld [vmem:[%s5877_s1 + $0x590] sm:$0xff] }
  0x90   : > { %3688 = vmatprep.mubr.f32.mxu1 %v4958_v28  ;;  %4311 = vmatprep.subr.bf16.mxu0 %v4310_v51 }
  0x91   : > { %3513 = vmatmul.mubr.f32.gmra.mrb[4].mxu0 %v4927_v14  ;;  %4439 = vmatprep.subr.bf16.mxu1 %v4438_v0 }
  0x92   : > { %3689 = vmatmul.mubr.f32.gmra.mrb[4].mxu1 %v4988_v41  ;;  %4313 = vmatpush3.bf16.msra.mxu0 %v4310_v51  ;;  %v4338_v51 = vpack.c.bf16 %v2830_v47, %v2829_v56  ;;  %v2925_v56 = vld [vmem:[%s5877_s1 + $0x710] sm:$0xff]  ;;  %v2926_v47 = vld [vmem:[%s5877_s1 + $0x718] sm:$0xff] }
  0x93   : > { %4441 = vmatpush3.bf16.msra.mxu1 %v4438_v0  ;;  %3515 = vmatprep.mubr.f32.mxu0 %v4936_v18  ;;  %v4466_v0 = vpack.c.bf16 %v2894_v50, %v2893_v49  ;;  %v4498_v50 = vpack.c.bf16 %v2926_v47, %v2925_v56  ;;  %v2879_v47 = vld [vmem:[%s5877_s1 + $0x5a0] sm:$0xff] }
  0x94   : > { %3691 = vmatprep.mubr.f32.mxu1 %v4993_v45  ;;  %4315 = vmatprep.subr.bf16.mxu0 %v4314_v59 }
  0x95   : > { %3516 = vmatmul.mubr.f32.gmra.mrb[6].mxu0 %v4963_v32  ;;  %4443 = vmatprep.subr.bf16.mxu1 %v4442_v62 }
  0x96   : > { %3692 = vmatmul.mubr.f32.gmra.mrb[6].mxu1 %v5016_v57  ;;  %4317 = vmatpush3.bf16.msra.mxu0 %v4314_v59  ;;  %v4342_v59 = vpack.c.bf16 %v2832_v53, %v2831_v52  ;;  %v2927_v52 = vld [vmem:[%s5877_s1 + $0x720] sm:$0xff]  ;;  %v2928_v53 = vld [vmem:[%s5877_s1 + $0x728] sm:$0xff] }
  0x97   : > { %4445 = vmatpush3.bf16.msra.mxu1 %v4442_v62  ;;  %4319 = vmatprep.subr.bf16.mxu0 %v4318_v5  ;;  %v2897_v62 = vld [vmem:[%s5877_s1 + $0x630] sm:$0xff]  ;;  %v4502_v4 = vpack.c.bf16 %v2928_v53, %v2927_v52  ;;  %v5712_v53 = vld [vmem:[%s4809_s6 + $0x98] sm:$0x3] }
  0x98   : > { %4447 = vmatprep.subr.bf16.mxu1 %v4446_v6  ;;  %3726 = vmatprep.mubr.f32.mxu0 %v4818_v26  ;;  %v2857_v26 = vld [vmem:[%s5877_s1 + $0x4f0] sm:$0xff] }
  0x99   : > { %3902 = vmatprep.mubr.f32.mxu1 %v4839_v36  ;;  %v2922_v36 = vld [vmem:[%s5877_s1 + $0x6f8] sm:$0xff]  ;;  %v4330_v31 = vpack.c.bf16 %v2858_v27, %v2857_v26  ;;  %v2905_v27 = vld [vmem:[%s5877_s1 + $0x670] sm:$0xff] }
  0x9a   : > { %4321 = vmatpush3.bf16.msra.mxu0 %v4318_v5  ;;  %v4458_v34 = vpack.c.bf16 %v2922_v36, %v2921_v30  ;;  %v2835_v5 = vld [vmem:[%s5877_s1 + $0x440] sm:$0xff]  ;;  %v2842_v26 = vld [vmem:[%s5877_s1 + $0x478] sm:$0xff]  ;;  %v5709_v52 = vld [vmem:[%s4809_s6 + $0x90] sm:$0xff] }
  0x9b   : > { %4449 = vmatpush3.bf16.msra.mxu1 %v4446_v6  ;;  %4323 = vmatprep.subr.bf16.mxu0 %v4322_v12  ;;  %v2836_v6 = vld [vmem:[%s5877_s1 + $0x448] sm:$0xff] }
  0x9c   : > { %4451 = vmatprep.subr.bf16.mxu1 %v4450_v33  ;;  %v4350_v8 = vpack.c.bf16 %v2836_v6, %v2835_v5  ;;  %v2931_v5 = vld [vmem:[%s5877_s1 + $0x740] sm:$0xff]  ;;  %v2932_v6 = vld [vmem:[%s5877_s1 + $0x748] sm:$0xff] }
  0x9e   : > { %4325 = vmatpush3.bf16.msra.mxu0 %v4322_v12  ;;  %v2902_v12 = vld [vmem:[%s5877_s1 + $0x658] sm:$0xff] }
  0x9f   : > { %4453 = vmatpush3.bf16.msra.mxu1 %v4450_v33  ;;  %4327 = vmatprep.subr.bf16.mxu0 %v4326_v24  ;;  %v4354_v33 = vpack.c.bf16 %v2838_v11, %v2837_v10  ;;  %v2933_v10 = vld [vmem:[%s5877_s1 + $0x750] sm:$0xff]  ;;  %v2934_v11 = vld [vmem:[%s5877_s1 + $0x758] sm:$0xff] }
  0xa0   : > { %4455 = vmatprep.subr.bf16.mxu1 %v4454_v38 }
  0xa2   : > { %4329 = vmatpush3.bf16.msra.mxu0 %v4326_v24 }
  0xa3   : > { %4457 = vmatpush3.bf16.msra.mxu1 %v4454_v38  ;;  %4331 = vmatprep.subr.bf16.mxu0 %v4330_v31  ;;  %v2841_v38 = vld [vmem:[%s5877_s1 + $0x470] sm:$0xff] }
  0xa4   : > { %4459 = vmatprep.subr.bf16.mxu1 %v4458_v34  ;;  %v4362_v30 = vpack.c.bf16 %v2842_v26, %v2841_v38  ;;  %v2937_v38 = vld [vmem:[%s5877_s1 + $0x770] sm:$0xff] }
  0xa6   : > { %4333 = vmatpush3.bf16.msra.mxu0 %v4330_v31  ;;  %v2859_v31 = vld [vmem:[%s5877_s1 + $0x500] sm:$0xff] }
  0xa7   : > { %4461 = vmatpush3.bf16.msra.mxu1 %v4458_v34  ;;  %4335 = vmatprep.subr.bf16.mxu0 %v4334_v44  ;;  %v2860_v34 = vld [vmem:[%s5877_s1 + $0x508] sm:$0xff] }
  0xa8   : > { %4463 = vmatprep.subr.bf16.mxu1 %v4462_v46  ;;  %v4366_v42 = vpack.c.bf16 %v2860_v34, %v2859_v31  ;;  %v2940_v31 = vld [vmem:[%s5877_s1 + $0x788] sm:$0xff] }
  0xa9   : > { %3727 = vmatmul.mubr.f32.vlgmr.msra.gmra.mrb[8].mxu0 %v4879_v55  ;;  %v2833_v55 = vld [vmem:[%s5877_s1 + $0x430] sm:$0xff] }
  0xaa   : > { %4337 = vmatpush3.bf16.msra.mxu0 %v4334_v44  ;;  %3903 = vmatmul.mubr.f32.vlgmr.msra.gmra.mrb[8].mxu1 %v4919_v9  ;;  %v4346_v15 = vpack.c.bf16 %v2834_v20, %v2833_v55  ;;  %v2861_v44 = vld [vmem:[%s5877_s1 + $0x510] sm:$0xff]  ;;  %v2930_v20 = vld [vmem:[%s5877_s1 + $0x738] sm:$0xff] }
  0xab   : > { %4465 = vmatpush3.bf16.msra.mxu1 %v4462_v46  ;;  %4339 = vmatprep.subr.bf16.mxu0 %v4338_v51  ;;  %v2862_v46 = vld [vmem:[%s5877_s1 + $0x518] sm:$0xff]  ;;  %v2929_v55 = vld [vmem:[%s5877_s1 + $0x730] sm:$0xff] }
  0xac   : > { %4467 = vmatprep.subr.bf16.mxu1 %v4466_v0  ;;  %3729 = vmatprep.mubr.f32.mxu0 %v4896_v63  ;;  %v4474_v63 = vpack.c.bf16 %v2898_v1, %v2897_v62  ;;  %v4370_v49 = vpack.c.bf16 %v2862_v46, %v2861_v44  ;;  %v4506_v1 = vpack.c.bf16 %v2930_v20, %v2929_v55  ;;  %v2942_v44 = vld [vmem:[%s5877_s1 + $0x798] sm:$0xff]  ;;  %v1702_v55 = vrot.slane %v5709_v52, 1 }
  0xad   : > { %3905 = vmatprep.mubr.f32.mxu1 %v4950_v22  ;;  %3730 = vmatmul.mubr.f32.gmra.mrb[10].mxu0 %v4905_v3  ;;  %v2899_v3 = vld [vmem:[%s5877_s1 + $0x640] sm:$0xff]  ;;  %v1703_v20 = vrot.slane %v5712_v53, 1 }
  0xae   : > { %4341 = vmatpush3.bf16.msra.mxu0 %v4338_v51  ;;  %3906 = vmatmul.mubr.f32.gmra.mrb[10].mxu1 %v4958_v28  ;;  %v2863_v51 = vld [vmem:[%s5877_s1 + $0x520] sm:$0xff] }
  0xaf   : > { %4469 = vmatpush3.bf16.msra.mxu1 %v4466_v0  ;;  %4343 = vmatprep.subr.bf16.mxu0 %v4342_v59  ;;  %v2864_v0 = vld [vmem:[%s5877_s1 + $0x528] sm:$0xff] }
  0xb0   : > { %4471 = vmatprep.subr.bf16.mxu1 %v4470_v60  ;;  %3732 = vmatprep.mubr.f32.mxu0 %v4927_v14  ;;  %v4478_v14 = vpack.c.bf16 %v2900_v7, %v2899_v3  ;;  %v4374_v29 = vpack.c.bf16 %v2864_v0, %v2863_v51  ;;  %v4510_v7 = vpack.c.bf16 %v2932_v6, %v2931_v5  ;;  %v2944_v51 = vld [vmem:[%s5877_s1 + $0x7a8] sm:$0xff] }
  0xb1   : > { %3908 = vmatprep.mubr.f32.mxu1 %v4988_v41  ;;  %3733 = vmatmul.mubr.f32.gmra.mrb[12].mxu0 %v4936_v18  ;;  %v2901_v18 = vld [vmem:[%s5877_s1 + $0x650] sm:$0xff]  ;;  %v1704_v5 = vsel %vm285_vm1, %v1702_v55, %v1703_v20 }
  0xb2   : > { %4345 = vmatpush3.bf16.msra.mxu0 %v4342_v59  ;;  %3909 = vmatmul.mubr.f32.gmra.mrb[12].mxu1 %v4993_v45  ;;  %v2865_v59 = vld [vmem:[%s5877_s1 + $0x530] sm:$0xff] }
  0xb3   : > { %4473 = vmatpush3.bf16.msra.mxu1 %v4470_v60  ;;  %4347 = vmatprep.subr.bf16.mxu0 %v4346_v15  ;;  %v2866_v60 = vld [vmem:[%s5877_s1 + $0x538] sm:$0xff] }
  0xb4   : > { %4475 = vmatprep.subr.bf16.mxu1 %v4474_v63  ;;  %3735 = vmatprep.mubr.f32.mxu0 %v4963_v32  ;;  %v4482_v32 = vpack.c.bf16 %v2902_v12, %v2901_v18  ;;  %v4378_v62 = vpack.c.bf16 %v2866_v60, %v2865_v59  ;;  %v4514_v12 = vpack.c.bf16 %v2934_v11, %v2933_v10  ;;  %v2882_v59 = vld [vmem:[%s5877_s1 + $0x5b8] sm:$0xff]  ;;  %v2887_v11 = vld [vmem:[%s5877_s1 + $0x5e0] sm:$0xff] }
  0xb5   : > { %3911 = vmatprep.mubr.f32.mxu1 %v5016_v57  ;;  %3736 = vmatmul.mubr.f32.gmra.mrb[14].mxu0 %v4973_v37  ;;  %v2903_v37 = vld [vmem:[%s5877_s1 + $0x660] sm:$0xff]  ;;  %v2946_v60 = vld [vmem:[%s5877_s1 + $0x7b8] sm:$0xff] }
  0xb6   : > { %4349 = vmatpush3.bf16.msra.mxu0 %v4346_v15  ;;  %3912 = vmatmul.mubr.f32.gmra.mrb[14].mxu1 %v5019_v58  ;;  %v4486_v24 = vpack.c.bf16 %v2904_v21, %v2903_v37  ;;  %v2867_v15 = vld [vmem:[%s5877_s1 + $0x540] sm:$0xff]  ;;  %v4518_v21 = vpack.c.bf16 %v2936_v17, %v2935_v16  ;;  %v2889_v17 = vld [vmem:[%s5877_s1 + $0x5f0] sm:$0xff] }
  0xb7   : > { %4477 = vmatpush3.bf16.msra.mxu1 %v4474_v63  ;;  %4351 = vmatprep.subr.bf16.mxu0 %v4350_v8  ;;  %v2868_v63 = vld [vmem:[%s5877_s1 + $0x548] sm:$0xff] }
  0xb8   : > { %4479 = vmatprep.subr.bf16.mxu1 %v4478_v14  ;;  %3770 = vmatprep.mubr.f32.mxu0 %v5037_v2  ;;  %v4382_v3 = vpack.c.bf16 %v2868_v63, %v2867_v15  ;;  %v2883_v15 = vld [vmem:[%s5877_s1 + $0x5c0] sm:$0xff]  ;;  %v2948_v63 = vld [vmem:[%s5877_s1 + $0x7c8] sm:$0xff] }
  0xb9   : > { %3946 = vmatprep.mubr.f32.mxu1 %v5037_v2  ;;  %v2906_v2 = vld [vmem:[%s5877_s1 + $0x678] sm:$0xff] }
  0xba   : > { %4353 = vmatpush3.bf16.msra.mxu0 %v4350_v8  ;;  %v4490_v36 = vpack.c.bf16 %v2906_v2, %v2905_v27  ;;  %v2869_v8 = vld [vmem:[%s5877_s1 + $0x550] sm:$0xff]  ;;  %v2875_v2 = vld [vmem:[%s5877_s1 + $0x580] sm:$0xff] }
  0xbb   : > { %4481 = vmatpush3.bf16.msra.mxu1 %v4478_v14  ;;  %4355 = vmatprep.subr.bf16.mxu0 %v4354_v33  ;;  %v2870_v14 = vld [vmem:[%s5877_s1 + $0x558] sm:$0xff] }
  0xbc   : > { %4483 = vmatprep.subr.bf16.mxu1 %v4482_v32  ;;  %v4386_v18 = vpack.c.bf16 %v2870_v14, %v2869_v8  ;;  %v2950_v8 = vld [vmem:[%s5877_s1 + $0x7d8] sm:$0xff] }
  0xbe   : > { %4357 = vmatpush3.bf16.msra.mxu0 %v4354_v33  ;;  %v2871_v33 = vld [vmem:[%s5877_s1 + $0x560] sm:$0xff] }
  0xbf   : > { %4485 = vmatpush3.bf16.msra.mxu1 %v4482_v32  ;;  %4359 = vmatprep.subr.bf16.mxu0 %v4358_v23  ;;  %v2872_v32 = vld [vmem:[%s5877_s1 + $0x568] sm:$0xff] }
  0xc0   : > { %4487 = vmatprep.subr.bf16.mxu1 %v4486_v24  ;;  %v4390_v37 = vpack.c.bf16 %v2872_v32, %v2871_v33  ;;  %v2952_v33 = vld [vmem:[%s5877_s1 + $0x7e8] sm:$0xff] }
  0xc2   : > { %4361 = vmatpush3.bf16.msra.mxu0 %v4358_v23  ;;  %v2873_v23 = vld [vmem:[%s5877_s1 + $0x570] sm:$0xff] }
  0xc3   : > { %4489 = vmatpush3.bf16.msra.mxu1 %v4486_v24  ;;  %4363 = vmatprep.subr.bf16.mxu0 %v4362_v30  ;;  %v2874_v24 = vld [vmem:[%s5877_s1 + $0x578] sm:$0xff] }
  0xc4   : > { %4491 = vmatprep.subr.bf16.mxu1 %v4490_v36  ;;  %v4394_v26 = vpack.c.bf16 %v2874_v24, %v2873_v23 }
  0xc6   : > { %4365 = vmatpush3.bf16.msra.mxu0 %v4362_v30  ;;  %v2876_v30 = vld [vmem:[%s5877_s1 + $0x588] sm:$0xff] }
  0xc7   : > { %4493 = vmatpush3.bf16.msra.mxu1 %v4490_v36  ;;  %4367 = vmatprep.subr.bf16.mxu0 %v4366_v42  ;;  %v2939_v36 = vld [vmem:[%s5877_s1 + $0x780] sm:$0xff]  ;;  %v4398_v34 = vpack.c.bf16 %v2876_v30, %v2875_v2  ;;  %v2384_v2 = vrot.slane %v5709_v52, 2  ;;  %v2385_v30 = vrot.slane %v5712_v53, 2 }
  0xc8   : > { %4495 = vmatprep.subr.bf16.mxu1 %v4494_v43  ;;  %v4526_v39 = vpack.c.bf16 %v2940_v31, %v2939_v36  ;;  %v4685_v36 = vld [vmem:[%s4809_s6 + $0x70] sm:$0xff] }
  0xc9   : > { %3771 = vmatmul.mubr.f32.vlgmr.msra.gmra.mrb[8].mxu0 %v5095_v48 }
  0xca   : > { %4369 = vmatpush3.bf16.msra.mxu0 %v4366_v42  ;;  %3947 = vmatmul.mubr.f32.vlgmr.msra.gmra.mrb[8].mxu1 %v5095_v48  ;;  %v2878_v42 = vld [vmem:[%s5877_s1 + $0x598] sm:$0xff] }
  0xcb   : > { %4497 = vmatpush3.bf16.msra.mxu1 %v4494_v43  ;;  %4371 = vmatprep.subr.bf16.mxu0 %v4370_v49  ;;  %v2941_v43 = vld [vmem:[%s5877_s1 + $0x790] sm:$0xff]  ;;  %v4402_v46 = vpack.c.bf16 %v2878_v42, %v2877_v40 }
  0xcc   : > { %4499 = vmatprep.subr.bf16.mxu1 %v4498_v50  ;;  %3773 = vmatprep.mubr.f32.mxu0 %v5106_v54  ;;  %v4530_v56 = vpack.c.bf16 %v2942_v44, %v2941_v43 }
  0xcd   : > { %3949 = vmatprep.mubr.f32.mxu1 %v5106_v54  ;;  %3774 = vmatmul.mubr.f32.gmra.mrb[10].mxu0 %v5118_v61 }
  0xce   : > { %4373 = vmatpush3.bf16.msra.mxu0 %v4370_v49  ;;  %3950 = vmatmul.mubr.f32.gmra.mrb[10].mxu1 %v5118_v61  ;;  %v2880_v49 = vld [vmem:[%s5877_s1 + $0x5a8] sm:$0xff] }
  0xcf   : > { %4501 = vmatpush3.bf16.msra.mxu1 %v4498_v50  ;;  %4375 = vmatprep.subr.bf16.mxu0 %v4374_v29  ;;  %v2943_v50 = vld [vmem:[%s5877_s1 + $0x7a0] sm:$0xff]  ;;  %v4406_v0 = vpack.c.bf16 %v2880_v49, %v2879_v47 }
  0xd0   : > { %4503 = vmatprep.subr.bf16.mxu1 %v4502_v4  ;;  %3776 = vmatprep.mubr.f32.mxu0 %v5131_v19 }
  0xd1   : > { %3952 = vmatprep.mubr.f32.mxu1 %v5131_v19  ;;  %3777 = vmatmul.mubr.f32.gmra.mrb[12].mxu0 %v5144_v13 }
  0xd2   : > { %4377 = vmatpush3.bf16.msra.mxu0 %v4374_v29  ;;  %3953 = vmatmul.mubr.f32.gmra.mrb[12].mxu1 %v5144_v13  ;;  %v4534_v29 = vpack.c.bf16 %v2944_v51, %v2943_v50 }
  0xd3   : > { %4505 = vmatpush3.bf16.msra.mxu1 %v4502_v4  ;;  %4379 = vmatprep.subr.bf16.mxu0 %v4378_v62  ;;  %v2881_v4 = vld [vmem:[%s5877_s1 + $0x5b0] sm:$0xff] }
  0xd4   : > { %4507 = vmatprep.subr.bf16.mxu1 %v4506_v1  ;;  %3779 = vmatprep.mubr.f32.mxu0 %v5163_v25 }
  0xd5   : > { %3955 = vmatprep.mubr.f32.mxu1 %v5163_v25  ;;  %3780 = vmatmul.mubr.f32.gmra.mrb[14].mxu0 %v5177_v35 }
  0xd6   : > { %4381 = vmatpush3.bf16.msra.mxu0 %v4378_v62  ;;  %3956 = vmatmul.mubr.f32.gmra.mrb[14].mxu1 %v5177_v35  ;;  %v4410_v62 = vpack.c.bf16 %v2882_v59, %v2881_v4 }
  0xd7   : > { %4509 = vmatpush3.bf16.msra.mxu1 %v4506_v1  ;;  %4383 = vmatprep.subr.bf16.mxu0 %v4382_v3 }
  0xd8   : > { %4511 = vmatprep.subr.bf16.mxu1 %v4510_v7  ;;  %3814 = vmatprep.mubr.f32.mxu0 %v5095_v48 }
  0xd9   : > { %3990 = vmatprep.mubr.f32.mxu1 %v5095_v48  ;;  %v2938_v48 = vld [vmem:[%s5877_s1 + $0x778] sm:$0xff] }
  0xda   : > { %4385 = vmatpush3.bf16.msra.mxu0 %v4382_v3  ;;  %v4522_v27 = vpack.c.bf16 %v2938_v48, %v2937_v38  ;;  %v4681_v38 = vld [vmem:[%s4809_s6 + $0x30] sm:$0xff]  ;;  %v4682_v48 = vld [vmem:[%s4809_s6 + $0x40] sm:$0xff] }
  0xdb   : > { %4513 = vmatpush3.bf16.msra.mxu1 %v4510_v7  ;;  %4387 = vmatprep.subr.bf16.mxu0 %v4386_v18  ;;  %v2885_v7 = vld [vmem:[%s5877_s1 + $0x5d0] sm:$0xff] }
  0xdc   : > { %4515 = vmatprep.subr.bf16.mxu1 %v4514_v12 }
  0xde   : > { %4389 = vmatpush3.bf16.msra.mxu0 %v4386_v18  ;;  %v2888_v18 = vld [vmem:[%s5877_s1 + $0x5e8] sm:$0xff] }
  0xdf   : > { %4517 = vmatpush3.bf16.msra.mxu1 %v4514_v12  ;;  %4391 = vmatprep.subr.bf16.mxu0 %v4390_v37  ;;  %v4680_v12 = vld [vmem:[%s4809_s6 + $0x20] sm:$0xff]  ;;  %v4422_v32 = vpack.c.bf16 %v2888_v18, %v2887_v11 }
  0xe0   : > { %4519 = vmatprep.subr.bf16.mxu1 %v4518_v21 }
  0xe2   : > { %4393 = vmatpush3.bf16.msra.mxu0 %v4390_v37  ;;  %v2890_v37 = vld [vmem:[%s5877_s1 + $0x5f8] sm:$0xff] }
  0xe3   : > { %4521 = vmatpush3.bf16.msra.mxu1 %v4518_v21  ;;  %4395 = vmatprep.subr.bf16.mxu0 %v4394_v26  ;;  %v2953_v21 = vld [vmem:[%s5877_s1 + $0x7f0] sm:$0xff]  ;;  %v4426_v23 = vpack.c.bf16 %v2890_v37, %v2889_v17 }
  0xe4   : > { %4523 = vmatprep.subr.bf16.mxu1 %v4522_v27 }
  0xe6   : > { %4397 = vmatpush3.bf16.msra.mxu0 %v4394_v26  ;;  %v4683_v26 = vld [vmem:[%s4809_s6 + $0x50] sm:$0xff] }
  0xe7   : > { %4525 = vmatpush3.bf16.msra.mxu1 %v4522_v27  ;;  %4399 = vmatprep.subr.bf16.mxu0 %v4398_v34  ;;  %v4684_v27 = vld [vmem:[%s4809_s6 + $0x60] sm:$0xff] }
  0xe8   : > { %4527 = vmatprep.subr.bf16.mxu1 %v4526_v39 }
  0xe9   : > { %3815 = vmatmul.mubr.f32.vlgmr.msra.gmra.mrb[8].mxu0 %v5106_v54 }
  0xea   : > { %4401 = vmatpush3.bf16.msra.mxu0 %v4398_v34  ;;  %3991 = vmatmul.mubr.f32.vlgmr.msra.gmra.mrb[8].mxu1 %v5106_v54  ;;  %v2945_v54 = vld [vmem:[%s5877_s1 + $0x7b0] sm:$0xff] }
  0xeb   : > { %4529 = vmatpush3.bf16.msra.mxu1 %v4526_v39  ;;  %4403 = vmatprep.subr.bf16.mxu0 %v4402_v46  ;;  %v4538_v1 = vpack.c.bf16 %v2946_v60, %v2945_v54 }
  0xec   : > { %4531 = vmatprep.subr.bf16.mxu1 %v4530_v56  ;;  %3817 = vmatprep.mubr.f32.mxu0 %v5118_v61 }
  0xed   : > { %3993 = vmatprep.mubr.f32.mxu1 %v5118_v61  ;;  %3818 = vmatmul.mubr.f32.gmra.mrb[10].mxu0 %v5131_v19  ;;  %v2884_v61 = vld [vmem:[%s5877_s1 + $0x5c8] sm:$0xff] }
  0xee   : > { %4405 = vmatpush3.bf16.msra.mxu0 %v4402_v46  ;;  %3994 = vmatmul.mubr.f32.gmra.mrb[10].mxu1 %v5131_v19  ;;  %v2947_v19 = vld [vmem:[%s5877_s1 + $0x7c0] sm:$0xff]  ;;  %v4414_v6 = vpack.c.bf16 %v2884_v61, %v2883_v15 }
  0xef   : > { %4533 = vmatpush3.bf16.msra.mxu1 %v4530_v56  ;;  %4407 = vmatprep.subr.bf16.mxu0 %v4406_v0  ;;  %v4542_v3 = vpack.c.bf16 %v2948_v63, %v2947_v19 }
  0xf0   : > { %4535 = vmatprep.subr.bf16.mxu1 %v4534_v29  ;;  %3820 = vmatprep.mubr.f32.mxu0 %v5144_v13 }
  0xf1   : > { %3996 = vmatprep.mubr.f32.mxu1 %v5144_v13  ;;  %3821 = vmatmul.mubr.f32.gmra.mrb[12].mxu0 %v5163_v25  ;;  %v2886_v13 = vld [vmem:[%s5877_s1 + $0x5d8] sm:$0xff] }
  0xf2   : > { %4409 = vmatpush3.bf16.msra.mxu0 %v4406_v0  ;;  %3997 = vmatmul.mubr.f32.gmra.mrb[12].mxu1 %v5163_v25  ;;  %v2949_v25 = vld [vmem:[%s5877_s1 + $0x7d0] sm:$0xff]  ;;  %v4418_v14 = vpack.c.bf16 %v2886_v13, %v2885_v7 }
  0xf3   : > { %4537 = vmatpush3.bf16.msra.mxu1 %v4534_v29  ;;  %4411 = vmatprep.subr.bf16.mxu0 %v4410_v62  ;;  %v4546_v10 = vpack.c.bf16 %v2950_v8, %v2949_v25 }
  0xf4   : > { %4539 = vmatprep.subr.bf16.mxu1 %v4538_v1  ;;  %3823 = vmatprep.mubr.f32.mxu0 %v5177_v35 }
  0xf5   : > { %3999 = vmatprep.mubr.f32.mxu1 %v5177_v35  ;;  %3824 = vmatmul.mubr.f32.gmra.mrb[14].mxu0 %v1704_v5  ;;  %v2951_v35 = vld [vmem:[%s5877_s1 + $0x7e0] sm:$0xff] }
  0xf6   : > { %4413 = vmatpush3.bf16.msra.mxu0 %v4410_v62  ;;  %4000 = vmatmul.mubr.f32.gmra.mrb[14].mxu1 %v1704_v5  ;;  %v4550_v16 = vpack.c.bf16 %v2952_v33, %v2951_v35 }
  0xf7   : > { %4541 = vmatpush3.bf16.msra.mxu1 %v4538_v1  ;;  %4415 = vmatprep.subr.bf16.mxu0 %v4414_v6 }
  0xf8   : > { %4543 = vmatprep.subr.bf16.mxu1 %v4542_v3  ;;  %3858 = vmatprep.mubr.f32.mxu0 %v4680_v12 }
  0xf9   : > { %4034 = vmatprep.mubr.f32.mxu1 %v4919_v9  ;;  %v2954_v9 = vld [vmem:[%s5877_s1 + $0x7f8] sm:$0xff] }
  0xfa   : > { %4417 = vmatpush3.bf16.msra.mxu0 %v4414_v6  ;;  %v4554_v24 = vpack.c.bf16 %v2954_v9, %v2953_v21 }
  0xfb   : > { %4545 = vmatpush3.bf16.msra.mxu1 %v4542_v3  ;;  %4419 = vmatprep.subr.bf16.mxu0 %v4418_v14 }
  0xfc   : > { %4547 = vmatprep.subr.bf16.mxu1 %v4546_v10 }
  0xfe   : > { %4421 = vmatpush3.bf16.msra.mxu0 %v4418_v14 }
  0xff   : > { %4549 = vmatpush3.bf16.msra.mxu1 %v4546_v10  ;;  %4423 = vmatprep.subr.bf16.mxu0 %v4422_v32 }
 0x100   : > { %4551 = vmatprep.subr.bf16.mxu1 %v4550_v16 }
 0x102   : > { %4425 = vmatpush3.bf16.msra.mxu0 %v4422_v32 }
 0x103   : > { %4553 = vmatpush3.bf16.msra.mxu1 %v4550_v16  ;;  %4427 = vmatprep.subr.bf16.mxu0 %v4426_v23 }
 0x104   : > { %4555 = vmatprep.subr.bf16.mxu1 %v4554_v24 }
 0x106   : > { %4429 = vmatpush3.bf16.msra.mxu0 %v4426_v23 }
 0x107   : > { %4557 = vmatpush3.bf16.msra.mxu1 %v4554_v24 }
 0x109   : > { %3859 = vmatmul.mubr.f32.vlgmr.msra.gmra.mrb[8].mxu0 %v4681_v38 }
 0x10a   : > { %4035 = vmatmul.mubr.f32.vlgmr.msra.gmra.mrb[8].mxu1 %v4950_v22  ;;  %3861 = vmatprep.mubr.f32.mxu0 %v4682_v48  ;;  %v4686_v22 = vld [vmem:[%s4809_s6 + $0x80] sm:$0xff] }
 0x10b   : > { %4037 = vmatprep.mubr.f32.mxu1 %v4958_v28  ;;  %v2386_v28 = vsel %vm888_vm0, %v2384_v2, %v2385_v30 }
 0x10d   : > { %3862 = vmatmul.mubr.f32.gmra.mrb[10].mxu0 %v4683_v26 }
 0x10e   : > { %4038 = vmatmul.mubr.f32.gmra.mrb[10].mxu1 %v4988_v41  ;;  %3864 = vmatprep.mubr.f32.mxu0 %v4684_v27 }
 0x10f   : > { %4040 = vmatprep.mubr.f32.mxu1 %v4993_v45 }
 0x111   : > { %3865 = vmatmul.mubr.f32.gmra.mrb[12].mxu0 %v4685_v36 }
 0x112   : > { %4041 = vmatmul.mubr.f32.gmra.mrb[12].mxu1 %v5016_v57  ;;  %3867 = vmatprep.mubr.f32.mxu0 %v4686_v22 }
 0x113   : > { %4043 = vmatprep.mubr.f32.mxu1 %v5019_v58 }
 0x115   : > { %3868 = vmatmul.mubr.f32.gmra.mrb[14].mxu0 %v5709_v52 }
 0x116   : > { %4044 = vmatmul.mubr.f32.gmra.mrb[14].mxu1 %v2386_v28 }
 0x15c   : > { %v3508_v41 = vpop.f32.mrb[0].mxu0 }
 0x15d   : > { %828 = vst [vmem:[%s5809_s7 + $0x20] sm:$0xff] %v3508_v41  ;;  %v850_v45 = vmul.f32 %v3508_v41, %v3508_v41  ;;  %v3684_v57 = vpop.f32.mrb[0].mxu1  ;;  %v780_v58 = vpop.f32.mrb[1].mxu0 }
 0x15e   : > { %1413 = vst [vmem:[%s5809_s7 + $0x28] sm:$0xff] %v3684_v57  ;;  %v1435_v31 = vmul.f32 %v3684_v57, %v3684_v57  ;;  %827 = vst [vmem:[%s5809_s7] sm:$0xff] %v780_v58  ;;  %v835_v34 = vadd.f32 %v3508_v41, %v780_v58  ;;  %v849_v39 = vmul.f32 %v780_v58, %v780_v58  ;;  %v1365_v40 = vpop.f32.mrb[1].mxu1 }
 0x15f   : > { %1412 = vst [vmem:[%s5809_s7 + $0x8] sm:$0xff] %v1365_v40  ;;  %v1420_v42 = vadd.f32 %v3684_v57, %v1365_v40  ;;  %v1434_v43 = vmul.f32 %v1365_v40, %v1365_v40 }
 0x160   : > { %v857_v44 = vadd.f32 %v850_v45, %v849_v39  ;;  %v3511_v46 = vpop.f32.mrb[2].mxu0 }
 0x161   : > { %v1442_v56 = vadd.f32 %v1435_v31, %v1434_v43  ;;  %830 = vst [vmem:[%s5809_s7 + $0x60] sm:$0xff] %v3511_v46  ;;  %v3687_v47 = vpop.f32.mrb[2].mxu1  ;;  %v790_v49 = vpop.f32.mrb[3].mxu0  ;;  %v852_v29 = vmul.f32 %v3511_v46, %v3511_v46 }
 0x162   : > { %1415 = vst [vmem:[%s5809_s7 + $0x68] sm:$0xff] %v3687_v47  ;;  %829 = vst [vmem:[%s5809_s7 + $0x40] sm:$0xff] %v790_v49  ;;  %v836_v50 = vadd.f32 %v835_v34, %v790_v49  ;;  %v851_v51 = vmul.f32 %v790_v49, %v790_v49  ;;  %v1375_v0 = vpop.f32.mrb[3].mxu1  ;;  %v1437_v60 = vmul.f32 %v3687_v47, %v3687_v47  ;;  %v4711_v49 = vmov 0.0  }
 0x163   : > { %1414 = vst [vmem:[%s5809_s7 + $0x48] sm:$0xff] %v1375_v0  ;;  %v1421_v52 = vadd.f32 %v1420_v42, %v1375_v0  ;;  %v1436_v53 = vmul.f32 %v1375_v0, %v1375_v0  ;;  %267 = vst [vmem:[%s5831_s9] sm:$0x1] %v4711_v49 }
 0x164   : > { %v858_v4 = vadd.f32 %v857_v44, %v851_v51  ;;  %v3514_v59 = vpop.f32.mrb[4].mxu0  ;;  %v837_v54 = vadd.f32 %v3511_v46, %v836_v50  ;;  %268 = vst [vmem:[%s5838_s12] sm:$0x1] %v4711_v49 }
 0x165   : > { %v1443_v55 = vadd.f32 %v1442_v56, %v1436_v53  ;;  %832 = vst [vmem:[%s5809_s7 + $0xa0] sm:$0xff] %v3514_v59  ;;  %v3690_v20 = vpop.f32.mrb[4].mxu1  ;;  %v800_v62 = vpop.f32.mrb[5].mxu0  ;;  %v1422_v1 = vadd.f32 %v3687_v47, %v1421_v52  ;;  %v854_v7 = vmul.f32 %v3514_v59, %v3514_v59 }
 0x166   : > { %1417 = vst [vmem:[%s5809_s7 + $0xa8] sm:$0xff] %v3690_v20  ;;  %831 = vst [vmem:[%s5809_s7 + $0x80] sm:$0xff] %v800_v62  ;;  %v838_v15 = vadd.f32 %v837_v54, %v800_v62  ;;  %v853_v61 = vmul.f32 %v800_v62, %v800_v62  ;;  %v859_v19 = vadd.f32 %v858_v4, %v852_v29  ;;  %v1385_v63 = vpop.f32.mrb[5].mxu1 }
 0x167   : > { %1416 = vst [vmem:[%s5809_s7 + $0x88] sm:$0xff] %v1385_v63  ;;  %v1423_v5 = vadd.f32 %v1422_v1, %v1385_v63  ;;  %v1438_v6 = vmul.f32 %v1385_v63, %v1385_v63  ;;  %v1444_v3 = vadd.f32 %v1443_v55, %v1437_v60  ;;  %v1439_v14 = vmul.f32 %v3690_v20, %v3690_v20 }
 0x168   : > { %v860_v13 = vadd.f32 %v859_v19, %v853_v61  ;;  %v3517_v25 = vpop.f32.mrb[6].mxu0  ;;  %v839_v8 = vadd.f32 %v3514_v59, %v838_v15 }
 0x169   : > { %v1445_v10 = vadd.f32 %v1444_v3, %v1438_v6  ;;  %834 = vst [vmem:[%s5809_s7 + $0xe0] sm:$0xff] %v3517_v25  ;;  %v3693_v11 = vpop.f32.mrb[6].mxu1  ;;  %v810_v18 = vpop.f32.mrb[7].mxu0  ;;  %v1424_v12 = vadd.f32 %v3690_v20, %v1423_v5  ;;  %v856_v9 = vmul.f32 %v3517_v25, %v3517_v25 }
 0x16a   : > { %1419 = vst [vmem:[%s5809_s7 + $0xe8] sm:$0xff] %v3693_v11  ;;  %833 = vst [vmem:[%s5809_s7 + $0xc0] sm:$0xff] %v810_v18  ;;  %v840_v35 = vadd.f32 %v839_v8, %v810_v18  ;;  %v855_v33 = vmul.f32 %v810_v18, %v810_v18  ;;  %v861_v32 = vadd.f32 %v860_v13, %v854_v7  ;;  %v1395_v16 = vpop.f32.mrb[7].mxu1 }
 0x16b   : > { %1418 = vst [vmem:[%s5809_s7 + $0xc8] sm:$0xff] %v1395_v16  ;;  %v1425_v17 = vadd.f32 %v1424_v12, %v1395_v16  ;;  %v1440_v37 = vmul.f32 %v1395_v16, %v1395_v16  ;;  %v1446_v21 = vadd.f32 %v1445_v10, %v1439_v14  ;;  %v1441_v38 = vmul.f32 %v3693_v11, %v3693_v11 }
 0x16c   : > { %v841_v23 = vadd.f32 %v3517_v25, %v840_v35  ;;  %v862_v24 = vadd.f32 %v861_v32, %v855_v33 }
 0x16d   : > { %v1426_v48 = vadd.f32 %v3693_v11, %v1425_v17  ;;  %v1447_v26 = vadd.f32 %v1446_v21, %v1440_v37 }
 0x16e   : > { %v842_v27 = vrot.slane %v841_v23, 4  ;;  %v863_v2 = vadd.f32 %v862_v24, %v856_v9 }
 0x16f   : > { %v1427_v30 = vrot.slane %v1426_v48, 4  ;;  %v1448_v36 = vadd.f32 %v1447_v26, %v1441_v38 }
 0x170   : > { %v843_v22 = vadd.f32 %v842_v27, %v841_v23  ;;  %v864_v28 = vrot.slane %v863_v2, 4 }
 0x171   : > { %v1428_v41 = vadd.f32 %v1427_v30, %v1426_v48  ;;  %v1449_v45 = vrot.slane %v1448_v36, 4 }
 0x172   : > { %v844_v57 = vrot.slane %v843_v22, 2  ;;  %v865_v58 = vadd.f32 %v864_v28, %v863_v2 }
 0x173   : > { %v1429_v31 = vrot.slane %v1428_v41, 2  ;;  %v1450_v34 = vadd.f32 %v1449_v45, %v1448_v36 }
 0x174   : > { %v845_v39 = vadd.f32 %v844_v57, %v843_v22  ;;  %v866_v40 = vrot.slane %v865_v58, 2 }
 0x175   : > { %v1430_v42 = vadd.f32 %v1429_v31, %v1428_v41  ;;  %v1451_v43 = vrot.slane %v1450_v34, 2 }
 0x176   : > { %v846_v44 = vrot.slane %v845_v39, 1  ;;  %v867_v46 = vadd.f32 %v866_v40, %v865_v58 }
 0x177   : > { %v1431_v56 = vrot.slane %v1430_v42, 1  ;;  %v1452_v47 = vadd.f32 %v1451_v43, %v1450_v34 }
 0x178   : > { %v847_v50 = vadd.f32 %v846_v44, %v845_v39  ;;  %v868_v51 = vrot.slane %v867_v46, 1 }
 0x179   : > { %v1432_v0 = vadd.f32 %v1431_v56, %v1430_v42  ;;  %v1453_v52 = vrot.slane %v1452_v47, 1 }
 0x17a   : > { %v869_v53 = vadd.f32 %v868_v51, %v867_v46 }
 0x17b   : > { %v5841_v29 = vadd.f32 %v1432_v0, %v847_v50  ;;  %v1454_v4 = vadd.f32 %v1453_v52, %v1452_v47 }
 0x17d   : > { %v5843_v59 = vadd.f32 %v1454_v4, %v869_v53 }
 0x1dc   : > { %v3860_v54 = vpop.f32.mrb[8].mxu0 }
 0x1dd   : > { %1967 = vst [vmem:[%s5809_s7 + $0x30] sm:$0xff] %v3860_v54  ;;  %v1989_v60 = vmul.f32 %v3860_v54, %v3860_v54  ;;  %v4036_v55 = vpop.f32.mrb[8].mxu1  ;;  %v1919_v20 = vpop.f32.mrb[9].mxu0 }
 0x1de   : > { %2519 = vst [vmem:[%s5809_s7 + $0x38] sm:$0xff] %v4036_v55  ;;  %v2541_v62 = vmul.f32 %v4036_v55, %v4036_v55  ;;  %1966 = vst [vmem:[%s5809_s7 + $0x10] sm:$0xff] %v1919_v20  ;;  %v1974_v1 = vadd.f32 %v3860_v54, %v1919_v20  ;;  %v1988_v15 = vmul.f32 %v1919_v20, %v1919_v20  ;;  %v2471_v61 = vpop.f32.mrb[9].mxu1 }
 0x1df   : > { %2518 = vst [vmem:[%s5809_s7 + $0x18] sm:$0xff] %v2471_v61  ;;  %v2526_v19 = vadd.f32 %v4036_v55, %v2471_v61  ;;  %v2540_v63 = vmul.f32 %v2471_v61, %v2471_v61 }
 0x1e0   : > { %v1996_v5 = vadd.f32 %v1989_v60, %v1988_v15  ;;  %v3863_v6 = vpop.f32.mrb[10].mxu0 }
 0x1e1   : > { %v2548_v3 = vadd.f32 %v2541_v62, %v2540_v63  ;;  %1969 = vst [vmem:[%s5809_s7 + $0x70] sm:$0xff] %v3863_v6  ;;  %v4039_v7 = vpop.f32.mrb[10].mxu1  ;;  %v1929_v13 = vpop.f32.mrb[11].mxu0  ;;  %v1991_v18 = vmul.f32 %v3863_v6, %v3863_v6 }
 0x1e2   : > { %2521 = vst [vmem:[%s5809_s7 + $0x78] sm:$0xff] %v4039_v7  ;;  %1968 = vst [vmem:[%s5809_s7 + $0x50] sm:$0xff] %v1929_v13  ;;  %v1975_v25 = vadd.f32 %v1974_v1, %v1929_v13  ;;  %v1990_v8 = vmul.f32 %v1929_v13, %v1929_v13  ;;  %v2481_v14 = vpop.f32.mrb[11].mxu1  ;;  %v2543_v32 = vmul.f32 %v4039_v7, %v4039_v7 }
 0x1e3   : > { %2520 = vst [vmem:[%s5809_s7 + $0x58] sm:$0xff] %v2481_v14  ;;  %v2527_v10 = vadd.f32 %v2526_v19, %v2481_v14  ;;  %v2542_v11 = vmul.f32 %v2481_v14, %v2481_v14 }
 0x1e4   : > { %v1997_v12 = vadd.f32 %v1996_v5, %v1990_v8  ;;  %v3866_v35 = vpop.f32.mrb[12].mxu0  ;;  %v1976_v33 = vadd.f32 %v3863_v6, %v1975_v25 }
 0x1e5   : > { %v2549_v16 = vadd.f32 %v2548_v3, %v2542_v11  ;;  %1971 = vst [vmem:[%s5809_s7 + $0xb0] sm:$0xff] %v3866_v35  ;;  %v4042_v17 = vpop.f32.mrb[12].mxu1  ;;  %v1939_v37 = vpop.f32.mrb[13].mxu0  ;;  %v2528_v21 = vadd.f32 %v4039_v7, %v2527_v10  ;;  %v1993_v2 = vmul.f32 %v3866_v35, %v3866_v35 }
 0x1e6   : > { %2523 = vst [vmem:[%s5809_s7 + $0xb8] sm:$0xff] %v4042_v17  ;;  %1970 = vst [vmem:[%s5809_s7 + $0x90] sm:$0xff] %v1939_v37  ;;  %v1977_v9 = vadd.f32 %v1976_v33, %v1939_v37  ;;  %v1992_v23 = vmul.f32 %v1939_v37, %v1939_v37  ;;  %v1998_v24 = vadd.f32 %v1997_v12, %v1991_v18  ;;  %v2491_v38 = vpop.f32.mrb[13].mxu1 }
 0x1e7   : > { %2522 = vst [vmem:[%s5809_s7 + $0x98] sm:$0xff] %v2491_v38  ;;  %v2529_v48 = vadd.f32 %v2528_v21, %v2491_v38  ;;  %v2544_v26 = vmul.f32 %v2491_v38, %v2491_v38  ;;  %v2550_v27 = vadd.f32 %v2549_v16, %v2543_v32  ;;  %v2545_v28 = vmul.f32 %v4042_v17, %v4042_v17 }
 0x1e8   : > { %v1999_v30 = vadd.f32 %v1998_v24, %v1992_v23  ;;  %v3869_v36 = vpop.f32.mrb[14].mxu0  ;;  %v1978_v22 = vadd.f32 %v3866_v35, %v1977_v9  ;;  %v2562_v35 = vld [vmem:[%s5831_s9] sm:$0x1] }
 0x1e9   : > { %v2551_v41 = vadd.f32 %v2550_v27, %v2544_v26  ;;  %1973 = vst [vmem:[%s5809_s7 + $0xf0] sm:$0xff] %v3869_v36  ;;  %v4045_v45 = vpop.f32.mrb[14].mxu1  ;;  %v1949_v57 = vpop.f32.mrb[15].mxu0  ;;  %v2530_v58 = vadd.f32 %v4042_v17, %v2529_v48  ;;  %v1995_v46 = vmul.f32 %v3869_v36, %v3869_v36  ;;  %v2565_v17 = vld [vmem:[%s5838_s12] sm:$0x1] }
 0x1ea   : > { %2525 = vst [vmem:[%s5809_s7 + $0xf8] sm:$0xff] %v4045_v45  ;;  %1972 = vst [vmem:[%s5809_s7 + $0xd0] sm:$0xff] %v1949_v57  ;;  %v1979_v31 = vadd.f32 %v1978_v22, %v1949_v57  ;;  %v1994_v34 = vmul.f32 %v1949_v57, %v1949_v57  ;;  %v2000_v39 = vadd.f32 %v1999_v30, %v1993_v2  ;;  %v2501_v40 = vpop.f32.mrb[15].mxu1 }
 0x1eb   : > { %2524 = vst [vmem:[%s5809_s7 + $0xd8] sm:$0xff] %v2501_v40  ;;  %v2531_v42 = vadd.f32 %v2530_v58, %v2501_v40  ;;  %v2546_v43 = vmul.f32 %v2501_v40, %v2501_v40  ;;  %v2552_v44 = vadd.f32 %v2551_v41, %v2545_v28  ;;  %v2547_v49 = vmul.f32 %v4045_v45, %v4045_v45 }
 0x1ec   : > { %v1980_v56 = vadd.f32 %v3869_v36, %v1979_v31  ;;  %v2001_v47 = vadd.f32 %v2000_v39, %v1994_v34 }
 0x1ed   : > { %v2532_v50 = vadd.f32 %v4045_v45, %v2531_v42  ;;  %v2553_v51 = vadd.f32 %v2552_v44, %v2546_v43 }
 0x1ee   : > { %v1981_v0 = vrot.slane %v1980_v56, 4  ;;  %v2002_v52 = vadd.f32 %v2001_v47, %v1995_v46 }
 0x1ef   : > { %v2533_v53 = vrot.slane %v2532_v50, 4  ;;  %v2554_v4 = vadd.f32 %v2553_v51, %v2547_v49 }
 0x1f0   : > { %v1982_v54 = vadd.f32 %v1981_v0, %v1980_v56  ;;  %v2003_v60 = vrot.slane %v2002_v52, 4 }
 0x1f1   : > { %v2534_v55 = vadd.f32 %v2533_v53, %v2532_v50  ;;  %v2555_v20 = vrot.slane %v2554_v4, 4 }
 0x1f2   : > { %v1983_v62 = vrot.slane %v1982_v54, 2  ;;  %v2004_v1 = vadd.f32 %v2003_v60, %v2002_v52 }
 0x1f3   : > { %v2535_v15 = vrot.slane %v2534_v55, 2  ;;  %v2556_v61 = vadd.f32 %v2555_v20, %v2554_v4 }
 0x1f4   : > { %v1984_v19 = vadd.f32 %v1983_v62, %v1982_v54  ;;  %v2005_v63 = vrot.slane %v2004_v1, 2 }
 0x1f5   : > { %v2536_v5 = vadd.f32 %v2535_v15, %v2534_v55  ;;  %v2557_v6 = vrot.slane %v2556_v61, 2 }
 0x1f6   : > { %v1985_v3 = vrot.slane %v1984_v19, 1  ;;  %v2006_v7 = vadd.f32 %v2005_v63, %v2004_v1 }
 0x1f7   : > { %v2537_v13 = vrot.slane %v2536_v5, 1  ;;  %v2558_v25 = vadd.f32 %v2557_v6, %v2556_v61 }
 0x1f8   : > { %v1986_v8 = vadd.f32 %v1985_v3, %v1984_v19  ;;  %v2007_v14 = vrot.slane %v2006_v7, 1 }
 0x1f9   : > { %v2559_v10 = vrot.slane %v2558_v25, 1  ;;  %v2538_v12 = vadd.f32 %v2537_v13, %v2536_v5 }
 0x1fa   : > { %v1987_v11 = vadd.f32 %v1986_v8, %v5841_v29  ;;  %v2008_v18 = vadd.f32 %v2007_v14, %v2006_v7 }
 0x1fb   : > { %v2560_v16 = vadd.f32 %v2559_v10, %v2558_v25 }
 0x1fc   : > { %v2009_v33 = vadd.f32 %v2008_v18, %v5843_v59  ;;  %v2539_v32 = vadd.f32 %v2538_v12, %v1987_v11 }
 0x1fe   : > { %v2561_v37 = vadd.f32 %v2560_v16, %v2009_v33  ;;  %v2563_v21 = vadd.f32 %v2562_v35, %v2539_v32 }
 0x200   : > { %2564 = vst [vmem:[%s5831_s9] sm:$0x1] %v2563_v21  ;;  %v2566_v9 = vadd.f32 %v2565_v17, %v2561_v37 }
 0x202   : > { %2567 = vst [vmem:[%s5838_s12] sm:$0x1] %v2566_v9 }
 0x203 PF: > { %s15_s17 = sadd.s32 1, %s4709_s17   ;;  %s5881_s15 = smov %s4705_s16 }
 0x204   : > { %p12_p5 = scmp.ge.s32.totalorder %s15_s17, 4   ;;  %s5882_s16 = smov %s5884_s18 }
 0x206   :  { %14 = sbr.rel (!%p12_p5) target bundleno = 2 (0x2), region = 102 }

</bundles_post_ra>
